<compile_context>
chip_gen: v7x
topology: tpu7x:2x2x1
jax: 0.10.0
libtpu: 0.0.40
codegen_flags: <defaults>
</compile_context>

<pallas_src>
import functools

import jax
import jax.numpy as jnp
from jax import lax
from jax.experimental import pallas as pl
from jax.experimental.pallas import tpu as pltpu


# --------------------------------------------------------------------------- #
# Block-size selection (graphs per grid step)
# --------------------------------------------------------------------------- #
def _choose_block_graphs(B, N, K, target_nodes=512, sel_bytes_cap=4 << 20):
    """Graphs per grid step.

    Bb*N ~ target_nodes keeps the matmuls MXU-deep while the (K*M, M) bf16
    one-hot gather stays a few MiB (well inside the 32 MiB scoped-VMEM default
    on every generation, including v7x's 64 MiB physical VMEM).  G = B // Bb is
    kept >= 2 when B >= 2 so ("parallel",) sharding feeds both v7x TensorCores.
    """
    max_m = max(N, int((sel_bytes_cap / (2.0 * max(K, 1))) ** 0.5))
    tgt = min(target_nodes, max_m)
    bb = max(1, min(B, tgt // max(N, 1)))
    while bb > 1 and B % bb:
        bb -= 1
    while bb > 1 and (B // bb) < 2:          # give the 2nd TensorCore work (v7x)
        bb -= 1
        while bb > 1 and B % bb:
            bb -= 1
    return bb


# --------------------------------------------------------------------------- #
# Fused kNN + EdgeConvBlock (+ mean_nodes + fc head) kernel
# --------------------------------------------------------------------------- #
def _edgeconv_kernel(x_ref, w1c_ref, w1n_ref, b1_ref, w2_ref, b2_ref,
                     w3_ref, b3_ref, wsc_ref, bsc_ref, *rest, k, pool):
    if pool:
        hw1_ref, hb1_ref, hw2_ref, hb2_ref, o_ref = rest
    else:
        (o_ref,) = rest

    bb, n, cin = x_ref.shape
    m = bb * n
    x = x_ref[...]                                                   # (Bb,N,Cin) f32

    # ---- fused kNN: remove_self_loop(segmented_knn_graph(x, k+1)) ----------
    xx = jnp.einsum("bic,bjc->bij", x, x,
                    preferred_element_type=jnp.float32)              # (Bb,N,N)
    xsq = x * x
    sq_row = jnp.sum(xsq, axis=-1, keepdims=True)                    # (Bb,N,1)
    sq_col = jnp.sum(xsq, axis=-1)[:, None, :]                       # (Bb,1,N)
    ri = lax.broadcasted_iota(jnp.int32, (bb, n, n), 1)
    ci = lax.broadcasted_iota(jnp.int32, (bb, n, n), 2)
    d = jnp.maximum(sq_row + sq_col - 2.0 * xx, 0.0)                 # >= 0
    d = jnp.where(ri == ci, jnp.float32(1e30), d)                    # drop self loops
    # Pack the column index into the low mantissa bits of d: each of the k
    # argmin passes is then a SINGLE lane-min reduce (ties -> lowest column).
    sbits = max((n - 1).bit_length(), 1)
    key = ((pltpu.bitcast(d, jnp.int32) >> sbits) << sbits) | ci
    big = jnp.int32(jnp.iinfo(jnp.int32).max)
    lowmask = jnp.int32((1 << sbits) - 1)
    goff = lax.broadcasted_iota(jnp.int32, (bb, n, 1), 0) * n        # block-local ids

    cols = []
    for _ in range(k):                        # k is small & static -> unrolled
        kmin = jnp.min(key, axis=-1, keepdims=True)                  # (Bb,N,1)
        col = kmin & lowmask
        key = jnp.where(ci == col, big, key)                         # mask the pick
        cols.append(col + goff)
    colk = jnp.stack(cols, axis=0)                                   # (K,Bb,N,1)
    lane_m = lax.broadcasted_iota(jnp.int32, (k, bb, n, m), 3)
    sel = (lane_m == colk).astype(jnp.bfloat16).reshape(k * m, m)    # one-hot gather

    # ---- EdgeConv MLP on all K*M edge rows at once --------------------------
    x2 = x.reshape(m, cin).astype(jnp.bfloat16)
    # [x_i, x_j - x_i] @ W1 == x_i @ (W1a - W1b) + x_j @ W1b  (hoisted out of K)
    hc = jnp.dot(x2, w1c_ref[...], preferred_element_type=jnp.float32) + b1_ref[...]
    hn = jnp.dot(x2, w1n_ref[...], preferred_element_type=jnp.float32)
    c1 = hn.shape[1]
    hj = jnp.dot(sel, hn.astype(jnp.bfloat16),
                 preferred_element_type=jnp.float32)                 # (K*M, C1)
    h = jnp.maximum(hj.reshape(k, m, c1) + hc[None, :, :], 0.0).reshape(k * m, c1)
    h = jnp.maximum(jnp.dot(h.astype(jnp.bfloat16), w2_ref[...],
                            preferred_element_type=jnp.float32) + b2_ref[...], 0.0)
    h = jnp.maximum(jnp.dot(h.astype(jnp.bfloat16), w3_ref[...],
                            preferred_element_type=jnp.float32) + b3_ref[...], 0.0)
    cout = h.shape[1]
    agg = jnp.mean(h.reshape(k, m, cout), axis=0)                    # fn.mean over K

    # shortcut: Linear(no bias) + folded BatchNorm (in_feat != out_feat here)
    sc = jnp.dot(x2, wsc_ref[...], preferred_element_type=jnp.float32) + bsc_ref[...]
    out = jnp.maximum(sc + agg, 0.0)                                 # (M, Cout)

    if pool:
        # dgl.mean_nodes + fc head fused into the last block's kernel
        pooled = jnp.mean(out.reshape(bb, n, cout), axis=1).astype(jnp.bfloat16)
        hh = jnp.maximum(jnp.dot(pooled, hw1_ref[...],
                                 preferred_element_type=jnp.float32) + hb1_ref[...],
                         0.0)
        # Dropout(p=0.1) is the identity at inference
        o_ref[...] = jnp.dot(hh.astype(jnp.bfloat16), hw2_ref[...],
                             preferred_element_type=jnp.float32) + hb2_ref[...]
    else:
        o_ref[...] = out.reshape(bb, n, cout)


# --------------------------------------------------------------------------- #
# Pallas wrapper
# --------------------------------------------------------------------------- #
def edge_conv(x, k, block_params, bb, *, pool, head_params=None):
    """One fused (kNN + EdgeConvBlock [+ mean_nodes + fc head]) pallas_call."""
    B, N, Cin = x.shape
    G = B // bb
    w1c, w1n, b1, w2, b2, w3, b3, wsc, bsc = block_params
    Cout = w3.shape[1]

    def wspec(w):
        return pl.BlockSpec(w.shape, lambda g: (0, 0))

    args = [x, w1c, w1n, b1, w2, b2, w3, b3, wsc, bsc]
    in_specs = [pl.BlockSpec((bb, N, Cin), lambda g: (g, 0, 0))]
    in_specs += [wspec(a) for a in args[1:]]

    if pool:
        hw1, hb1, hw2, hb2 = head_params
        nc = hw2.shape[1]
        args += [hw1, hb1, hw2, hb2]
        in_specs += [wspec(hw1), wspec(hb1), wspec(hw2), wspec(hb2)]
        out_shape = jax.ShapeDtypeStruct((G, bb, nc), jnp.float32)
        out_spec = pl.BlockSpec((None, bb, nc), lambda g: (g, 0, 0))
    else:
        out_shape = jax.ShapeDtypeStruct((B, N, Cout), jnp.float32)
        out_spec = pl.BlockSpec((bb, N, Cout), lambda g: (g, 0, 0))

    out = pl.pallas_call(
        functools.partial(_edgeconv_kernel, k=k, pool=pool),
        out_shape=out_shape,
        grid=(G,),
        in_specs=in_specs,
        out_specs=out_spec,
        compiler_params=pltpu.CompilerParams(dimension_semantics=("parallel",)),
    )(*args)
    return out.reshape(B, out.shape[-1]) if pool else out


# --------------------------------------------------------------------------- #
# Parameter construction (deterministic, synthetic; inference-folded)
# --------------------------------------------------------------------------- #
def make_params(key, input_dims, conv_params, fc_params, num_classes):
    def nrm(k, shape, scale):
        return scale * jax.random.normal(k, shape, dtype=jnp.float32)

    def bn_affine(k, c, eps=1e-5):
        # eval-mode BatchNorm1d folded to per-channel scale/bias (running stats)
        k1, k2, k3, k4 = jax.random.split(k, 4)
        gamma = 1.0 + 0.1 * jax.random.normal(k1, (c,), jnp.float32)
        beta = 0.1 * jax.random.normal(k2, (c,), jnp.float32)
        mean = 0.1 * jax.random.normal(k3, (c,), jnp.float32)
        var = 1.0 + 0.1 * jnp.abs(jax.random.normal(k4, (c,), jnp.float32))
        s = gamma / jnp.sqrt(var + eps)
        return s, beta - mean * s

    n_blocks = len(conv_params)
    keys = jax.random.split(key, 16 + 8 * n_blocks)
    ki = iter(range(len(keys)))
    nxt = lambda: keys[next(ki)]
    bf16 = lambda a: a.astype(jnp.bfloat16)

    # bn_fts (input BatchNorm1d), folded below into the first EdgeConv block
    bn_s, bn_b = bn_affine(nxt(), input_dims)

    convs = []
    in_feat = input_dims
    for bi, (_k, channels) in enumerate(conv_params):
        assert len(channels) == 3
        c_prev = 2 * in_feat
        ws, bs = [], []
        for cout in channels:
            w = nrm(nxt(), (c_prev, cout), (2.0 / c_prev) ** 0.5)
            s, b = bn_affine(nxt(), cout)
            ws.append(w * s[None, :])                 # fold per-layer BN scale
            bs.append(b.reshape(1, cout))
            c_prev = cout
        wsc = nrm(nxt(), (in_feat, channels[-1]), (2.0 / in_feat) ** 0.5)
        s, b = bn_affine(nxt(), channels[-1])
        wsc = wsc * s[None, :]
        bsc = b.reshape(1, channels[-1])

        # split layer-1:  [x_i, x_j - x_i] @ W1 = x_i @ (W1a - W1b) + x_j @ W1b
        w1 = ws[0]
        w1c = w1[:in_feat] - w1[in_feat:]
        w1n = w1[in_feat:]
        b1 = bs[0]

        if bi == 0:
            # fold bn_fts (x -> x*s + b) into the first block's weights:
            #   (x*s + b) @ W = x @ (s[:,None]*W) + b @ W
            b_row = bn_b.reshape(1, in_feat)
            b1 = b1 + b_row @ w1c + b_row @ w1n
            bsc = bsc + b_row @ wsc
            w1c = bn_s[:, None] * w1c
            w1n = bn_s[:, None] * w1n
            wsc = bn_s[:, None] * wsc

        convs.append((bf16(w1c), bf16(w1n), b1, bf16(ws[1]), bs[1],
                      bf16(ws[2]), bs[2], bf16(wsc), bsc))
        in_feat = channels[-1]

    params = {"convs": convs}
    c_in = conv_params[-1][1][-1]
    hidden = fc_params[0][0]
    params["fc_w1"] = bf16(nrm(nxt(), (c_in, hidden), (2.0 / c_in) ** 0.5))
    params["fc_b1"] = 0.1 * jax.random.normal(nxt(), (1, hidden), jnp.float32)
    params["fc_w2"] = bf16(nrm(nxt(), (hidden, num_classes), (2.0 / hidden) ** 0.5))
    params["fc_b2"] = 0.1 * jax.random.normal(nxt(), (1, num_classes), jnp.float32)
    return params


# --------------------------------------------------------------------------- #
# ParticleNet forward
# --------------------------------------------------------------------------- #
def particlenet_forward(features, params, conv_params):
    """features: [B, N, input_dims] float32 -> logits [B, num_classes]."""
    B, N, _ = features.shape
    n_blocks = len(conv_params)
    head = (params["fc_w1"], params["fc_b1"], params["fc_w2"], params["fc_b2"])

    fts = features                           # bn_fts folded into block-0 weights
    for i, (k, _channels) in enumerate(conv_params):
        assert N > k, "kNN needs more than k nodes per graph"
        bb = _choose_block_graphs(B, N, k)
        last = i == n_blocks - 1
        # The kNN graph for block i is built from block i's input features
        # (block 0: raw inputs == batch_graph; block i>0: previous conv output),
        # fused into the same kernel so activations are read from HBM once.
        fts = edge_conv(fts, k, params["convs"][i], bb, pool=last,
                        head_params=head if last else None)
    # use_fusion=False -> no fusion block; mean_nodes + fc head are fused into
    # the last EdgeConv kernel above.
    return fts


# --------------------------------------------------------------------------- #
if __name__ == "__main__":
    B, N = 2, 16
    input_dims, num_classes = 4, 5
    conv_params = [(7, (32, 32, 32)), (7, (64, 64, 64))]
    fc_params = [(128, 0.1)]

    x = jax.random.normal(jax.random.PRNGKey(0), (B, N, input_dims), dtype=jnp.float32)
    params = make_params(jax.random.PRNGKey(42), input_dims, conv_params, fc_params,
                         num_classes)

    fwd = jax.jit(functools.partial(particlenet_forward, conv_params=conv_params))
    out = jax.block_until_ready(fwd(x, params))
    assert out.shape == (B, num_classes) and out.dtype == jnp.float32
    print("KERNEL_OK")
</pallas_src>

<mosaic_0001>
module attributes {stable_mosaic.version = 11 : i64} {
  func.func @_edgeconv_kernel(%arg0: i32, %arg1: memref<1x16x32xf32, #tpu.memory_space<vmem>>, %arg2: memref<32x64xbf16, #tpu.memory_space<vmem>>, %arg3: memref<32x64xbf16, #tpu.memory_space<vmem>>, %arg4: memref<1x64xf32, #tpu.memory_space<vmem>>, %arg5: memref<64x64xbf16, #tpu.memory_space<vmem>>, %arg6: memref<1x64xf32, #tpu.memory_space<vmem>>, %arg7: memref<64x64xbf16, #tpu.memory_space<vmem>>, %arg8: memref<1x64xf32, #tpu.memory_space<vmem>>, %arg9: memref<32x64xbf16, #tpu.memory_space<vmem>>, %arg10: memref<1x64xf32, #tpu.memory_space<vmem>>, %arg11: memref<64x128xbf16, #tpu.memory_space<vmem>>, %arg12: memref<1x128xf32, #tpu.memory_space<vmem>>, %arg13: memref<128x5xbf16, #tpu.memory_space<vmem>>, %arg14: memref<1x5xf32, #tpu.memory_space<vmem>>, %arg15: memref<1x1x5xf32, #tpu.memory_space<vmem>>) attributes {dimension_semantics = [#tpu.dimension_semantics<parallel>], iteration_bounds = array<i64: 2>, scalar_prefetch = 0 : i64, scratch_operands = 0 : i64, tpu.core_type = #tpu.core_type<tc>, window_params = [{transform_indices = @transform_0, window_bounds = array<i64: 1, 16, 32>}, {pipeline_mode = #tpu.pipeline_mode<synchronous>, transform_indices = @transform_1, window_bounds = array<i64: 32, 64>}, {pipeline_mode = #tpu.pipeline_mode<synchronous>, transform_indices = @transform_2, window_bounds = array<i64: 32, 64>}, {pipeline_mode = #tpu.pipeline_mode<synchronous>, transform_indices = @transform_3, window_bounds = array<i64: 1, 64>}, {pipeline_mode = #tpu.pipeline_mode<synchronous>, transform_indices = @transform_4, window_bounds = array<i64: 64, 64>}, {pipeline_mode = #tpu.pipeline_mode<synchronous>, transform_indices = @transform_5, window_bounds = array<i64: 1, 64>}, {pipeline_mode = #tpu.pipeline_mode<synchronous>, transform_indices = @transform_6, window_bounds = array<i64: 64, 64>}, {pipeline_mode = #tpu.pipeline_mode<synchronous>, transform_indices = @transform_7, window_bounds = array<i64: 1, 64>}, {pipeline_mode = #tpu.pipeline_mode<synchronous>, transform_indices = @transform_8, window_bounds = array<i64: 32, 64>}, {pipeline_mode = #tpu.pipeline_mode<synchronous>, transform_indices = @transform_9, window_bounds = array<i64: 1, 64>}, {pipeline_mode = #tpu.pipeline_mode<synchronous>, transform_indices = @transform_10, window_bounds = array<i64: 64, 128>}, {pipeline_mode = #tpu.pipeline_mode<synchronous>, transform_indices = @transform_11, window_bounds = array<i64: 1, 128>}, {pipeline_mode = #tpu.pipeline_mode<synchronous>, transform_indices = @transform_12, window_bounds = array<i64: 128, 5>}, {pipeline_mode = #tpu.pipeline_mode<synchronous>, transform_indices = @transform_13, window_bounds = array<i64: 1, 5>}, {transform_indices = @transform_14, window_bounds = array<i64: 1, 1, 5>}]} {
    %c0 = arith.constant 0 : index
    %c0_0 = arith.constant 0 : index
    %c0_1 = arith.constant 0 : index
    %0 = vector.load %arg1[%c0, %c0_0, %c0_1] : memref<1x16x32xf32, #tpu.memory_space<vmem>>, vector<1x16x32xf32>
    "tpu.trace_start"() <{level = 10 : i32, message = "bic,bjc->bij"}> : () -> ()
    %cst = arith.constant dense<0.000000e+00> : vector<1x16x16xf32>
    %1 = tpu.matmul %0, %0, %cst {dimension_numbers = #tpu.dot_dimension_numbers<[2], [2], [1], [1], [0, 0, 0, 1, 1, 1], [0], [0]>} : vector<1x16x32xf32>, vector<1x16x32xf32>, vector<1x16x16xf32> -> vector<1x16x16xf32>
    "tpu.trace_stop"() : () -> ()
    %2 = arith.mulf %0, %0 : vector<1x16x32xf32>
    %cst_2 = arith.constant dense<0.000000e+00> : vector<1x16xf32>
    %3 = vector.multi_reduction <add>, %2, %cst_2 [2] : vector<1x16x32xf32> to vector<1x16xf32>
    %4 = vector.shape_cast %3 : vector<1x16xf32> to vector<1x16x1xf32>
    %cst_3 = arith.constant dense<0.000000e+00> : vector<1x16xf32>
    %5 = vector.multi_reduction <add>, %2, %cst_3 [2] : vector<1x16x32xf32> to vector<1x16xf32>
    %6 = vector.shape_cast %5 : vector<1x16xf32> to vector<1x1x16xf32>
    %7 = tpu.iota {dimensions = array<i32: 1>} : vector<1x16x16xi32>
    %8 = tpu.iota {dimensions = array<i32: 2>} : vector<1x16x16xi32>
    %9 = vector.broadcast %4 : vector<1x16x1xf32> to vector<1x16x16xf32>
    %10 = vector.broadcast %6 : vector<1x1x16xf32> to vector<1x16x16xf32>
    %11 = arith.addf %9, %10 : vector<1x16x16xf32>
    %cst_4 = arith.constant 2.000000e+00 : f32
    %12 = vector.broadcast %cst_4 : f32 to vector<1x16x16xf32>
    %13 = arith.mulf %12, %1 : vector<1x16x16xf32>
    %14 = arith.subf %11, %13 : vector<1x16x16xf32>
    %cst_5 = arith.constant 0.000000e+00 : f32
    %15 = vector.broadcast %cst_5 : f32 to vector<1x16x16xf32>
    %16 = arith.maximumf %14, %15 : vector<1x16x16xf32>
    %17 = arith.cmpi eq, %7, %8 : vector<1x16x16xi32>
    %cst_6 = arith.constant 1.000000e+30 : f32
    %18 = vector.broadcast %cst_6 : f32 to vector<1x16x16xf32>
    %19 = arith.select %17, %18, %16 : vector<1x16x16xi1>, vector<1x16x16xf32>
    %20 = tpu.bitcast %19 : vector<1x16x16xf32> -> vector<1x16x16xi32>
    %c4_i32 = arith.constant 4 : i32
    %21 = vector.broadcast %c4_i32 : i32 to vector<1x16x16xi32>
    %22 = arith.shrsi %20, %21 : vector<1x16x16xi32>
    %c4_i32_7 = arith.constant 4 : i32
    %23 = vector.broadcast %c4_i32_7 : i32 to vector<1x16x16xi32>
    %24 = arith.shli %22, %23 : vector<1x16x16xi32>
    %25 = arith.ori %24, %8 : vector<1x16x16xi32>
    %26 = tpu.iota {dimensions = array<i32: 0>} : vector<1x16x1xi32>
    %c16_i32 = arith.constant 16 : i32
    %27 = vector.broadcast %c16_i32 : i32 to vector<1x16x1xi32>
    %28 = arith.muli %26, %27 : vector<1x16x1xi32>
    %cst_8 = arith.constant dense<2147483647> : vector<1x16xi32>
    %29 = vector.multi_reduction <minsi>, %25, %cst_8 [2] : vector<1x16x16xi32> to vector<1x16xi32>
    %30 = vector.shape_cast %29 : vector<1x16xi32> to vector<1x16x1xi32>
    %c15_i32 = arith.constant 15 : i32
    %31 = vector.broadcast %c15_i32 : i32 to vector<1x16x1xi32>
    %32 = arith.andi %30, %31 : vector<1x16x1xi32>
    %33 = vector.broadcast %32 : vector<1x16x1xi32> to vector<1x16x16xi32>
    %34 = arith.cmpi eq, %8, %33 : vector<1x16x16xi32>
    %c2147483647_i32 = arith.constant 2147483647 : i32
    %35 = vector.broadcast %c2147483647_i32 : i32 to vector<1x16x16xi32>
    %36 = arith.select %34, %35, %25 : vector<1x16x16xi1>, vector<1x16x16xi32>
    %37 = arith.addi %32, %28 : vector<1x16x1xi32>
    %cst_9 = arith.constant dense<2147483647> : vector<1x16xi32>
    %38 = vector.multi_reduction <minsi>, %36, %cst_9 [2] : vector<1x16x16xi32> to vector<1x16xi32>
    %39 = vector.shape_cast %38 : vector<1x16xi32> to vector<1x16x1xi32>
    %c15_i32_10 = arith.constant 15 : i32
    %40 = vector.broadcast %c15_i32_10 : i32 to vector<1x16x1xi32>
    %41 = arith.andi %39, %40 : vector<1x16x1xi32>
    %42 = vector.broadcast %41 : vector<1x16x1xi32> to vector<1x16x16xi32>
    %43 = arith.cmpi eq, %8, %42 : vector<1x16x16xi32>
    %c2147483647_i32_11 = arith.constant 2147483647 : i32
    %44 = vector.broadcast %c2147483647_i32_11 : i32 to vector<1x16x16xi32>
    %45 = arith.select %43, %44, %36 : vector<1x16x16xi1>, vector<1x16x16xi32>
    %46 = arith.addi %41, %28 : vector<1x16x1xi32>
    %cst_12 = arith.constant dense<2147483647> : vector<1x16xi32>
    %47 = vector.multi_reduction <minsi>, %45, %cst_12 [2] : vector<1x16x16xi32> to vector<1x16xi32>
    %48 = vector.shape_cast %47 : vector<1x16xi32> to vector<1x16x1xi32>
    %c15_i32_13 = arith.constant 15 : i32
    %49 = vector.broadcast %c15_i32_13 : i32 to vector<1x16x1xi32>
    %50 = arith.andi %48, %49 : vector<1x16x1xi32>
    %51 = vector.broadcast %50 : vector<1x16x1xi32> to vector<1x16x16xi32>
    %52 = arith.cmpi eq, %8, %51 : vector<1x16x16xi32>
    %c2147483647_i32_14 = arith.constant 2147483647 : i32
    %53 = vector.broadcast %c2147483647_i32_14 : i32 to vector<1x16x16xi32>
    %54 = arith.select %52, %53, %45 : vector<1x16x16xi1>, vector<1x16x16xi32>
    %55 = arith.addi %50, %28 : vector<1x16x1xi32>
    %cst_15 = arith.constant dense<2147483647> : vector<1x16xi32>
    %56 = vector.multi_reduction <minsi>, %54, %cst_15 [2] : vector<1x16x16xi32> to vector<1x16xi32>
    %57 = vector.shape_cast %56 : vector<1x16xi32> to vector<1x16x1xi32>
    %c15_i32_16 = arith.constant 15 : i32
    %58 = vector.broadcast %c15_i32_16 : i32 to vector<1x16x1xi32>
    %59 = arith.andi %57, %58 : vector<1x16x1xi32>
    %60 = vector.broadcast %59 : vector<1x16x1xi32> to vector<1x16x16xi32>
    %61 = arith.cmpi eq, %8, %60 : vector<1x16x16xi32>
    %c2147483647_i32_17 = arith.constant 2147483647 : i32
    %62 = vector.broadcast %c2147483647_i32_17 : i32 to vector<1x16x16xi32>
    %63 = arith.select %61, %62, %54 : vector<1x16x16xi1>, vector<1x16x16xi32>
    %64 = arith.addi %59, %28 : vector<1x16x1xi32>
    %cst_18 = arith.constant dense<2147483647> : vector<1x16xi32>
    %65 = vector.multi_reduction <minsi>, %63, %cst_18 [2] : vector<1x16x16xi32> to vector<1x16xi32>
    %66 = vector.shape_cast %65 : vector<1x16xi32> to vector<1x16x1xi32>
    %c15_i32_19 = arith.constant 15 : i32
    %67 = vector.broadcast %c15_i32_19 : i32 to vector<1x16x1xi32>
    %68 = arith.andi %66, %67 : vector<1x16x1xi32>
    %69 = vector.broadcast %68 : vector<1x16x1xi32> to vector<1x16x16xi32>
    %70 = arith.cmpi eq, %8, %69 : vector<1x16x16xi32>
    %c2147483647_i32_20 = arith.constant 2147483647 : i32
    %71 = vector.broadcast %c2147483647_i32_20 : i32 to vector<1x16x16xi32>
    %72 = arith.select %70, %71, %63 : vector<1x16x16xi1>, vector<1x16x16xi32>
    %73 = arith.addi %68, %28 : vector<1x16x1xi32>
    %cst_21 = arith.constant dense<2147483647> : vector<1x16xi32>
    %74 = vector.multi_reduction <minsi>, %72, %cst_21 [2] : vector<1x16x16xi32> to vector<1x16xi32>
    %75 = vector.shape_cast %74 : vector<1x16xi32> to vector<1x16x1xi32>
    %c15_i32_22 = arith.constant 15 : i32
    %76 = vector.broadcast %c15_i32_22 : i32 to vector<1x16x1xi32>
    %77 = arith.andi %75, %76 : vector<1x16x1xi32>
    %78 = vector.broadcast %77 : vector<1x16x1xi32> to vector<1x16x16xi32>
    %79 = arith.cmpi eq, %8, %78 : vector<1x16x16xi32>
    %c2147483647_i32_23 = arith.constant 2147483647 : i32
    %80 = vector.broadcast %c2147483647_i32_23 : i32 to vector<1x16x16xi32>
    %81 = arith.select %79, %80, %72 : vector<1x16x16xi1>, vector<1x16x16xi32>
    %82 = arith.addi %77, %28 : vector<1x16x1xi32>
    %cst_24 = arith.constant dense<2147483647> : vector<1x16xi32>
    %83 = vector.multi_reduction <minsi>, %81, %cst_24 [2] : vector<1x16x16xi32> to vector<1x16xi32>
    %84 = vector.shape_cast %83 : vector<1x16xi32> to vector<1x16x1xi32>
    %c15_i32_25 = arith.constant 15 : i32
    %85 = vector.broadcast %c15_i32_25 : i32 to vector<1x16x1xi32>
    %86 = arith.andi %84, %85 : vector<1x16x1xi32>
    %87 = arith.addi %86, %28 : vector<1x16x1xi32>
    %88 = vector.shape_cast %37 : vector<1x16x1xi32> to vector<1x1x16x1xi32>
    %89 = vector.shape_cast %46 : vector<1x16x1xi32> to vector<1x1x16x1xi32>
    %90 = vector.shape_cast %55 : vector<1x16x1xi32> to vector<1x1x16x1xi32>
    %91 = vector.shape_cast %64 : vector<1x16x1xi32> to vector<1x1x16x1xi32>
    %92 = vector.shape_cast %73 : vector<1x16x1xi32> to vector<1x1x16x1xi32>
    %93 = vector.shape_cast %82 : vector<1x16x1xi32> to vector<1x1x16x1xi32>
    %94 = vector.shape_cast %87 : vector<1x16x1xi32> to vector<1x1x16x1xi32>
    %95 = tpu.concatenate %88, %89, %90, %91, %92, %93, %94 in 0 : vector<1x1x16x1xi32>, vector<1x1x16x1xi32>, vector<1x1x16x1xi32>, vector<1x1x16x1xi32>, vector<1x1x16x1xi32>, vector<1x1x16x1xi32>, vector<1x1x16x1xi32> -> vector<7x1x16x1xi32>
    %96 = tpu.iota {dimensions = array<i32: 3>} : vector<7x1x16x16xi32>
    %97 = vector.broadcast %95 : vector<7x1x16x1xi32> to vector<7x1x16x16xi32>
    %98 = arith.cmpi eq, %96, %97 : vector<7x1x16x16xi32>
    %99 = arith.extui %98 : vector<7x1x16x16xi1> to vector<7x1x16x16xi32>
    %100 = arith.sitofp %99 : vector<7x1x16x16xi32> to vector<7x1x16x16xf32>
    %101 = arith.truncf %100 : vector<7x1x16x16xf32> to vector<7x1x16x16xbf16>
    %102 = vector.shape_cast %101 : vector<7x1x16x16xbf16> to vector<112x16xbf16>
    %103 = vector.shape_cast %0 : vector<1x16x32xf32> to vector<16x32xf32>
    %104 = arith.truncf %103 : vector<16x32xf32> to vector<16x32xbf16>
    %c0_26 = arith.constant 0 : index
    %c0_27 = arith.constant 0 : index
    %105 = vector.load %arg2[%c0_26, %c0_27] : memref<32x64xbf16, #tpu.memory_space<vmem>>, vector<32x64xbf16>
    %cst_28 = arith.constant dense<0.000000e+00> : vector<16x64xf32>
    %106 = tpu.matmul %104, %105, %cst_28 {dimension_numbers = #tpu.dot_dimension_numbers<[1], [0], [0], [1], [0, 0, 1, 1], [], []>} : vector<16x32xbf16>, vector<32x64xbf16>, vector<16x64xf32> -> vector<16x64xf32>
    %c0_29 = arith.constant 0 : index
    %c0_30 = arith.constant 0 : index
    %107 = vector.load %arg4[%c0_29, %c0_30] : memref<1x64xf32, #tpu.memory_space<vmem>>, vector<1x64xf32>
    %108 = vector.broadcast %107 : vector<1x64xf32> to vector<16x64xf32>
    %109 = arith.addf %106, %108 : vector<16x64xf32>
    %c0_31 = arith.constant 0 : index
    %c0_32 = arith.constant 0 : index
    %110 = vector.load %arg3[%c0_31, %c0_32] : memref<32x64xbf16, #tpu.memory_space<vmem>>, vector<32x64xbf16>
    %cst_33 = arith.constant dense<0.000000e+00> : vector<16x64xf32>
    %111 = tpu.matmul %104, %110, %cst_33 {dimension_numbers = #tpu.dot_dimension_numbers<[1], [0], [0], [1], [0, 0, 1, 1], [], []>} : vector<16x32xbf16>, vector<32x64xbf16>, vector<16x64xf32> -> vector<16x64xf32>
    %112 = arith.truncf %111 : vector<16x64xf32> to vector<16x64xbf16>
    %cst_34 = arith.constant dense<0.000000e+00> : vector<112x64xf32>
    %113 = tpu.matmul %102, %112, %cst_34 {dimension_numbers = #tpu.dot_dimension_numbers<[1], [0], [0], [1], [0, 0, 1, 1], [], []>} : vector<112x16xbf16>, vector<16x64xbf16>, vector<112x64xf32> -> vector<112x64xf32>
    %114 = vector.shape_cast %113 : vector<112x64xf32> to vector<7x16x64xf32>
    %115 = vector.shape_cast %109 : vector<16x64xf32> to vector<1x16x64xf32>
    %116 = vector.broadcast %115 : vector<1x16x64xf32> to vector<7x16x64xf32>
    %117 = arith.addf %114, %116 : vector<7x16x64xf32>
    %cst_35 = arith.constant 0.000000e+00 : f32
    %118 = vector.broadcast %cst_35 : f32 to vector<7x16x64xf32>
    %119 = arith.maximumf %117, %118 : vector<7x16x64xf32>
    %120 = vector.shape_cast %119 : vector<7x16x64xf32> to vector<112x64xf32>
    %121 = arith.truncf %120 : vector<112x64xf32> to vector<112x64xbf16>
    %c0_36 = arith.constant 0 : index
    %c0_37 = arith.constant 0 : index
    %122 = vector.load %arg5[%c0_36, %c0_37] : memref<64x64xbf16, #tpu.memory_space<vmem>>, vector<64x64xbf16>
    %cst_38 = arith.constant dense<0.000000e+00> : vector<112x64xf32>
    %123 = tpu.matmul %121, %122, %cst_38 {dimension_numbers = #tpu.dot_dimension_numbers<[1], [0], [0], [1], [0, 0, 1, 1], [], []>} : vector<112x64xbf16>, vector<64x64xbf16>, vector<112x64xf32> -> vector<112x64xf32>
    %c0_39 = arith.constant 0 : index
    %c0_40 = arith.constant 0 : index
    %124 = vector.load %arg6[%c0_39, %c0_40] : memref<1x64xf32, #tpu.memory_space<vmem>>, vector<1x64xf32>
    %125 = vector.broadcast %124 : vector<1x64xf32> to vector<112x64xf32>
    %126 = arith.addf %123, %125 : vector<112x64xf32>
    %cst_41 = arith.constant 0.000000e+00 : f32
    %127 = vector.broadcast %cst_41 : f32 to vector<112x64xf32>
    %128 = arith.maximumf %126, %127 : vector<112x64xf32>
    %129 = arith.truncf %128 : vector<112x64xf32> to vector<112x64xbf16>
    %c0_42 = arith.constant 0 : index
    %c0_43 = arith.constant 0 : index
    %130 = vector.load %arg7[%c0_42, %c0_43] : memref<64x64xbf16, #tpu.memory_space<vmem>>, vector<64x64xbf16>
    %cst_44 = arith.constant dense<0.000000e+00> : vector<112x64xf32>
    %131 = tpu.matmul %129, %130, %cst_44 {dimension_numbers = #tpu.dot_dimension_numbers<[1], [0], [0], [1], [0, 0, 1, 1], [], []>} : vector<112x64xbf16>, vector<64x64xbf16>, vector<112x64xf32> -> vector<112x64xf32>
    %c0_45 = arith.constant 0 : index
    %c0_46 = arith.constant 0 : index
    %132 = vector.load %arg8[%c0_45, %c0_46] : memref<1x64xf32, #tpu.memory_space<vmem>>, vector<1x64xf32>
    %133 = vector.broadcast %132 : vector<1x64xf32> to vector<112x64xf32>
    %134 = arith.addf %131, %133 : vector<112x64xf32>
    %cst_47 = arith.constant 0.000000e+00 : f32
    %135 = vector.broadcast %cst_47 : f32 to vector<112x64xf32>
    %136 = arith.maximumf %134, %135 : vector<112x64xf32>
    %137 = vector.shape_cast %136 : vector<112x64xf32> to vector<7x16x64xf32>
    %cst_48 = arith.constant dense<0.000000e+00> : vector<16x64xf32>
    %138 = vector.multi_reduction <add>, %137, %cst_48 [0] : vector<7x16x64xf32> to vector<16x64xf32>
    %cst_49 = arith.constant 7.000000e+00 : f32
    %139 = vector.broadcast %cst_49 : f32 to vector<16x64xf32>
    %140 = arith.divf %138, %139 : vector<16x64xf32>
    %c0_50 = arith.constant 0 : index
    %c0_51 = arith.constant 0 : index
    %141 = vector.load %arg9[%c0_50, %c0_51] : memref<32x64xbf16, #tpu.memory_space<vmem>>, vector<32x64xbf16>
    %cst_52 = arith.constant dense<0.000000e+00> : vector<16x64xf32>
    %142 = tpu.matmul %104, %141, %cst_52 {dimension_numbers = #tpu.dot_dimension_numbers<[1], [0], [0], [1], [0, 0, 1, 1], [], []>} : vector<16x32xbf16>, vector<32x64xbf16>, vector<16x64xf32> -> vector<16x64xf32>
    %c0_53 = arith.constant 0 : index
    %c0_54 = arith.constant 0 : index
    %143 = vector.load %arg10[%c0_53, %c0_54] : memref<1x64xf32, #tpu.memory_space<vmem>>, vector<1x64xf32>
    %144 = vector.broadcast %143 : vector<1x64xf32> to vector<16x64xf32>
    %145 = arith.addf %142, %144 : vector<16x64xf32>
    %146 = arith.addf %145, %140 : vector<16x64xf32>
    %cst_55 = arith.constant 0.000000e+00 : f32
    %147 = vector.broadcast %cst_55 : f32 to vector<16x64xf32>
    %148 = arith.maximumf %146, %147 : vector<16x64xf32>
    %149 = vector.shape_cast %148 : vector<16x64xf32> to vector<1x16x64xf32>
    %cst_56 = arith.constant dense<0.000000e+00> : vector<1x64xf32>
    %150 = vector.multi_reduction <add>, %149, %cst_56 [1] : vector<1x16x64xf32> to vector<1x64xf32>
    %cst_57 = arith.constant 1.600000e+01 : f32
    %151 = vector.broadcast %cst_57 : f32 to vector<1x64xf32>
    %152 = arith.divf %150, %151 : vector<1x64xf32>
    %153 = arith.truncf %152 : vector<1x64xf32> to vector<1x64xbf16>
    %c0_58 = arith.constant 0 : index
    %c0_59 = arith.constant 0 : index
    %154 = vector.load %arg11[%c0_58, %c0_59] : memref<64x128xbf16, #tpu.memory_space<vmem>>, vector<64x128xbf16>
    %cst_60 = arith.constant dense<0.000000e+00> : vector<1x128xf32>
    %155 = tpu.matmul %153, %154, %cst_60 {dimension_numbers = #tpu.dot_dimension_numbers<[1], [0], [0], [1], [0, 0, 1, 1], [], []>} : vector<1x64xbf16>, vector<64x128xbf16>, vector<1x128xf32> -> vector<1x128xf32>
    %c0_61 = arith.constant 0 : index
    %c0_62 = arith.constant 0 : index
    %156 = vector.load %arg12[%c0_61, %c0_62] : memref<1x128xf32, #tpu.memory_space<vmem>>, vector<1x128xf32>
    %157 = arith.addf %155, %156 : vector<1x128xf32>
    %cst_63 = arith.constant 0.000000e+00 : f32
    %158 = vector.broadcast %cst_63 : f32 to vector<1x128xf32>
    %159 = arith.maximumf %157, %158 : vector<1x128xf32>
    %160 = arith.truncf %159 : vector<1x128xf32> to vector<1x128xbf16>
    %c0_64 = arith.constant 0 : index
    %c0_65 = arith.constant 0 : index
    %161 = vector.load %arg13[%c0_64, %c0_65] : memref<128x5xbf16, #tpu.memory_space<vmem>>, vector<128x5xbf16>
    %cst_66 = arith.constant dense<0.000000e+00> : vector<1x5xf32>
    %162 = tpu.matmul %160, %161, %cst_66 {dimension_numbers = #tpu.dot_dimension_numbers<[1], [0], [0], [1], [0, 0, 1, 1], [], []>} : vector<1x128xbf16>, vector<128x5xbf16>, vector<1x5xf32> -> vector<1x5xf32>
    %c0_67 = arith.constant 0 : index
    %c0_68 = arith.constant 0 : index
    %163 = vector.load %arg14[%c0_67, %c0_68] : memref<1x5xf32, #tpu.memory_space<vmem>>, vector<1x5xf32>
    %164 = arith.addf %162, %163 : vector<1x5xf32>
    %c0_69 = arith.constant 0 : index
    %c0_70 = arith.constant 0 : index
    %c0_71 = arith.constant 0 : index
    %165 = vector.load %arg15[%c0_69, %c0_70, %c0_71] : memref<1x1x5xf32, #tpu.memory_space<vmem>>, vector<1x1x5xf32>
    %166 = vector.shape_cast %165 : vector<1x1x5xf32> to vector<1x5xf32>
    %167 = vector.shape_cast %164 : vector<1x5xf32> to vector<1x1x5xf32>
    tpu.vector_store %arg15[%c0_69, %c0_70, %c0_71], %167 {strides = array<i32>} : memref<1x1x5xf32, #tpu.memory_space<vmem>>, vector<1x1x5xf32>,
    return
  }
  func.func @transform_0(%arg0: i32) -> (i32, i32, i32) {
    %c0_i32 = arith.constant 0 : i32
    %c0_i32_0 = arith.constant 0 : i32
    %c0_i32_1 = arith.constant 0 : i32
    return %arg0, %c0_i32, %c0_i32_0 : i32, i32, i32
  }
  func.func @transform_1(%arg0: i32) -> (i32, i32) {
    %c0_i32 = arith.constant 0 : i32
    %c0_i32_0 = arith.constant 0 : i32
    %c0_i32_1 = arith.constant 0 : i32
    return %c0_i32, %c0_i32_0 : i32, i32
  }
  func.func @transform_2(%arg0: i32) -> (i32, i32) {
    %c0_i32 = arith.constant 0 : i32
    %c0_i32_0 = arith.constant 0 : i32
    %c0_i32_1 = arith.constant 0 : i32
    return %c0_i32, %c0_i32_0 : i32, i32
  }
  func.func @transform_3(%arg0: i32) -> (i32, i32) {
    %c0_i32 = arith.constant 0 : i32
    %c0_i32_0 = arith.constant 0 : i32
    %c0_i32_1 = arith.constant 0 : i32
    return %c0_i32, %c0_i32_0 : i32, i32
  }
  func.func @transform_4(%arg0: i32) -> (i32, i32) {
    %c0_i32 = arith.constant 0 : i32
    %c0_i32_0 = arith.constant 0 : i32
    %c0_i32_1 = arith.constant 0 : i32
    return %c0_i32, %c0_i32_0 : i32, i32
  }
  func.func @transform_5(%arg0: i32) -> (i32, i32) {
    %c0_i32 = arith.constant 0 : i32
    %c0_i32_0 = arith.constant 0 : i32
    %c0_i32_1 = arith.constant 0 : i32
    return %c0_i32, %c0_i32_0 : i32, i32
  }
  func.func @transform_6(%arg0: i32) -> (i32, i32) {
    %c0_i32 = arith.constant 0 : i32
    %c0_i32_0 = arith.constant 0 : i32
    %c0_i32_1 = arith.constant 0 : i32
    return %c0_i32, %c0_i32_0 : i32, i32
  }
  func.func @transform_7(%arg0: i32) -> (i32, i32) {
    %c0_i32 = arith.constant 0 : i32
    %c0_i32_0 = arith.constant 0 : i32
    %c0_i32_1 = arith.constant 0 : i32
    return %c0_i32, %c0_i32_0 : i32, i32
  }
  func.func @transform_8(%arg0: i32) -> (i32, i32) {
    %c0_i32 = arith.constant 0 : i32
    %c0_i32_0 = arith.constant 0 : i32
    %c0_i32_1 = arith.constant 0 : i32
    return %c0_i32, %c0_i32_0 : i32, i32
  }
  func.func @transform_9(%arg0: i32) -> (i32, i32) {
    %c0_i32 = arith.constant 0 : i32
    %c0_i32_0 = arith.constant 0 : i32
    %c0_i32_1 = arith.constant 0 : i32
    return %c0_i32, %c0_i32_0 : i32, i32
  }
  func.func @transform_10(%arg0: i32) -> (i32, i32) {
    %c0_i32 = arith.constant 0 : i32
    %c0_i32_0 = arith.constant 0 : i32
    %c0_i32_1 = arith.constant 0 : i32
    return %c0_i32, %c0_i32_0 : i32, i32
  }
  func.func @transform_11(%arg0: i32) -> (i32, i32) {
    %c0_i32 = arith.constant 0 : i32
    %c0_i32_0 = arith.constant 0 : i32
    %c0_i32_1 = arith.constant 0 : i32
    return %c0_i32, %c0_i32_0 : i32, i32
  }
  func.func @transform_12(%arg0: i32) -> (i32, i32) {
    %c0_i32 = arith.constant 0 : i32
    %c0_i32_0 = arith.constant 0 : i32
    %c0_i32_1 = arith.constant 0 : i32
    return %c0_i32, %c0_i32_0 : i32, i32
  }
  func.func @transform_13(%arg0: i32) -> (i32, i32) {
    %c0_i32 = arith.constant 0 : i32
    %c0_i32_0 = arith.constant 0 : i32
    %c0_i32_1 = arith.constant 0 : i32
    return %c0_i32, %c0_i32_0 : i32, i32
  }
  func.func @transform_14(%arg0: i32) -> (i32, i32, i32) {
    %c0_i32 = arith.constant 0 : i32
    %c0_i32_0 = arith.constant 0 : i32
    %c0_i32_1 = arith.constant 0 : i32
    return %arg0, %c0_i32, %c0_i32_0 : i32, i32, i32
  }
}

module attributes {stable_mosaic.version = 11 : i64} {
  func.func @_edgeconv_kernel(%arg0: i32, %arg1: memref<1x16x4xf32, #tpu.memory_space<vmem>>, %arg2: memref<4x32xbf16, #tpu.memory_space<vmem>>, %arg3: memref<4x32xbf16, #tpu.memory_space<vmem>>, %arg4: memref<1x32xf32, #tpu.memory_space<vmem>>, %arg5: memref<32x32xbf16, #tpu.memory_space<vmem>>, %arg6: memref<1x32xf32, #tpu.memory_space<vmem>>, %arg7: memref<32x32xbf16, #tpu.memory_space<vmem>>, %arg8: memref<1x32xf32, #tpu.memory_space<vmem>>, %arg9: memref<4x32xbf16, #tpu.memory_space<vmem>>, %arg10: memref<1x32xf32, #tpu.memory_space<vmem>>, %arg11: memref<1x16x32xf32, #tpu.memory_space<vmem>>) attributes {dimension_semantics = [#tpu.dimension_semantics<parallel>], iteration_bounds = array<i64: 2>, scalar_prefetch = 0 : i64, scratch_operands = 0 : i64, tpu.core_type = #tpu.core_type<tc>, window_params = [{transform_indices = @transform_0, window_bounds = array<i64: 1, 16, 4>}, {pipeline_mode = #tpu.pipeline_mode<synchronous>, transform_indices = @transform_1, window_bounds = array<i64: 4, 32>}, {pipeline_mode = #tpu.pipeline_mode<synchronous>, transform_indices = @transform_2, window_bounds = array<i64: 4, 32>}, {pipeline_mode = #tpu.pipeline_mode<synchronous>, transform_indices = @transform_3, window_bounds = array<i64: 1, 32>}, {pipeline_mode = #tpu.pipeline_mode<synchronous>, transform_indices = @transform_4, window_bounds = array<i64: 32, 32>}, {pipeline_mode = #tpu.pipeline_mode<synchronous>, transform_indices = @transform_5, window_bounds = array<i64: 1, 32>}, {pipeline_mode = #tpu.pipeline_mode<synchronous>, transform_indices = @transform_6, window_bounds = array<i64: 32, 32>}, {pipeline_mode = #tpu.pipeline_mode<synchronous>, transform_indices = @transform_7, window_bounds = array<i64: 1, 32>}, {pipeline_mode = #tpu.pipeline_mode<synchronous>, transform_indices = @transform_8, window_bounds = array<i64: 4, 32>}, {pipeline_mode = #tpu.pipeline_mode<synchronous>, transform_indices = @transform_9, window_bounds = array<i64: 1, 32>}, {transform_indices = @transform_10, window_bounds = array<i64: 1, 16, 32>}]} {
    %c0 = arith.constant 0 : index
    %c0_0 = arith.constant 0 : index
    %c0_1 = arith.constant 0 : index
    %0 = vector.load %arg1[%c0, %c0_0, %c0_1] : memref<1x16x4xf32, #tpu.memory_space<vmem>>, vector<1x16x4xf32>
    "tpu.trace_start"() <{level = 10 : i32, message = "bic,bjc->bij"}> : () -> ()
    %cst = arith.constant dense<0.000000e+00> : vector<1x16x16xf32>
    %1 = tpu.matmul %0, %0, %cst {dimension_numbers = #tpu.dot_dimension_numbers<[2], [2], [1], [1], [0, 0, 0, 1, 1, 1], [0], [0]>} : vector<1x16x4xf32>, vector<1x16x4xf32>, vector<1x16x16xf32> -> vector<1x16x16xf32>
    "tpu.trace_stop"() : () -> ()
    %2 = arith.mulf %0, %0 : vector<1x16x4xf32>
    %cst_2 = arith.constant dense<0.000000e+00> : vector<1x16xf32>
    %3 = vector.multi_reduction <add>, %2, %cst_2 [2] : vector<1x16x4xf32> to vector<1x16xf32>
    %4 = vector.shape_cast %3 : vector<1x16xf32> to vector<1x16x1xf32>
    %cst_3 = arith.constant dense<0.000000e+00> : vector<1x16xf32>
    %5 = vector.multi_reduction <add>, %2, %cst_3 [2] : vector<1x16x4xf32> to vector<1x16xf32>
    %6 = vector.shape_cast %5 : vector<1x16xf32> to vector<1x1x16xf32>
    %7 = tpu.iota {dimensions = array<i32: 1>} : vector<1x16x16xi32>
    %8 = tpu.iota {dimensions = array<i32: 2>} : vector<1x16x16xi32>
    %9 = vector.broadcast %4 : vector<1x16x1xf32> to vector<1x16x16xf32>
    %10 = vector.broadcast %6 : vector<1x1x16xf32> to vector<1x16x16xf32>
    %11 = arith.addf %9, %10 : vector<1x16x16xf32>
    %cst_4 = arith.constant 2.000000e+00 : f32
    %12 = vector.broadcast %cst_4 : f32 to vector<1x16x16xf32>
    %13 = arith.mulf %12, %1 : vector<1x16x16xf32>
    %14 = arith.subf %11, %13 : vector<1x16x16xf32>
    %cst_5 = arith.constant 0.000000e+00 : f32
    %15 = vector.broadcast %cst_5 : f32 to vector<1x16x16xf32>
    %16 = arith.maximumf %14, %15 : vector<1x16x16xf32>
    %17 = arith.cmpi eq, %7, %8 : vector<1x16x16xi32>
    %cst_6 = arith.constant 1.000000e+30 : f32
    %18 = vector.broadcast %cst_6 : f32 to vector<1x16x16xf32>
    %19 = arith.select %17, %18, %16 : vector<1x16x16xi1>, vector<1x16x16xf32>
    %20 = tpu.bitcast %19 : vector<1x16x16xf32> -> vector<1x16x16xi32>
    %c4_i32 = arith.constant 4 : i32
    %21 = vector.broadcast %c4_i32 : i32 to vector<1x16x16xi32>
    %22 = arith.shrsi %20, %21 : vector<1x16x16xi32>
    %c4_i32_7 = arith.constant 4 : i32
    %23 = vector.broadcast %c4_i32_7 : i32 to vector<1x16x16xi32>
    %24 = arith.shli %22, %23 : vector<1x16x16xi32>
    %25 = arith.ori %24, %8 : vector<1x16x16xi32>
    %26 = tpu.iota {dimensions = array<i32: 0>} : vector<1x16x1xi32>
    %c16_i32 = arith.constant 16 : i32
    %27 = vector.broadcast %c16_i32 : i32 to vector<1x16x1xi32>
    %28 = arith.muli %26, %27 : vector<1x16x1xi32>
    %cst_8 = arith.constant dense<2147483647> : vector<1x16xi32>
    %29 = vector.multi_reduction <minsi>, %25, %cst_8 [2] : vector<1x16x16xi32> to vector<1x16xi32>
    %30 = vector.shape_cast %29 : vector<1x16xi32> to vector<1x16x1xi32>
    %c15_i32 = arith.constant 15 : i32
    %31 = vector.broadcast %c15_i32 : i32 to vector<1x16x1xi32>
    %32 = arith.andi %30, %31 : vector<1x16x1xi32>
    %33 = vector.broadcast %32 : vector<1x16x1xi32> to vector<1x16x16xi32>
    %34 = arith.cmpi eq, %8, %33 : vector<1x16x16xi32>
    %c2147483647_i32 = arith.constant 2147483647 : i32
    %35 = vector.broadcast %c2147483647_i32 : i32 to vector<1x16x16xi32>
    %36 = arith.select %34, %35, %25 : vector<1x16x16xi1>, vector<1x16x16xi32>
    %37 = arith.addi %32, %28 : vector<1x16x1xi32>
    %cst_9 = arith.constant dense<2147483647> : vector<1x16xi32>
    %38 = vector.multi_reduction <minsi>, %36, %cst_9 [2] : vector<1x16x16xi32> to vector<1x16xi32>
    %39 = vector.shape_cast %38 : vector<1x16xi32> to vector<1x16x1xi32>
    %c15_i32_10 = arith.constant 15 : i32
    %40 = vector.broadcast %c15_i32_10 : i32 to vector<1x16x1xi32>
    %41 = arith.andi %39, %40 : vector<1x16x1xi32>
    %42 = vector.broadcast %41 : vector<1x16x1xi32> to vector<1x16x16xi32>
    %43 = arith.cmpi eq, %8, %42 : vector<1x16x16xi32>
    %c2147483647_i32_11 = arith.constant 2147483647 : i32
    %44 = vector.broadcast %c2147483647_i32_11 : i32 to vector<1x16x16xi32>
    %45 = arith.select %43, %44, %36 : vector<1x16x16xi1>, vector<1x16x16xi32>
    %46 = arith.addi %41, %28 : vector<1x16x1xi32>
    %cst_12 = arith.constant dense<2147483647> : vector<1x16xi32>
    %47 = vector.multi_reduction <minsi>, %45, %cst_12 [2] : vector<1x16x16xi32> to vector<1x16xi32>
    %48 = vector.shape_cast %47 : vector<1x16xi32> to vector<1x16x1xi32>
    %c15_i32_13 = arith.constant 15 : i32
    %49 = vector.broadcast %c15_i32_13 : i32 to vector<1x16x1xi32>
    %50 = arith.andi %48, %49 : vector<1x16x1xi32>
    %51 = vector.broadcast %50 : vector<1x16x1xi32> to vector<1x16x16xi32>
    %52 = arith.cmpi eq, %8, %51 : vector<1x16x16xi32>
    %c2147483647_i32_14 = arith.constant 2147483647 : i32
    %53 = vector.broadcast %c2147483647_i32_14 : i32 to vector<1x16x16xi32>
    %54 = arith.select %52, %53, %45 : vector<1x16x16xi1>, vector<1x16x16xi32>
    %55 = arith.addi %50, %28 : vector<1x16x1xi32>
    %cst_15 = arith.constant dense<2147483647> : vector<1x16xi32>
    %56 = vector.multi_reduction <minsi>, %54, %cst_15 [2] : vector<1x16x16xi32> to vector<1x16xi32>
    %57 = vector.shape_cast %56 : vector<1x16xi32> to vector<1x16x1xi32>
    %c15_i32_16 = arith.constant 15 : i32
    %58 = vector.broadcast %c15_i32_16 : i32 to vector<1x16x1xi32>
    %59 = arith.andi %57, %58 : vector<1x16x1xi32>
    %60 = vector.broadcast %59 : vector<1x16x1xi32> to vector<1x16x16xi32>
    %61 = arith.cmpi eq, %8, %60 : vector<1x16x16xi32>
    %c2147483647_i32_17 = arith.constant 2147483647 : i32
    %62 = vector.broadcast %c2147483647_i32_17 : i32 to vector<1x16x16xi32>
    %63 = arith.select %61, %62, %54 : vector<1x16x16xi1>, vector<1x16x16xi32>
    %64 = arith.addi %59, %28 : vector<1x16x1xi32>
    %cst_18 = arith.constant dense<2147483647> : vector<1x16xi32>
    %65 = vector.multi_reduction <minsi>, %63, %cst_18 [2] : vector<1x16x16xi32> to vector<1x16xi32>
    %66 = vector.shape_cast %65 : vector<1x16xi32> to vector<1x16x1xi32>
    %c15_i32_19 = arith.constant 15 : i32
    %67 = vector.broadcast %c15_i32_19 : i32 to vector<1x16x1xi32>
    %68 = arith.andi %66, %67 : vector<1x16x1xi32>
    %69 = vector.broadcast %68 : vector<1x16x1xi32> to vector<1x16x16xi32>
    %70 = arith.cmpi eq, %8, %69 : vector<1x16x16xi32>
    %c2147483647_i32_20 = arith.constant 2147483647 : i32
    %71 = vector.broadcast %c2147483647_i32_20 : i32 to vector<1x16x16xi32>
    %72 = arith.select %70, %71, %63 : vector<1x16x16xi1>, vector<1x16x16xi32>
    %73 = arith.addi %68, %28 : vector<1x16x1xi32>
    %cst_21 = arith.constant dense<2147483647> : vector<1x16xi32>
    %74 = vector.multi_reduction <minsi>, %72, %cst_21 [2] : vector<1x16x16xi32> to vector<1x16xi32>
    %75 = vector.shape_cast %74 : vector<1x16xi32> to vector<1x16x1xi32>
    %c15_i32_22 = arith.constant 15 : i32
    %76 = vector.broadcast %c15_i32_22 : i32 to vector<1x16x1xi32>
    %77 = arith.andi %75, %76 : vector<1x16x1xi32>
    %78 = vector.broadcast %77 : vector<1x16x1xi32> to vector<1x16x16xi32>
    %79 = arith.cmpi eq, %8, %78 : vector<1x16x16xi32>
    %c2147483647_i32_23 = arith.constant 2147483647 : i32
    %80 = vector.broadcast %c2147483647_i32_23 : i32 to vector<1x16x16xi32>
    %81 = arith.select %79, %80, %72 : vector<1x16x16xi1>, vector<1x16x16xi32>
    %82 = arith.addi %77, %28 : vector<1x16x1xi32>
    %cst_24 = arith.constant dense<2147483647> : vector<1x16xi32>
    %83 = vector.multi_reduction <minsi>, %81, %cst_24 [2] : vector<1x16x16xi32> to vector<1x16xi32>
    %84 = vector.shape_cast %83 : vector<1x16xi32> to vector<1x16x1xi32>
    %c15_i32_25 = arith.constant 15 : i32
    %85 = vector.broadcast %c15_i32_25 : i32 to vector<1x16x1xi32>
    %86 = arith.andi %84, %85 : vector<1x16x1xi32>
    %87 = arith.addi %86, %28 : vector<1x16x1xi32>
    %88 = vector.shape_cast %37 : vector<1x16x1xi32> to vector<1x1x16x1xi32>
    %89 = vector.shape_cast %46 : vector<1x16x1xi32> to vector<1x1x16x1xi32>
    %90 = vector.shape_cast %55 : vector<1x16x1xi32> to vector<1x1x16x1xi32>
    %91 = vector.shape_cast %64 : vector<1x16x1xi32> to vector<1x1x16x1xi32>
    %92 = vector.shape_cast %73 : vector<1x16x1xi32> to vector<1x1x16x1xi32>
    %93 = vector.shape_cast %82 : vector<1x16x1xi32> to vector<1x1x16x1xi32>
    %94 = vector.shape_cast %87 : vector<1x16x1xi32> to vector<1x1x16x1xi32>
    %95 = tpu.concatenate %88, %89, %90, %91, %92, %93, %94 in 0 : vector<1x1x16x1xi32>, vector<1x1x16x1xi32>, vector<1x1x16x1xi32>, vector<1x1x16x1xi32>, vector<1x1x16x1xi32>, vector<1x1x16x1xi32>, vector<1x1x16x1xi32> -> vector<7x1x16x1xi32>
    %96 = tpu.iota {dimensions = array<i32: 3>} : vector<7x1x16x16xi32>
    %97 = vector.broadcast %95 : vector<7x1x16x1xi32> to vector<7x1x16x16xi32>
    %98 = arith.cmpi eq, %96, %97 : vector<7x1x16x16xi32>
    %99 = arith.extui %98 : vector<7x1x16x16xi1> to vector<7x1x16x16xi32>
    %100 = arith.sitofp %99 : vector<7x1x16x16xi32> to vector<7x1x16x16xf32>
    %101 = arith.truncf %100 : vector<7x1x16x16xf32> to vector<7x1x16x16xbf16>
    %102 = vector.shape_cast %101 : vector<7x1x16x16xbf16> to vector<112x16xbf16>
    %103 = vector.shape_cast %0 : vector<1x16x4xf32> to vector<16x4xf32>
    %104 = arith.truncf %103 : vector<16x4xf32> to vector<16x4xbf16>
    %c0_26 = arith.constant 0 : index
    %c0_27 = arith.constant 0 : index
    %105 = vector.load %arg2[%c0_26, %c0_27] : memref<4x32xbf16, #tpu.memory_space<vmem>>, vector<4x32xbf16>
    %cst_28 = arith.constant dense<0.000000e+00> : vector<16x32xf32>
    %106 = tpu.matmul %104, %105, %cst_28 {dimension_numbers = #tpu.dot_dimension_numbers<[1], [0], [0], [1], [0, 0, 1, 1], [], []>} : vector<16x4xbf16>, vector<4x32xbf16>, vector<16x32xf32> -> vector<16x32xf32>
    %c0_29 = arith.constant 0 : index
    %c0_30 = arith.constant 0 : index
    %107 = vector.load %arg4[%c0_29, %c0_30] : memref<1x32xf32, #tpu.memory_space<vmem>>, vector<1x32xf32>
    %108 = vector.broadcast %107 : vector<1x32xf32> to vector<16x32xf32>
    %109 = arith.addf %106, %108 : vector<16x32xf32>
    %c0_31 = arith.constant 0 : index
    %c0_32 = arith.constant 0 : index
    %110 = vector.load %arg3[%c0_31, %c0_32] : memref<4x32xbf16, #tpu.memory_space<vmem>>, vector<4x32xbf16>
    %cst_33 = arith.constant dense<0.000000e+00> : vector<16x32xf32>
    %111 = tpu.matmul %104, %110, %cst_33 {dimension_numbers = #tpu.dot_dimension_numbers<[1], [0], [0], [1], [0, 0, 1, 1], [], []>} : vector<16x4xbf16>, vector<4x32xbf16>, vector<16x32xf32> -> vector<16x32xf32>
    %112 = arith.truncf %111 : vector<16x32xf32> to vector<16x32xbf16>
    %cst_34 = arith.constant dense<0.000000e+00> : vector<112x32xf32>
    %113 = tpu.matmul %102, %112, %cst_34 {dimension_numbers = #tpu.dot_dimension_numbers<[1], [0], [0], [1], [0, 0, 1, 1], [], []>} : vector<112x16xbf16>, vector<16x32xbf16>, vector<112x32xf32> -> vector<112x32xf32>
    %114 = vector.shape_cast %113 : vector<112x32xf32> to vector<7x16x32xf32>
    %115 = vector.shape_cast %109 : vector<16x32xf32> to vector<1x16x32xf32>
    %116 = vector.broadcast %115 : vector<1x16x32xf32> to vector<7x16x32xf32>
    %117 = arith.addf %114, %116 : vector<7x16x32xf32>
    %cst_35 = arith.constant 0.000000e+00 : f32
    %118 = vector.broadcast %cst_35 : f32 to vector<7x16x32xf32>
    %119 = arith.maximumf %117, %118 : vector<7x16x32xf32>
    %120 = vector.shape_cast %119 : vector<7x16x32xf32> to vector<112x32xf32>
    %121 = arith.truncf %120 : vector<112x32xf32> to vector<112x32xbf16>
    %c0_36 = arith.constant 0 : index
    %c0_37 = arith.constant 0 : index
    %122 = vector.load %arg5[%c0_36, %c0_37] : memref<32x32xbf16, #tpu.memory_space<vmem>>, vector<32x32xbf16>
    %cst_38 = arith.constant dense<0.000000e+00> : vector<112x32xf32>
    %123 = tpu.matmul %121, %122, %cst_38 {dimension_numbers = #tpu.dot_dimension_numbers<[1], [0], [0], [1], [0, 0, 1, 1], [], []>} : vector<112x32xbf16>, vector<32x32xbf16>, vector<112x32xf32> -> vector<112x32xf32>
    %c0_39 = arith.constant 0 : index
    %c0_40 = arith.constant 0 : index
    %124 = vector.load %arg6[%c0_39, %c0_40] : memref<1x32xf32, #tpu.memory_space<vmem>>, vector<1x32xf32>
    %125 = vector.broadcast %124 : vector<1x32xf32> to vector<112x32xf32>
    %126 = arith.addf %123, %125 : vector<112x32xf32>
    %cst_41 = arith.constant 0.000000e+00 : f32
    %127 = vector.broadcast %cst_41 : f32 to vector<112x32xf32>
    %128 = arith.maximumf %126, %127 : vector<112x32xf32>
    %129 = arith.truncf %128 : vector<112x32xf32> to vector<112x32xbf16>
    %c0_42 = arith.constant 0 : index
    %c0_43 = arith.constant 0 : index
    %130 = vector.load %arg7[%c0_42, %c0_43] : memref<32x32xbf16, #tpu.memory_space<vmem>>, vector<32x32xbf16>
    %cst_44 = arith.constant dense<0.000000e+00> : vector<112x32xf32>
    %131 = tpu.matmul %129, %130, %cst_44 {dimension_numbers = #tpu.dot_dimension_numbers<[1], [0], [0], [1], [0, 0, 1, 1], [], []>} : vector<112x32xbf16>, vector<32x32xbf16>, vector<112x32xf32> -> vector<112x32xf32>
    %c0_45 = arith.constant 0 : index
    %c0_46 = arith.constant 0 : index
    %132 = vector.load %arg8[%c0_45, %c0_46] : memref<1x32xf32, #tpu.memory_space<vmem>>, vector<1x32xf32>
    %133 = vector.broadcast %132 : vector<1x32xf32> to vector<112x32xf32>
    %134 = arith.addf %131, %133 : vector<112x32xf32>
    %cst_47 = arith.constant 0.000000e+00 : f32
    %135 = vector.broadcast %cst_47 : f32 to vector<112x32xf32>
    %136 = arith.maximumf %134, %135 : vector<112x32xf32>
    %137 = vector.shape_cast %136 : vector<112x32xf32> to vector<7x16x32xf32>
    %cst_48 = arith.constant dense<0.000000e+00> : vector<16x32xf32>
    %138 = vector.multi_reduction <add>, %137, %cst_48 [0] : vector<7x16x32xf32> to vector<16x32xf32>
    %cst_49 = arith.constant 7.000000e+00 : f32
    %139 = vector.broadcast %cst_49 : f32 to vector<16x32xf32>
    %140 = arith.divf %138, %139 : vector<16x32xf32>
    %c0_50 = arith.constant 0 : index
    %c0_51 = arith.constant 0 : index
    %141 = vector.load %arg9[%c0_50, %c0_51] : memref<4x32xbf16, #tpu.memory_space<vmem>>, vector<4x32xbf16>
    %cst_52 = arith.constant dense<0.000000e+00> : vector<16x32xf32>
    %142 = tpu.matmul %104, %141, %cst_52 {dimension_numbers = #tpu.dot_dimension_numbers<[1], [0], [0], [1], [0, 0, 1, 1], [], []>} : vector<16x4xbf16>, vector<4x32xbf16>, vector<16x32xf32> -> vector<16x32xf32>
    %c0_53 = arith.constant 0 : index
    %c0_54 = arith.constant 0 : index
    %143 = vector.load %arg10[%c0_53, %c0_54] : memref<1x32xf32, #tpu.memory_space<vmem>>, vector<1x32xf32>
    %144 = vector.broadcast %143 : vector<1x32xf32> to vector<16x32xf32>
    %145 = arith.addf %142, %144 : vector<16x32xf32>
    %146 = arith.addf %145, %140 : vector<16x32xf32>
    %cst_55 = arith.constant 0.000000e+00 : f32
    %147 = vector.broadcast %cst_55 : f32 to vector<16x32xf32>
    %148 = arith.maximumf %146, %147 : vector<16x32xf32>
    %149 = vector.shape_cast %148 : vector<16x32xf32> to vector<1x16x32xf32>
    %c0_56 = arith.constant 0 : index
    %c0_57 = arith.constant 0 : index
    %c0_58 = arith.constant 0 : index
    %150 = vector.load %arg11[%c0_56, %c0_57, %c0_58] : memref<1x16x32xf32, #tpu.memory_space<vmem>>, vector<1x16x32xf32>
    tpu.vector_store %arg11[%c0_56, %c0_57, %c0_58], %149 {strides = array<i32>} : memref<1x16x32xf32, #tpu.memory_space<vmem>>, vector<1x16x32xf32>,
    return
  }
  func.func @transform_0(%arg0: i32) -> (i32, i32, i32) {
    %c0_i32 = arith.constant 0 : i32
    %c0_i32_0 = arith.constant 0 : i32
    %c0_i32_1 = arith.constant 0 : i32
    return %arg0, %c0_i32, %c0_i32_0 : i32, i32, i32
  }
  func.func @transform_1(%arg0: i32) -> (i32, i32) {
    %c0_i32 = arith.constant 0 : i32
    %c0_i32_0 = arith.constant 0 : i32
    %c0_i32_1 = arith.constant 0 : i32
    return %c0_i32, %c0_i32_0 : i32, i32
  }
  func.func @transform_2(%arg0: i32) -> (i32, i32) {
    %c0_i32 = arith.constant 0 : i32
    %c0_i32_0 = arith.constant 0 : i32
    %c0_i32_1 = arith.constant 0 : i32
    return %c0_i32, %c0_i32_0 : i32, i32
  }
  func.func @transform_3(%arg0: i32) -> (i32, i32) {
    %c0_i32 = arith.constant 0 : i32
    %c0_i32_0 = arith.constant 0 : i32
    %c0_i32_1 = arith.constant 0 : i32
    return %c0_i32, %c0_i32_0 : i32, i32
  }
  func.func @transform_4(%arg0: i32) -> (i32, i32) {
    %c0_i32 = arith.constant 0 : i32
    %c0_i32_0 = arith.constant 0 : i32
    %c0_i32_1 = arith.constant 0 : i32
    return %c0_i32, %c0_i32_0 : i32, i32
  }
  func.func @transform_5(%arg0: i32) -> (i32, i32) {
    %c0_i32 = arith.constant 0 : i32
    %c0_i32_0 = arith.constant 0 : i32
    %c0_i32_1 = arith.constant 0 : i32
    return %c0_i32, %c0_i32_0 : i32, i32
  }
  func.func @transform_6(%arg0: i32) -> (i32, i32) {
    %c0_i32 = arith.constant 0 : i32
    %c0_i32_0 = arith.constant 0 : i32
    %c0_i32_1 = arith.constant 0 : i32
    return %c0_i32, %c0_i32_0 : i32, i32
  }
  func.func @transform_7(%arg0: i32) -> (i32, i32) {
    %c0_i32 = arith.constant 0 : i32
    %c0_i32_0 = arith.constant 0 : i32
    %c0_i32_1 = arith.constant 0 : i32
    return %c0_i32, %c0_i32_0 : i32, i32
  }
  func.func @transform_8(%arg0: i32) -> (i32, i32) {
    %c0_i32 = arith.constant 0 : i32
    %c0_i32_0 = arith.constant 0 : i32
    %c0_i32_1 = arith.constant 0 : i32
    return %c0_i32, %c0_i32_0 : i32, i32
  }
  func.func @transform_9(%arg0: i32) -> (i32, i32) {
    %c0_i32 = arith.constant 0 : i32
    %c0_i32_0 = arith.constant 0 : i32
    %c0_i32_1 = arith.constant 0 : i32
    return %c0_i32, %c0_i32_0 : i32, i32
  }
  func.func @transform_10(%arg0: i32) -> (i32, i32, i32) {
    %c0_i32 = arith.constant 0 : i32
    %c0_i32_0 = arith.constant 0 : i32
    %c0_i32_1 = arith.constant 0 : i32
    return %arg0, %c0_i32, %c0_i32_0 : i32, i32, i32
  }
}

</mosaic_0001>

<bundles_post_ra>
// kernel: particlenet_forward.2
= control target key start
LH: loop header
LB: loop body
LE: loop exit
PB: predicated region body
PF: predicated region fallthrough
CT: control target
= control target key end

     0   :  { %s1845_s13 = smov 0   ;;  %s2203_s0 = inlined_call_operand.vmem [shape: f32[2,16,4], index: 0, kind: input, shape index: {}]   ;;  %s2204_s1 = inlined_call_operand.vmem [shape: bf16[4,32], index: 1, kind: input, shape index: {}]   ;;  %s2205_s2 = inlined_call_operand.vmem [shape: bf16[4,32], index: 2, kind: input, shape index: {}]   ;;  %s2206_s3 = inlined_call_operand.vmem [shape: f32[1,32], index: 3, kind: input, shape index: {}]   ;;  %s2207_s4 = inlined_call_operand.vmem [shape: bf16[32,32], index: 4, kind: input, shape index: {}]   ;;  %s2208_s5 = inlined_call_operand.vmem [shape: f32[1,32], index: 5, kind: input, shape index: {}]   ;;  %s2209_s6 = inlined_call_operand.vmem [shape: bf16[32,32], index: 6, kind: input, shape index: {}]   ;;  %s2210_s7 = inlined_call_operand.vmem [shape: f32[1,32], index: 7, kind: input, shape index: {}]   ;;  %s2211_s8 = inlined_call_operand.vmem [shape: bf16[4,32], index: 8, kind: input, shape index: {}]   ;;  %s2212_s9 = inlined_call_operand.vmem [shape: f32[1,32], index: 9, kind: input, shape index: {}]   ;;  %s2213_s10 = inlined_call_operand.vmem [shape: f32[2,16,32], index: 10, kind: output, shape index: {}]  }
   0x1 LB: > { %s1536_s14 = sadd.s32 4294967295, %s1785_s13   ;;  %p1540_p0 = scmp.ge.s32.totalorder %s1785_s13, 1  ;;  %s1785_s13 = sphi %s1845_s13, %s20_s13  }
   0x2   : > { %p312_p1 = scmp.lt.s32.totalorder %s1785_s13, 3 }
   0x4   : > { %p313_p2 = pnand %p1540_p0, %p312_p1 }
   0x5   : > { %p350_p3 = scmp.lt.s32.totalorder (!%p313_p2), %s1536_s14, 1  ;;  %vm363_vm0 = vcmask (!%p313_p2), 31744   ;;  %v453_v7 = vlaneseq (!%p313_p2)  ;;  %vm469_vm2 = vcmask (!%p313_p2), 130112   ;;  %vm504_vm5 = vcmask (!%p313_p2), 130048  }
   0x6   : > { %316 = sbr.rel (%p313_p2) target bundleno = 3148 (0xc4c), region = 60  ;;  %vm1755_vm1 = vmpackc.low (!%p313_p2), %vm363_vm0, %vm363_vm0 }
   0x7   : > { %v1871_v8 = vand.u32 (!%p313_p2), 127, %v453_v7  ;;  %v454_v10 = vshrl.u32 (!%p313_p2), %v453_v7, 7 }
   0x9   : > { %v464_v11 = vadd.s32 (!%p313_p2), 4294967288, %v1871_v8  ;;  %v462_v12 = vsub.s32 (!%p313_p2), %v1871_v8, %v454_v10  ;;  %v455_v19 = vadd.s32 (!%p313_p2), 8, %v454_v10  ;;  %vm492_vm4 = vcmp.eq.s32.totalorder (!%p313_p2), %v454_v10, %v1871_v8 }
   0xb   : > { %v467_v13 = vsub.s32 (!%p313_p2), %v464_v11, %v454_v10  ;;  %vm493_vm3 = vcmp.eq.s32.totalorder (!%p313_p2), %v455_v19, %v1871_v8 }
   0xd   : > { %s2215_s14 = smov (!%p350_p3, %s1536_s14), 1 }
   0xe   : > { %s1597_s15 = sshll.u32 %s2215_s14, 4 }
   0xf   : > { %s354_s18 = scalar_lea.vmem %s2203_s0, %s1597_s15  ;;  %s359_s26 = scalar_lea.vmem %s2213_s10, %s1597_s15 }
  0x10   : > { %v361_v0 = vld [vmem:[%s354_s18] sm:$0xff]  ;;  %v362_v1 = vld [vmem:[%s354_s18 + $0x8] sm:$0xff] }
  0x11   : > { %v1863_v2 = vpack.c.bf16 %v362_v1, %v361_v0  ;;  %1639 = vmatprep.mubr.msk.f32.mxu0 %vm363_vm0, %v361_v0  ;;  %v445_v3 = vmul.f32 %v361_v0, %v361_v0  ;;  %v446_v4 = vmul.f32 %v362_v1, %v362_v1 }
  0x13   : > { %1756 = vmatprep.subr.msk.bf16.mxu0 %vm1755_vm1, %v1863_v2  ;;  %v447_v5 = vsel %vm363_vm0, %v445_v3, 0.0  ;;  %v450_v6 = vsel %vm363_vm0, %v446_v4, 0.0 }
  0x14   : > { %1759 = vmatpush3.bf16.xpose.msk.msra.mxu0 %vm1755_vm1, %v1863_v2  ;;  %448 = vadd.xlane.f32.xlu0 %v447_v5 }
  0x18   : > { %451 = vadd.xlane.f32.xlu0 %v450_v6 }
  0x1b   : > { %1640 = vmatmul.mubr.msk.f32.vlgmr.msra.gmra.mrb[0].mxu0 %vm363_vm0, %v362_v1 }
  0xa1   : > { %v449_v9 = vpop.xlane.xlu0 %448 }
  0xa2   : > { %v463_v15 = vrot.slane %v449_v9, %v462_v12 }
  0xa5   : > { %v452_v14 = vpop.xlane.xlu0 %451 }
  0xa6   : > { %v468_v16 = vrot.slane %v452_v14, %v467_v13 }
  0xa8   : > { %v470_v17 = vsel %vm469_vm2, %v468_v16, %v463_v15 }
  0xa9   : > { %v485_v20 = vadd.f32 %v470_v17, %v452_v14  ;;  %v484_v23 = vadd.f32 %v470_v17, %v449_v9 }
  0xee   : > { %v1641_v18 = vpop.f32.mrb[0].mxu0 }
  0xef   : > { %v487_v21 = vmul.f32 2.0, %v1641_v18  ;;  %v436_v22 = vpop.f32.mrb[1].mxu0 }
  0xf0   : > { %v486_v24 = vmul.f32 2.0, %v436_v22 }
  0xf1   : > { %v489_v25 = vsub.f32 %v485_v20, %v487_v21 }
  0xf2   : > { %v488_v26 = vsub.f32 %v484_v23, %v486_v24 }
  0xf3   : > { %v491_v27 = vmax.f32 %v489_v25, 0.0 }
  0xf4   : > { %v490_v28 = vmax.f32 %v488_v26, 0.0 }
  0xf5   : > { %v495_v29 = vsel %vm493_vm3, 1e+30, %v491_v27 }
  0xf6   : > { %v499_v30 = vshra.s32 %v495_v29, 4  ;;  %v494_v31 = vsel %vm492_vm4, 1e+30, %v490_v28 }
  0xf7   : > { %v498_v32 = vshra.s32 %v494_v31, 4 }
  0xf8   : > { %v501_v33 = vshll.u32 %v499_v30, 4 }
  0xf9   : > { %v500_v34 = vshll.u32 %v498_v32, 4 }
  0xfa   : > { %v503_v35 = vor.u32 %v501_v33, %v1871_v8 }
  0xfb   : > { %v502_v36 = vor.u32 %v500_v34, %v1871_v8 }
  0xfc   : > { %v520_v38 = vsel %vm504_vm5, %v503_v35, 2147483647 }
  0xfd   : > { %v505_v37 = vsel %vm504_vm5, %v502_v36, 2147483647  ;;  %v522_v41 = vshra.s32 %v520_v38, 16  ;;  %v521_v46 = vand.u32 65535, %v520_v38 }
  0xfe   : > { %v507_v39 = vshra.s32 %v505_v37, 16  ;;  %v506_v43 = vand.u32 65535, %v505_v37 }
  0xff   : > { %v524_v42 = vcvt.s32.f32 %v522_v41  ;;  %v523_v49 = vcvt.s32.f32 %v521_v46 }
 0x100   : > { %v509_v40 = vcvt.s32.f32 %v507_v39  ;;  %v508_v45 = vcvt.s32.f32 %v506_v43 }
 0x102   : > { %510 = vmin.xlane.f32.xlu1 %v509_v40 }
 0x106   : > { %525 = vmin.xlane.f32.xlu1 %v524_v42 }
 0x18f   : > { %v511_v44 = vpop.xlane.xlu1 %510 }
 0x190   : > { %vm512_vm6 = vcmp.eq.f32.partialorder %v509_v40, %v511_v44  ;;  %v517_v51 = vcvt.f32.s32 %v511_v44 }
 0x191   : > { %v513_v47 = vsel %vm512_vm6, %v508_v45, inf }
 0x192   : > { %514 = vmin.xlane.f32.xlu0 %v513_v47  ;;  %v518_v53 = vshll.u32 %v517_v51, 16 }
 0x193   : > { %v526_v48 = vpop.xlane.xlu1 %525 }
 0x194   : > { %vm527_vm7 = vcmp.eq.f32.partialorder %v524_v42, %v526_v48  ;;  %v532_v54 = vcvt.f32.s32 %v526_v48 }
 0x195   : > { %v528_v50 = vsel %vm527_vm7, %v523_v49, inf }
 0x196   : > { %529 = vmin.xlane.f32.xlu1 %v528_v50  ;;  %v533_v58 = vshll.u32 %v532_v54, 16 }
 0x21f   : > { %v515_v52 = vpop.xlane.xlu0 %514 }
 0x220   : > { %v516_v55 = vcvt.f32.s32 %v515_v52 }
 0x222   : > { %v1881_v56 = vadd.s32 %v518_v53, %v516_v55 }
 0x223   : > { %v530_v57 = vpop.xlane.xlu1 %529 }
 0x224   : > { %v535_v59 = vand.u32 15, %v1881_v56  ;;  %v531_v60 = vcvt.f32.s32 %v530_v57 }
 0x226   : > { %v1884_v61 = vadd.s32 %v533_v58, %v531_v60  ;;  %vm537_vm8 = vcmp.eq.s32.totalorder %v1871_v8, %v535_v59 }
 0x227   : > { %v539_v62 = vsel %vm537_vm8, 2147483647, %v502_v36 }
 0x228   : > { %v536_v63 = vand.u32 15, %v1884_v61  ;;  %v541_v0 = vsel %vm504_vm5, %v539_v62, 2147483647 }
 0x229   : > { %v543_v1 = vshra.s32 %v541_v0, 16  ;;  %v542_v9 = vand.u32 65535, %v541_v0 }
 0x22a   : > { %vm538_vm9 = vcmp.eq.s32.totalorder %v1871_v8, %v536_v63 }
 0x22b   : > { %v545_v3 = vcvt.s32.f32 %v543_v1  ;;  %v540_v4 = vsel %vm538_vm9, 2147483647, %v503_v35  ;;  %v544_v11 = vcvt.s32.f32 %v542_v9 }
 0x22c   : > { %v556_v5 = vsel %vm504_vm5, %v540_v4, 2147483647 }
 0x22d   : > { %546 = vmin.xlane.f32.xlu0 %v545_v3  ;;  %v558_v6 = vshra.s32 %v556_v5, 16  ;;  %v557_v12 = vand.u32 65535, %v556_v5 }
 0x22f   : > { %v560_v7 = vcvt.s32.f32 %v558_v6  ;;  %v559_v15 = vcvt.s32.f32 %v557_v12 }
 0x231   : > { %561 = vmin.xlane.f32.xlu1 %v560_v7 }
 0x2ba   : > { %v547_v10 = vpop.xlane.xlu0 %546 }
 0x2bb   : > { %vm548_vm10 = vcmp.eq.f32.partialorder %v545_v3, %v547_v10  ;;  %v553_v17 = vcvt.f32.s32 %v547_v10 }
 0x2bc   : > { %v549_v13 = vsel %vm548_vm10, %v544_v11, inf }
 0x2bd   : > { %550 = vmin.xlane.f32.xlu0 %v549_v13  ;;  %v554_v19 = vshll.u32 %v553_v17, 16 }
 0x2be   : > { %v562_v14 = vpop.xlane.xlu1 %561 }
 0x2bf   : > { %vm563_vm11 = vcmp.eq.f32.partialorder %v560_v7, %v562_v14  ;;  %v568_v20 = vcvt.f32.s32 %v562_v14 }
 0x2c0   : > { %v564_v16 = vsel %vm563_vm11, %v559_v15, inf }
 0x2c1   : > { %565 = vmin.xlane.f32.xlu1 %v564_v16  ;;  %v569_v24 = vshll.u32 %v568_v20, 16 }
 0x34a   : > { %v551_v18 = vpop.xlane.xlu0 %550 }
 0x34b   : > { %v552_v21 = vcvt.f32.s32 %v551_v18 }
 0x34d   : > { %v1895_v22 = vadd.s32 %v554_v19, %v552_v21 }
 0x34e   : > { %v566_v23 = vpop.xlane.xlu1 %565 }
 0x34f   : > { %v571_v25 = vand.u32 15, %v1895_v22  ;;  %v567_v26 = vcvt.f32.s32 %v566_v23 }
 0x351   : > { %v1898_v27 = vadd.s32 %v569_v24, %v567_v26  ;;  %vm573_vm12 = vcmp.eq.s32.totalorder %v1871_v8, %v571_v25 }
 0x352   : > { %v575_v28 = vsel %vm573_vm12, 2147483647, %v539_v62 }
 0x353   : > { %v572_v29 = vand.u32 15, %v1898_v27  ;;  %v577_v30 = vsel %vm504_vm5, %v575_v28, 2147483647 }
 0x354   : > { %v579_v31 = vshra.s32 %v577_v30, 16  ;;  %v578_v37 = vand.u32 65535, %v577_v30 }
 0x355   : > { %vm574_vm13 = vcmp.eq.s32.totalorder %v1871_v8, %v572_v29 }
 0x356   : > { %v581_v32 = vcvt.s32.f32 %v579_v31  ;;  %v576_v33 = vsel %vm574_vm13, 2147483647, %v540_v4  ;;  %v580_v39 = vcvt.s32.f32 %v578_v37 }
 0x357   : > { %v592_v34 = vsel %vm504_vm5, %v576_v33, 2147483647 }
 0x358   : > { %582 = vmin.xlane.f32.xlu0 %v581_v32  ;;  %v594_v35 = vshra.s32 %v592_v34, 16  ;;  %v593_v40 = vand.u32 65535, %v592_v34 }
 0x35a   : > { %v596_v36 = vcvt.s32.f32 %v594_v35  ;;  %v595_v43 = vcvt.s32.f32 %v593_v40 }
 0x35c   : > { %597 = vmin.xlane.f32.xlu1 %v596_v36 }
 0x3e5   : > { %v583_v38 = vpop.xlane.xlu0 %582 }
 0x3e6   : > { %vm584_vm14 = vcmp.eq.f32.partialorder %v581_v32, %v583_v38  ;;  %v589_v45 = vcvt.f32.s32 %v583_v38 }
 0x3e7   : > { %v585_v41 = vsel %vm584_vm14, %v580_v39, inf  ;;  %vm856_vm14 = vcmask 1041408  }
 0x3e8   : > { %586 = vmin.xlane.f32.xlu0 %v585_v41  ;;  %v590_v47 = vshll.u32 %v589_v45, 16 }
 0x3e9   : > { %v598_v42 = vpop.xlane.xlu1 %597 }
 0x3ea   : > { %vm599_vm15 = vcmp.eq.f32.partialorder %v596_v36, %v598_v42  ;;  %v604_v48 = vcvt.f32.s32 %v598_v42 }
 0x3eb   : > { %v600_v44 = vsel %vm599_vm15, %v595_v43, inf  ;;  %vm1788_vm15 = vmmov 0  }
 0x3ec   : > { %601 = vmin.xlane.f32.xlu1 %v600_v44  ;;  %v605_v52 = vshll.u32 %v604_v48, 16 }
 0x475   : > { %v587_v46 = vpop.xlane.xlu0 %586 }
 0x476   : > { %v588_v49 = vcvt.f32.s32 %v587_v46 }
 0x478   : > { %v1909_v50 = vadd.s32 %v590_v47, %v588_v49 }
 0x479   : > { %v602_v51 = vpop.xlane.xlu1 %601 }
 0x47a   : > { %v607_v53 = vand.u32 15, %v1909_v50  ;;  %v603_v54 = vcvt.f32.s32 %v602_v51 }
 0x47c   : > { %v1912_v55 = vadd.s32 %v605_v52, %v603_v54  ;;  %vm609_vm1 = vcmp.eq.s32.totalorder %v1871_v8, %v607_v53 }
 0x47d   : > { %v611_v57 = vsel %vm609_vm1, 2147483647, %v575_v28 }
 0x47e   : > { %v608_v58 = vand.u32 15, %v1912_v55  ;;  %v613_v60 = vsel %vm504_vm5, %v611_v57, 2147483647 }
 0x47f   : > { %v615_v62 = vshra.s32 %v613_v60, 16  ;;  %v614_v6 = vand.u32 65535, %v613_v60 }
 0x480   : > { %vm610_vm2 = vcmp.eq.s32.totalorder %v1871_v8, %v608_v58 }
 0x481   : > { %v617_v0 = vcvt.s32.f32 %v615_v62  ;;  %v612_v1 = vsel %vm610_vm2, 2147483647, %v576_v33  ;;  %v616_v9 = vcvt.s32.f32 %v614_v6 }
 0x482   : > { %v628_v3 = vsel %vm504_vm5, %v612_v1, 2147483647 }
 0x483   : > { %618 = vmin.xlane.f32.xlu0 %v617_v0  ;;  %v630_v4 = vshra.s32 %v628_v3, 16  ;;  %v629_v10 = vand.u32 65535, %v628_v3 }
 0x485   : > { %v632_v5 = vcvt.s32.f32 %v630_v4  ;;  %v631_v13 = vcvt.s32.f32 %v629_v10 }
 0x487   : > { %633 = vmin.xlane.f32.xlu1 %v632_v5 }
 0x510   : > { %v619_v7 = vpop.xlane.xlu0 %618 }
 0x511   : > { %vm620_vm3 = vcmp.eq.f32.partialorder %v617_v0, %v619_v7  ;;  %v625_v15 = vcvt.f32.s32 %v619_v7 }
 0x512   : > { %v621_v11 = vsel %vm620_vm3, %v616_v9, inf }
 0x513   : > { %622 = vmin.xlane.f32.xlu0 %v621_v11  ;;  %v626_v17 = vshll.u32 %v625_v15, 16 }
 0x514   : > { %v634_v12 = vpop.xlane.xlu1 %633 }
 0x515   : > { %vm635_vm4 = vcmp.eq.f32.partialorder %v632_v5, %v634_v12  ;;  %v640_v18 = vcvt.f32.s32 %v634_v12 }
 0x516   : > { %v636_v14 = vsel %vm635_vm4, %v631_v13, inf }
 0x517   : > { %637 = vmin.xlane.f32.xlu1 %v636_v14  ;;  %v641_v23 = vshll.u32 %v640_v18, 16 }
 0x5a0   : > { %v623_v16 = vpop.xlane.xlu0 %622 }
 0x5a1   : > { %v624_v19 = vcvt.f32.s32 %v623_v16 }
 0x5a3   : > { %v1923_v20 = vadd.s32 %v626_v17, %v624_v19 }
 0x5a4   : > { %v638_v21 = vpop.xlane.xlu1 %637 }
 0x5a5   : > { %v643_v24 = vand.u32 15, %v1923_v20  ;;  %v639_v26 = vcvt.f32.s32 %v638_v21 }
 0x5a7   : > { %v1926_v28 = vadd.s32 %v641_v23, %v639_v26  ;;  %vm645_vm6 = vcmp.eq.s32.totalorder %v1871_v8, %v643_v24  ;;  %v901_v23 = vld [vmem:[%s2205_s2] sm:$0x3]  ;;  %v1787_v26 = vmov 0.0  }
 0x5a8   : > { %v647_v30 = vsel %vm645_vm6, 2147483647, %v611_v57  ;;  %1648 = vmatprep.subr.bf16.mxu0 %v1787_v26  ;;  %1650 = vmatprep.mubr.msk.bf16.mxu0 %vm1788_vm15, %v1787_v26 }
 0x5a9   : > { %v644_v31 = vand.u32 15, %v1926_v28  ;;  %v649_v32 = vsel %vm504_vm5, %v647_v30, 2147483647  ;;  %1642 = vmatprep.subr.bf16.mxu1 %v1787_v26  ;;  %1644 = vmatprep.mubr.msk.bf16.mxu1 %vm1788_vm15, %v1787_v26 }
 0x5aa   : > { %v651_v33 = vshra.s32 %v649_v32, 16  ;;  %v650_v39 = vand.u32 65535, %v649_v32 }
 0x5ab   : > { %vm646_vm7 = vcmp.eq.s32.totalorder %v1871_v8, %v644_v31 }
 0x5ac   : > { %v653_v34 = vcvt.s32.f32 %v651_v33  ;;  %v648_v35 = vsel %vm646_vm7, 2147483647, %v612_v1  ;;  %v652_v41 = vcvt.s32.f32 %v650_v39 }
 0x5ad   : > { %v664_v36 = vsel %vm504_vm5, %v648_v35, 2147483647 }
 0x5ae   : > { %654 = vmin.xlane.f32.xlu0 %v653_v34  ;;  %v666_v37 = vshra.s32 %v664_v36, 16  ;;  %v665_v42 = vand.u32 65535, %v664_v36 }
 0x5b0   : > { %v668_v38 = vcvt.s32.f32 %v666_v37  ;;  %v667_v45 = vcvt.s32.f32 %v665_v42 }
 0x5b2   : > { %669 = vmin.xlane.f32.xlu1 %v668_v38 }
 0x63b   : > { %v655_v40 = vpop.xlane.xlu0 %654 }
 0x63c   : > { %vm656_vm8 = vcmp.eq.f32.partialorder %v653_v34, %v655_v40  ;;  %v661_v47 = vcvt.f32.s32 %v655_v40 }
 0x63d   : > { %v657_v43 = vsel %vm656_vm8, %v652_v41, inf }
 0x63e   : > { %658 = vmin.xlane.f32.xlu0 %v657_v43  ;;  %v662_v49 = vshll.u32 %v661_v47, 16 }
 0x63f   : > { %v670_v44 = vpop.xlane.xlu1 %669 }
 0x640   : > { %vm671_vm9 = vcmp.eq.f32.partialorder %v668_v38, %v670_v44  ;;  %v676_v51 = vcvt.f32.s32 %v670_v44 }
 0x641   : > { %v672_v46 = vsel %vm671_vm9, %v667_v45, inf }
 0x642   : > { %673 = vmin.xlane.f32.xlu1 %v672_v46  ;;  %v677_v60 = vshll.u32 %v676_v51, 16 }
 0x6cb   : > { %v659_v48 = vpop.xlane.xlu0 %658 }
 0x6cc   : > { %v660_v52 = vcvt.f32.s32 %v659_v48 }
 0x6ce   : > { %v1937_v54 = vadd.s32 %v662_v49, %v660_v52 }
 0x6cf   : > { %v674_v57 = vpop.xlane.xlu1 %673 }
 0x6d0   : > { %v679_v62 = vand.u32 15, %v1937_v54  ;;  %v675_v0 = vcvt.f32.s32 %v674_v57  ;;  %v1789_v57 = vmov 0  }
 0x6d1   : > { %1774 = vset.pattern.permute.xlu1 %v1789_v57  ;;  %1773 = vset.pattern.permute.xlu0 %v1789_v57  ;;  %v1775_v57 = vld [vmem:[%s2207_s4] sm:$0xff]  }
 0x6d2   : > { %v1940_v1 = vadd.s32 %v677_v60, %v675_v0  ;;  %vm681_vm10 = vcmp.eq.s32.totalorder %v1871_v8, %v679_v62 }
 0x6d3   : > { %v683_v3 = vsel %vm681_vm10, 2147483647, %v647_v30  ;;  %v903_v30 = vsel %vm856_vm14, %v901_v23, 0 }
 0x6d4   : > { %v680_v4 = vand.u32 15, %v1940_v1  ;;  %v685_v5 = vsel %vm504_vm5, %v683_v3, 2147483647  ;;  %1649 = vmatpush3.bf16.msra.mxu0 %v903_v30 }
 0x6d5   : > { %v687_v6 = vshra.s32 %v685_v5, 16  ;;  %v686_v13 = vand.u32 65535, %v685_v5  ;;  %1654 = vmatprep.subr.bf16.mxu0 %v1787_v26 }
 0x6d6   : > { %vm682_vm11 = vcmp.eq.s32.totalorder %v1871_v8, %v680_v4 }
 0x6d7   : > { %v689_v7 = vcvt.s32.f32 %v687_v6  ;;  %v684_v9 = vsel %vm682_vm11, 2147483647, %v648_v35  ;;  %v688_v15 = vcvt.s32.f32 %v686_v13  ;;  %1651 = vmatmul.mubr.msk.bf16.vlgmr.msra.gmra.mrb[4].mxu0 %vm363_vm0, %v1863_v2  ;;  %v845_v13 = vld [vmem:[%s2204_s1] sm:$0x3] }
 0x6d8   : > { %v700_v10 = vsel %vm504_vm5, %v684_v9, 2147483647  ;;  %1656 = vmatprep.mubr.msk.bf16.mxu0 %vm1788_vm15, %v1787_v26 }
 0x6d9   : > { %690 = vmin.xlane.f32.xlu0 %v689_v7  ;;  %v702_v11 = vshra.s32 %v700_v10, 16  ;;  %v701_v16 = vand.u32 65535, %v700_v10 }
 0x6db   : > { %v704_v12 = vcvt.s32.f32 %v702_v11  ;;  %v703_v19 = vcvt.s32.f32 %v701_v16 }
 0x6dd   : > { %705 = vmin.xlane.f32.xlu1 %v704_v12 }
 0x766   : > { %v691_v14 = vpop.xlane.xlu0 %690 }
 0x767   : > { %vm692_vm12 = vcmp.eq.f32.partialorder %v689_v7, %v691_v14  ;;  %v697_v32 = vcvt.f32.s32 %v691_v14 }
 0x768   : > { %v693_v17 = vsel %vm692_vm12, %v688_v15, inf  ;;  %v858_v15 = vsel %vm856_vm14, %v845_v13, 0 }
 0x769   : > { %694 = vmin.xlane.f32.xlu0 %v693_v17  ;;  %v698_v34 = vshll.u32 %v697_v32, 16  ;;  %1643 = vmatpush3.bf16.msra.mxu1 %v858_v15 }
 0x76a   : > { %v706_v18 = vpop.xlane.xlu1 %705  ;;  %1760 = vmatprep.subr.bf16.mxu1 %v1787_v26 }
 0x76b   : > { %vm707_vm13 = vcmp.eq.f32.partialorder %v704_v12, %v706_v18  ;;  %v712_v35 = vcvt.f32.s32 %v706_v18 }
 0x76c   : > { %v708_v21 = vsel %vm707_vm13, %v703_v19, inf  ;;  %1645 = vmatmul.mubr.msk.bf16.vlgmr.msra.gmra.mrb[0].mxu1 %vm363_vm0, %v1863_v2 }
 0x76d   : > { %709 = vmin.xlane.f32.xlu1 %v708_v21  ;;  %v713_v39 = vshll.u32 %v712_v35, 16  ;;  %1664 = vmatprep.mubr.msk.bf16.mxu1 %vm1788_vm15, %v1787_v26 }
 0x7aa   : > { %v939_v11 = vpop.f32.mrb[4].mxu0 }
 0x7ab   : > { %v1652_v12 = vpop.f32.mrb[5].mxu0 }
 0x7ac   : > { %v942_v14 = vpop.f32.mrb[6].mxu0 }
 0x7ad   : > { %v946_v16 = vpack.c.bf16 %v942_v14, %v939_v11  ;;  %v1653_v17 = vpop.f32.mrb[7].mxu0 }
 0x7af   : > { %1655 = vmatpush3.bf16.msra.mxu0 %v946_v16  ;;  %1761 = vmatpush3.bf16.msra.mxu1 %v946_v16 }
 0x7b0   : > { %1684 = vmatprep.subr.bf16.mxu0 %v1787_v26  ;;  %1716 = vmatprep.subr.bf16.mxu1 %v1787_v26 }
 0x7f6   : > { %v695_v33 = vpop.xlane.xlu0 %694 }
 0x7f7   : > { %v696_v36 = vcvt.f32.s32 %v695_v33 }
 0x7f9   : > { %v699_v37 = vadd.s32 %v698_v34, %v696_v36 }
 0x7fa   : > { %v710_v38 = vpop.xlane.xlu1 %709 }
 0x7fb   : > { %v715_v40 = vand.u32 15, %v699_v37  ;;  %v711_v41 = vcvt.f32.s32 %v710_v38 }
 0x7fd   : > { %v714_v42 = vadd.s32 %v713_v39, %v711_v41  ;;  %vm717_vm1 = vcmp.eq.s32.totalorder %v1871_v8, %v715_v40 }
 0x7fe   : > { %v719_v43 = vsel %vm717_vm1, 2147483647, %v683_v3 }
 0x7ff   : > { %v716_v44 = vand.u32 15, %v714_v42  ;;  %v721_v45 = vsel %vm504_vm5, %v719_v43, 2147483647 }
 0x800   : > { %v723_v46 = vshra.s32 %v721_v45, 16  ;;  %v722_v60 = vand.u32 65535, %v721_v45 }
 0x801   : > { %vm718_vm2 = vcmp.eq.s32.totalorder %v1871_v8, %v716_v44 }
 0x802   : > { %v725_v47 = vcvt.s32.f32 %v723_v46  ;;  %v720_v48 = vsel %vm718_vm2, 2147483647, %v684_v9  ;;  %v724_v3 = vcvt.s32.f32 %v722_v60 }
 0x803   : > { %v736_v49 = vsel %vm504_vm5, %v720_v48, 2147483647 }
 0x804   : > { %726 = vmin.xlane.f32.xlu0 %v725_v47  ;;  %v738_v51 = vshra.s32 %v736_v49, 16  ;;  %v737_v5 = vand.u32 65535, %v736_v49 }
 0x806   : > { %v740_v52 = vcvt.s32.f32 %v738_v51  ;;  %v739_v10 = vcvt.s32.f32 %v737_v5 }
 0x808   : > { %741 = vmin.xlane.f32.xlu1 %v740_v52 }
 0x83f   : > { %v894_v49 = vpop.f32.mrb[0].mxu1 }
 0x840   : > { %v1646_v51 = vpop.f32.mrb[1].mxu1 }
 0x891   : > { %v727_v0 = vpop.xlane.xlu0 %726 }
 0x892   : > { %vm728_vm3 = vcmp.eq.f32.partialorder %v725_v47, %v727_v0  ;;  %v733_v56 = vcvt.f32.s32 %v727_v0  ;;  %v1776_v0 = vld [vmem:[%s2207_s4 + $0x8] sm:$0xff]  }
 0x893   : > { %v729_v6 = vsel %vm728_vm3, %v724_v3, inf }
 0x894   : > { %730 = vmin.xlane.f32.xlu0 %v729_v6  ;;  %v734_v61 = vshll.u32 %v733_v56, 16 }
 0x895   : > { %v742_v7 = vpop.xlane.xlu1 %741 }
 0x896   : > { %vm743_vm4 = vcmp.eq.f32.partialorder %v740_v52, %v742_v7  ;;  %v897_v52 = vpop.f32.mrb[2].mxu1 }
 0x897   : > { %v744_v9 = vsel %vm743_vm4, %v739_v10, inf  ;;  %v1647_v60 = vpop.f32.mrb[3].mxu1 }
 0x898   : > { %745 = vmin.xlane.f32.xlu1 %v744_v9  ;;  %v1563_v9 = vld [vmem:[%s2206_s3] ss:$0 sm:$0xff] }
 0x899   : > { %v2061_v11 = vadd.f32 %v1563_v9, %v894_v49  ;;  %v2063_v12 = vadd.f32 %v1563_v9, %v897_v52 }
 0x8a9   : > { %757 = vperm.xlu1 %1774, %v536_v63   ;;  %v748_v63 = vcvt.f32.s32 %v742_v7 }
 0x8aa   : > { %754 = vperm.xlu0 %1773, %v535_v59  }
 0x8ad   : > { %760 = vperm.xlu1 %1774, %v571_v25  }
 0x8ae   : > { %781 = vperm.xlu0 %1773, %v680_v4  }
 0x8b1   : > { %763 = vperm.xlu1 %1774, %v572_v29   ;;  %v749_v29 = vshll.u32 %v748_v63, 16 }
 0x8b2   : > { %787 = vperm.xlu0 %1773, %v716_v44  }
 0x8b5   : > { %766 = vperm.xlu1 %1774, %v607_v53  }
 0x8b9   : > { %769 = vperm.xlu1 %1774, %v608_v58  }
 0x8bd   : > { %772 = vperm.xlu1 %1774, %v643_v24  }
 0x8c1   : > { %775 = vperm.xlu1 %1774, %v644_v31  }
 0x8c5   : > { %778 = vperm.xlu1 %1774, %v679_v62  }
 0x8c9   : > { %784 = vperm.xlu1 %1774, %v715_v40  }
 0x921   : > { %v731_v59 = vpop.xlane.xlu0 %730 }
 0x922   : > { %v732_v22 = vcvt.f32.s32 %v731_v59 }
 0x924   : > { %v735_v25 = vadd.s32 %v734_v61, %v732_v22 }
 0x925   : > { %v746_v27 = vpop.xlane.xlu1 %745 }
 0x926   : > { %v751_v50 = vand.u32 15, %v735_v25  ;;  %v747_v53 = vcvt.f32.s32 %v746_v27 }
 0x928   : > { %v750_v55 = vadd.s32 %v749_v29, %v747_v53  ;;  %790 = vperm.xlu1 %1774, %v751_v50  }
 0x929   : > { %v758_v58 = vpop.permute.xlu1 %757  ;;  %v755_v20 = vpop.permute.xlu0 %754 }
 0x92a   : > { %v752_v24 = vand.u32 15, %v750_v55  ;;  %vm796_vm6 = vcmp.eq.s32.totalorder %v1871_v8, %v758_v58  ;;  %vm795_vm7 = vcmp.eq.s32.totalorder %v1871_v8, %v755_v20 }
 0x92b   : > { %v1550_v28 = vsel %vm796_vm6, 1.0, %v1787_v26  ;;  %v1549_v31 = vsel %vm795_vm7, 1.0, %v1787_v26 }
 0x92c   : > { %v837_v54 = vpack.c.bf16 %v1550_v28, %v1549_v31  ;;  %793 = vperm.xlu0 %1773, %v752_v24  }
 0x92d   : > { %v761_v62 = vpop.permute.xlu1 %760  ;;  %v782_v39 = vpop.permute.xlu0 %781 }
 0x92e   : > { %1657 = vmatmul.mubr.msk.bf16.vlgmr.msra.gmra.mrb[8].mxu0 %vm504_vm5, %v837_v54  ;;  %vm797_vm8 = vcmp.eq.s32.totalorder %v1871_v8, %v761_v62  ;;  %vm804_vm2 = vcmp.eq.s32.totalorder %v1871_v8, %v782_v39 }
 0x92f   : > { %1660 = vmatprep.mubr.msk.bf16.mxu0 %vm1788_vm15, %v1787_v26  ;;  %v1551_v4 = vsel %vm797_vm8, 1.0, %v1787_v26  ;;  %v1558_v42 = vsel %vm804_vm2, 1.0, %v1787_v26  ;;  %1685 = vmatpush3.bf16.msra.mxu0 %v1775_v57 }
 0x930   : > { %1686 = vmatprep.subr.bf16.mxu0 %v1787_v26 }
 0x931   : > { %v764_v1 = vpop.permute.xlu1 %763  ;;  %v788_v45 = vpop.permute.xlu0 %787 }
 0x932   : > { %vm798_vm9 = vcmp.eq.s32.totalorder %v1871_v8, %v764_v1  ;;  %vm806_vm4 = vcmp.eq.s32.totalorder %v1871_v8, %v788_v45 }
 0x933   : > { %v1552_v18 = vsel %vm798_vm9, 1.0, %v1787_v26  ;;  %v1560_v47 = vsel %vm806_vm4, 1.0, %v1787_v26  ;;  %1687 = vmatpush3.bf16.msra.mxu0 %v1776_v0 }
 0x934   : > { %v838_v19 = vpack.c.bf16 %v1552_v18, %v1551_v4  ;;  %1748 = vmatprep.subr.bf16.mxu0 %v1787_v26 }
 0x935   : > { %v767_v21 = vpop.permute.xlu1 %766 }
 0x936   : > { %1661 = vmatmul.mubr.msk.bf16.gmra.mrb[12].mxu0 %vm504_vm5, %v838_v19  ;;  %vm799_vm10 = vcmp.eq.s32.totalorder %v1871_v8, %v767_v21 }
 0x937   : > { %1688 = vmatprep.mubr.msk.bf16.mxu0 %vm1788_vm15, %v1787_v26  ;;  %v1553_v30 = vsel %vm799_vm10, 1.0, %v1787_v26 }
 0x939   : > { %v770_v23 = vpop.permute.xlu1 %769 }
 0x93a   : > { %vm800_vm11 = vcmp.eq.s32.totalorder %v1871_v8, %v770_v23 }
 0x93b   : > { %v1554_v32 = vsel %vm800_vm11, 1.0, %v1787_v26 }
 0x93c   : > { %v839_v33 = vpack.c.bf16 %v1554_v32, %v1553_v30 }
 0x93d   : > { %v773_v34 = vpop.permute.xlu1 %772 }
 0x93e   : > { %1665 = vmatmul.mubr.msk.bf16.vlgmr.msra.gmra.mrb[4].mxu1 %vm504_vm5, %v839_v33  ;;  %vm801_vm12 = vcmp.eq.s32.totalorder %v1871_v8, %v773_v34 }
 0x93f   : > { %1668 = vmatprep.mubr.msk.bf16.mxu1 %vm1788_vm15, %v1787_v26  ;;  %v1555_v36 = vsel %vm801_vm12, 1.0, %v1787_v26 }
 0x941   : > { %v776_v35 = vpop.permute.xlu1 %775 }
 0x942   : > { %vm802_vm13 = vcmp.eq.s32.totalorder %v1871_v8, %v776_v35 }
 0x943   : > { %v1556_v37 = vsel %vm802_vm13, 1.0, %v1787_v26 }
 0x944   : > { %v840_v38 = vpack.c.bf16 %v1556_v37, %v1555_v36 }
 0x945   : > { %v779_v40 = vpop.permute.xlu1 %778 }
 0x946   : > { %vm803_vm1 = vcmp.eq.s32.totalorder %v1871_v8, %v779_v40  ;;  %1669 = vmatmul.mubr.msk.bf16.gmra.mrb[8].mxu1 %vm504_vm5, %v840_v38 }
 0x947   : > { %1672 = vmatprep.mubr.msk.bf16.mxu1 %vm1788_vm15, %v1787_v26  ;;  %v1557_v41 = vsel %vm803_vm1, 1.0, %v1787_v26 }
 0x948   : > { %v841_v44 = vpack.c.bf16 %v1558_v42, %v1557_v41 }
 0x949   : > { %v785_v43 = vpop.permute.xlu1 %784 }
 0x94a   : > { %vm805_vm3 = vcmp.eq.s32.totalorder %v1871_v8, %v785_v43 }
 0x94b   : > { %v1559_v46 = vsel %vm805_vm3, 1.0, %v1787_v26 }
 0x94c   : > { %v842_v48 = vpack.c.bf16 %v1560_v47, %v1559_v46 }
 0x94e   : > { %1673 = vmatmul.mubr.msk.bf16.gmra.mrb[12].mxu1 %vm504_vm5, %v841_v44 }
 0x94f   : > { %1676 = vmatprep.mubr.msk.bf16.mxu1 %vm1788_vm15, %v1787_v26 }
 0x956   : > { %1677 = vmatmul.mubr.msk.bf16.gmra.mrb[16].mxu1 %vm504_vm5, %v842_v48 }
 0x957   : > { %1680 = vmatprep.mubr.msk.bf16.mxu1 %vm1788_vm15, %v1787_v26 }
 0x9a7   : > { %v791_v3 = vpop.permute.xlu1 %790 }
 0x9a8   : > { %vm807_vm6 = vcmp.eq.s32.totalorder %v1871_v8, %v791_v3  ;;  %v1777_v3 = vld [vmem:[%s2209_s6] sm:$0xff]  }
 0x9a9   : > { %v1561_v6 = vsel %vm807_vm6, 1.0, %v1787_v26  ;;  %1717 = vmatpush3.bf16.msra.mxu1 %v1777_v3 }
 0x9aa   : > { %1718 = vmatprep.subr.bf16.mxu1 %v1787_v26 }
 0x9ab   : > { %v794_v5 = vpop.permute.xlu0 %793 }
 0x9ac   : > { %vm808_vm7 = vcmp.eq.s32.totalorder %v1871_v8, %v794_v5  ;;  %v1778_v5 = vld [vmem:[%s2209_s6 + $0x8] sm:$0xff]  }
 0x9ad   : > { %v1562_v7 = vsel %vm808_vm7, 1.0, %v1787_v26  ;;  %1719 = vmatpush3.bf16.msra.mxu1 %v1778_v5 }
 0x9ae   : > { %v843_v10 = vpack.c.bf16 %v1562_v7, %v1561_v6 }
 0x9b0   : > { %1681 = vmatmul.mubr.msk.bf16.gmra.mrb[20].mxu1 %vm504_vm5, %v843_v10  ;;  %vm1115_vm5 = vcmask 261120  }
 0x9b1   : > { %1720 = vmatprep.mubr.msk.bf16.mxu1 %vm1788_vm15, %v1787_v26 }
 0xa01   : > { %v1002_v13 = vpop.f32.mrb[8].mxu0 }
 0xa02   : > { %v1057_v8 = vadd.f32 %v1002_v13, %v2061_v11  ;;  %v1658_v14 = vpop.f32.mrb[9].mxu0 }
 0xa03   : > { %v1005_v15 = vpop.f32.mrb[10].mxu0 }
 0xa04   : > { %v1058_v16 = vadd.f32 %v1005_v15, %v2063_v12  ;;  %v1659_v17 = vpop.f32.mrb[11].mxu0  ;;  %v1071_v56 = vmax.f32 %v1057_v8, 0.0 }
 0xa05   : > { %v1423_v17 = vld [vmem:[%s2211_s8] sm:$0x3] }
 0xa06   : > { %v1072_v59 = vmax.f32 %v1058_v16, 0.0 }
 0xa08   : > { %v1085_v61 = vpack.c.bf16 %v1072_v59, %v1071_v56  ;;  %v1432_v56 = vsel %vm856_vm14, %v1423_v17, 0 }
 0xa09   : > { %v1010_v63 = vpop.f32.mrb[12].mxu0 }
 0xa0a   : > { %v1059_v22 = vadd.f32 %v1010_v63, %v2061_v11  ;;  %v1662_v25 = vpop.f32.mrb[13].mxu0  ;;  %1689 = vmatmul.mubr.msk.bf16.vlgmr.msra.gmra.mrb[16].mxu0 %vm1115_vm5, %v1085_v61 }
 0xa0b   : > { %v1013_v27 = vpop.f32.mrb[14].mxu0  ;;  %1692 = vmatprep.mubr.msk.bf16.mxu0 %vm1788_vm15, %v1787_v26  ;;  %1749 = vmatpush3.bf16.msra.mxu0 %v1432_v56 }
 0xa0c   : > { %v1060_v29 = vadd.f32 %v1013_v27, %v2063_v12  ;;  %v1663_v50 = vpop.f32.mrb[15].mxu0  ;;  %v1073_v53 = vmax.f32 %v1059_v22, 0.0 }
 0xa0e   : > { %v1074_v55 = vmax.f32 %v1060_v29, 0.0 }
 0xa10   : > { %v1086_v58 = vpack.c.bf16 %v1074_v55, %v1073_v53 }
 0xa11   : > { %v1018_v20 = vpop.f32.mrb[4].mxu1 }
 0xa12   : > { %v1061_v24 = vadd.f32 %v1018_v20, %v2061_v11  ;;  %v1666_v28 = vpop.f32.mrb[5].mxu1  ;;  %1693 = vmatmul.mubr.msk.bf16.gmra.mrb[20].mxu0 %vm1115_vm5, %v1086_v58 }
 0xa13   : > { %v1021_v31 = vpop.f32.mrb[6].mxu1  ;;  %1696 = vmatprep.mubr.msk.bf16.mxu0 %vm1788_vm15, %v1787_v26 }
 0xa14   : > { %v1062_v54 = vadd.f32 %v1021_v31, %v2063_v12  ;;  %v1667_v62 = vpop.f32.mrb[7].mxu1  ;;  %v1075_v1 = vmax.f32 %v1061_v24, 0.0 }
 0xa16   : > { %v1076_v4 = vmax.f32 %v1062_v54, 0.0 }
 0xa18   : > { %v1087_v18 = vpack.c.bf16 %v1076_v4, %v1075_v1 }
 0xa19   : > { %v1026_v19 = vpop.f32.mrb[8].mxu1 }
 0xa1a   : > { %v1063_v21 = vadd.f32 %v1026_v19, %v2061_v11  ;;  %v1670_v23 = vpop.f32.mrb[9].mxu1  ;;  %1697 = vmatmul.mubr.msk.bf16.gmra.mrb[24].mxu0 %vm1115_vm5, %v1087_v18 }
 0xa1b   : > { %v1029_v30 = vpop.f32.mrb[10].mxu1  ;;  %1700 = vmatprep.mubr.msk.bf16.mxu0 %vm1788_vm15, %v1787_v26 }
 0xa1c   : > { %v1064_v32 = vadd.f32 %v1029_v30, %v2063_v12  ;;  %v1671_v33 = vpop.f32.mrb[11].mxu1  ;;  %v1077_v34 = vmax.f32 %v1063_v21, 0.0 }
 0xa1e   : > { %v1078_v35 = vmax.f32 %v1064_v32, 0.0 }
 0xa20   : > { %v1088_v36 = vpack.c.bf16 %v1078_v35, %v1077_v34 }
 0xa21   : > { %v1034_v37 = vpop.f32.mrb[12].mxu1 }
 0xa22   : > { %v1065_v38 = vadd.f32 %v1034_v37, %v2061_v11  ;;  %v1674_v39 = vpop.f32.mrb[13].mxu1  ;;  %1701 = vmatmul.mubr.msk.bf16.gmra.mrb[28].mxu0 %vm1115_vm5, %v1088_v36 }
 0xa23   : > { %v1037_v40 = vpop.f32.mrb[14].mxu1  ;;  %1704 = vmatprep.mubr.msk.bf16.mxu0 %vm1788_vm15, %v1787_v26 }
 0xa24   : > { %v1066_v41 = vadd.f32 %v1037_v40, %v2063_v12  ;;  %v1675_v42 = vpop.f32.mrb[15].mxu1  ;;  %v1079_v43 = vmax.f32 %v1065_v38, 0.0 }
 0xa26   : > { %v1080_v44 = vmax.f32 %v1066_v41, 0.0 }
 0xa28   : > { %v1089_v45 = vpack.c.bf16 %v1080_v44, %v1079_v43 }
 0xa29   : > { %v1042_v46 = vpop.f32.mrb[16].mxu1 }
 0xa2a   : > { %v1067_v47 = vadd.f32 %v1042_v46, %v2061_v11  ;;  %v1678_v48 = vpop.f32.mrb[17].mxu1  ;;  %1705 = vmatmul.mubr.msk.bf16.gmra.mrb[32].mxu0 %vm1115_vm5, %v1089_v45 }
 0xa2b   : > { %v1045_v49 = vpop.f32.mrb[18].mxu1  ;;  %1708 = vmatprep.mubr.msk.bf16.mxu0 %vm1788_vm15, %v1787_v26 }
 0xa2c   : > { %v1068_v51 = vadd.f32 %v1045_v49, %v2063_v12  ;;  %v1679_v52 = vpop.f32.mrb[19].mxu1  ;;  %v1081_v57 = vmax.f32 %v1067_v47, 0.0 }
 0xa2e   : > { %v1082_v60 = vmax.f32 %v1068_v51, 0.0 }
 0xa30   : > { %v1090_v0 = vpack.c.bf16 %v1082_v60, %v1081_v57 }
 0xa32   : > { %1709 = vmatmul.mubr.msk.bf16.gmra.mrb[36].mxu0 %vm1115_vm5, %v1090_v0 }
 0xa33   : > { %1712 = vmatprep.mubr.msk.bf16.mxu0 %vm1788_vm15, %v1787_v26 }
 0xa83   : > { %v1050_v6 = vpop.f32.mrb[20].mxu1 }
 0xa84   : > { %v1069_v7 = vadd.f32 %v1050_v6, %v2061_v11  ;;  %v1682_v10 = vpop.f32.mrb[21].mxu1  ;;  %v2116_v11 = vld [vmem:[%s2208_s5] ss:$0 sm:$0xff] }
 0xa85   : > { %v1053_v9 = vpop.f32.mrb[22].mxu1 }
 0xa86   : > { %v1070_v13 = vadd.f32 %v1053_v9, %v2063_v12  ;;  %v1683_v8 = vpop.f32.mrb[23].mxu1  ;;  %v1083_v14 = vmax.f32 %v1069_v7, 0.0 }
 0xa88   : > { %v1084_v15 = vmax.f32 %v1070_v13, 0.0 }
 0xa8a   : > { %v1091_v16 = vpack.c.bf16 %v1084_v15, %v1083_v14 }
 0xa8c   : > { %1713 = vmatmul.mubr.msk.bf16.gmra.mrb[40].mxu0 %vm1115_vm5, %v1091_v16 }
 0xa8d   : > { %1750 = vmatprep.mubr.msk.bf16.mxu0 %vm1788_vm15, %v1787_v26 }
 0xa94   : > { %1751 = vmatmul.mubr.msk.bf16.vlgmr.msra.gmra.mrb[44].mxu0 %vm363_vm0, %v1863_v2 }
 0xadd   : > { %v1171_v12 = vpop.f32.mrb[16].mxu0 }
 0xade   : > { %v1172_v59 = vadd.f32 %v2116_v11, %v1171_v12  ;;  %v1690_v61 = vpop.f32.mrb[17].mxu0 }
 0xadf   : > { %v1174_v63 = vpop.f32.mrb[18].mxu0 }
 0xae0   : > { %v1175_v22 = vadd.f32 %v2116_v11, %v1174_v63  ;;  %v1691_v25 = vpop.f32.mrb[19].mxu0  ;;  %v1226_v27 = vmax.f32 %v1172_v59, 0.0  ;;  %v2154_v63 = vld [vmem:[%s2210_s7] ss:$0 sm:$0xff] }
 0xae2   : > { %v1227_v29 = vmax.f32 %v1175_v22, 0.0 }
 0xae4   : > { %v1240_v50 = vpack.c.bf16 %v1227_v29, %v1226_v27 }
 0xae5   : > { %v1179_v53 = vpop.f32.mrb[20].mxu0 }
 0xae6   : > { %v1180_v55 = vadd.f32 %v2116_v11, %v1179_v53  ;;  %v1694_v2 = vpop.f32.mrb[21].mxu0  ;;  %1721 = vmatmul.mubr.msk.bf16.vlgmr.msra.gmra.mrb[24].mxu1 %vm1115_vm5, %v1240_v50 }
 0xae7   : > { %v1182_v58 = vpop.f32.mrb[22].mxu0  ;;  %1724 = vmatprep.mubr.msk.bf16.mxu1 %vm1788_vm15, %v1787_v26 }
 0xae8   : > { %v1183_v20 = vadd.f32 %v2116_v11, %v1182_v58  ;;  %v1695_v24 = vpop.f32.mrb[23].mxu0  ;;  %v1228_v28 = vmax.f32 %v1180_v55, 0.0 }
 0xaea   : > { %v1229_v31 = vmax.f32 %v1183_v20, 0.0 }
 0xaec   : > { %v1241_v54 = vpack.c.bf16 %v1229_v31, %v1228_v28 }
 0xaed   : > { %v1187_v62 = vpop.f32.mrb[24].mxu0 }
 0xaee   : > { %v1188_v1 = vadd.f32 %v2116_v11, %v1187_v62  ;;  %v1698_v4 = vpop.f32.mrb[25].mxu0  ;;  %1725 = vmatmul.mubr.msk.bf16.gmra.mrb[28].mxu1 %vm1115_vm5, %v1241_v54 }
 0xaef   : > { %v1190_v18 = vpop.f32.mrb[26].mxu0  ;;  %1728 = vmatprep.mubr.msk.bf16.mxu1 %vm1788_vm15, %v1787_v26 }
 0xaf0   : > { %v1191_v19 = vadd.f32 %v2116_v11, %v1190_v18  ;;  %v1699_v21 = vpop.f32.mrb[27].mxu0  ;;  %v1230_v23 = vmax.f32 %v1188_v1, 0.0 }
 0xaf2   : > { %v1231_v30 = vmax.f32 %v1191_v19, 0.0 }
 0xaf4   : > { %v1242_v32 = vpack.c.bf16 %v1231_v30, %v1230_v23 }
 0xaf5   : > { %v1195_v33 = vpop.f32.mrb[28].mxu0 }
 0xaf6   : > { %v1196_v34 = vadd.f32 %v2116_v11, %v1195_v33  ;;  %v1702_v35 = vpop.f32.mrb[29].mxu0  ;;  %1729 = vmatmul.mubr.msk.bf16.gmra.mrb[32].mxu1 %vm1115_vm5, %v1242_v32 }
 0xaf7   : > { %v1198_v36 = vpop.f32.mrb[30].mxu0  ;;  %1732 = vmatprep.mubr.msk.bf16.mxu1 %vm1788_vm15, %v1787_v26 }
 0xaf8   : > { %v1199_v37 = vadd.f32 %v2116_v11, %v1198_v36  ;;  %v1703_v38 = vpop.f32.mrb[31].mxu0  ;;  %v1232_v39 = vmax.f32 %v1196_v34, 0.0 }
 0xafa   : > { %v1233_v40 = vmax.f32 %v1199_v37, 0.0 }
 0xafc   : > { %v1243_v41 = vpack.c.bf16 %v1233_v40, %v1232_v39 }
 0xafd   : > { %v1203_v42 = vpop.f32.mrb[32].mxu0 }
 0xafe   : > { %v1204_v43 = vadd.f32 %v2116_v11, %v1203_v42  ;;  %v1706_v44 = vpop.f32.mrb[33].mxu0  ;;  %1733 = vmatmul.mubr.msk.bf16.gmra.mrb[36].mxu1 %vm1115_vm5, %v1243_v41 }
 0xaff   : > { %v1206_v45 = vpop.f32.mrb[34].mxu0  ;;  %1736 = vmatprep.mubr.msk.bf16.mxu1 %vm1788_vm15, %v1787_v26 }
 0xb00   : > { %v1207_v46 = vadd.f32 %v2116_v11, %v1206_v45  ;;  %v1707_v47 = vpop.f32.mrb[35].mxu0  ;;  %v1234_v48 = vmax.f32 %v1204_v43, 0.0 }
 0xb02   : > { %v1235_v49 = vmax.f32 %v1207_v46, 0.0 }
 0xb04   : > { %v1244_v51 = vpack.c.bf16 %v1235_v49, %v1234_v48 }
 0xb05   : > { %v1211_v52 = vpop.f32.mrb[36].mxu0 }
 0xb06   : > { %v1212_v57 = vadd.f32 %v2116_v11, %v1211_v52  ;;  %v1710_v60 = vpop.f32.mrb[37].mxu0  ;;  %1737 = vmatmul.mubr.msk.bf16.gmra.mrb[40].mxu1 %vm1115_vm5, %v1244_v51 }
 0xb07   : > { %v1214_v0 = vpop.f32.mrb[38].mxu0  ;;  %1740 = vmatprep.mubr.msk.bf16.mxu1 %vm1788_vm15, %v1787_v26 }
 0xb08   : > { %v1215_v3 = vadd.f32 %v2116_v11, %v1214_v0  ;;  %v1711_v5 = vpop.f32.mrb[39].mxu0  ;;  %v1236_v6 = vmax.f32 %v1212_v57, 0.0 }
 0xb0a   : > { %v1237_v7 = vmax.f32 %v1215_v3, 0.0 }
 0xb0c   : > { %v1245_v10 = vpack.c.bf16 %v1237_v7, %v1236_v6 }
 0xb0e   : > { %1741 = vmatmul.mubr.msk.bf16.gmra.mrb[44].mxu1 %vm1115_vm5, %v1245_v10 }
 0xb0f   : > { %1744 = vmatprep.mubr.msk.bf16.mxu1 %vm1788_vm15, %v1787_v26 }
 0xb5f   : > { %v1219_v9 = vpop.f32.mrb[40].mxu0 }
 0xb60   : > { %v1220_v13 = vadd.f32 %v2116_v11, %v1219_v9  ;;  %v1714_v8 = vpop.f32.mrb[41].mxu0 }
 0xb61   : > { %v1222_v14 = vpop.f32.mrb[42].mxu0 }
 0xb62   : > { %v1223_v15 = vadd.f32 %v2116_v11, %v1222_v14  ;;  %v1715_v16 = vpop.f32.mrb[43].mxu0  ;;  %v1238_v17 = vmax.f32 %v1220_v13, 0.0 }
 0xb64   : > { %v1239_v56 = vmax.f32 %v1223_v15, 0.0 }
 0xb66   : > { %v1246_v12 = vpack.c.bf16 %v1239_v56, %v1238_v17 }
 0xb67   : > { %v2157_v27 = vpop.f32.mrb[44].mxu0 }
 0xb68   : > { %1745 = vmatmul.mubr.msk.bf16.gmra.mrb[48].mxu1 %vm1115_vm5, %v1246_v12  ;;  %v1752_v29 = vpop.f32.mrb[45].mxu0 }
 0xb69   : > { %v2160_v53 = vpop.f32.mrb[46].mxu0 }
 0xb6a   : > { %v1753_v20 = vpop.f32.mrb[47].mxu0 }
 0xbb9   : > { %v1325_v59 = vpop.f32.mrb[24].mxu1 }
 0xbba   : > { %v1722_v61 = vpop.f32.mrb[25].mxu1  ;;  %v1326_v25 = vadd.f32 %v2154_v63, %v1325_v59 }
 0xbbb   : > { %v1328_v26 = vpop.f32.mrb[26].mxu1 }
 0xbbc   : > { %v1723_v22 = vpop.f32.mrb[27].mxu1  ;;  %v1329_v11 = vadd.f32 %v2154_v63, %v1328_v26  ;;  %v1380_v55 = vmax.f32 %v1326_v25, 0.0 }
 0xbbe   : > { %v1381_v28 = vmax.f32 %v1329_v11, 0.0  ;;  %v1394_v1 = vsel %vm1115_vm5, %v1380_v55, 0.0 }
 0xbc0   : > { %v1407_v21 = vsel %vm1115_vm5, %v1381_v28, 0.0 }
 0xbc1   : > { %v1333_v50 = vpop.f32.mrb[28].mxu1 }
 0xbc2   : > { %v1334_v2 = vadd.f32 %v2154_v63, %v1333_v50  ;;  %v1726_v58 = vpop.f32.mrb[29].mxu1 }
 0xbc3   : > { %v1336_v24 = vpop.f32.mrb[30].mxu1 }
 0xbc4   : > { %v1382_v31 = vmax.f32 %v1334_v2, 0.0  ;;  %v1337_v54 = vadd.f32 %v2154_v63, %v1336_v24  ;;  %v1727_v62 = vpop.f32.mrb[31].mxu1 }
 0xbc6   : > { %v1395_v4 = vsel %vm1115_vm5, %v1382_v31, 0.0  ;;  %v1383_v18 = vmax.f32 %v1337_v54, 0.0 }
 0xbc7   : > { %v1396_v19 = vadd.f32 %v1395_v4, %v1394_v1  ;;  %v1593_v4 = vld [vmem:[%s2212_s9] ss:$0 sm:$0xff] }
 0xbc8   : > { %v1408_v23 = vsel %vm1115_vm5, %v1383_v18, 0.0 }
 0xbc9   : > { %v1409_v30 = vadd.f32 %v1408_v23, %v1407_v21  ;;  %v1341_v32 = vpop.f32.mrb[32].mxu1  ;;  %v1469_v23 = vadd.f32 %v1593_v4, %v2157_v27 }
 0xbca   : > { %v1342_v33 = vadd.f32 %v2154_v63, %v1341_v32  ;;  %v1730_v34 = vpop.f32.mrb[33].mxu1 }
 0xbcb   : > { %v1344_v35 = vpop.f32.mrb[34].mxu1 }
 0xbcc   : > { %v1384_v36 = vmax.f32 %v1342_v33, 0.0  ;;  %v1345_v37 = vadd.f32 %v2154_v63, %v1344_v35  ;;  %v1731_v38 = vpop.f32.mrb[35].mxu1 }
 0xbce   : > { %v1397_v39 = vsel %vm1115_vm5, %v1384_v36, 0.0  ;;  %v1385_v40 = vmax.f32 %v1345_v37, 0.0  ;;  %v1472_v36 = vadd.f32 %v1593_v4, %v2160_v53 }
 0xbcf   : > { %v1398_v41 = vadd.f32 %v1397_v39, %v1396_v19 }
 0xbd0   : > { %v1410_v42 = vsel %vm1115_vm5, %v1385_v40, 0.0 }
 0xbd1   : > { %v1411_v43 = vadd.f32 %v1410_v42, %v1409_v30  ;;  %v1349_v44 = vpop.f32.mrb[36].mxu1 }
 0xbd2   : > { %v1350_v45 = vadd.f32 %v2154_v63, %v1349_v44  ;;  %v1734_v46 = vpop.f32.mrb[37].mxu1 }
 0xbd3   : > { %v1352_v47 = vpop.f32.mrb[38].mxu1 }
 0xbd4   : > { %v1386_v48 = vmax.f32 %v1350_v45, 0.0  ;;  %v1353_v49 = vadd.f32 %v2154_v63, %v1352_v47  ;;  %v1735_v51 = vpop.f32.mrb[39].mxu1 }
 0xbd6   : > { %v1399_v52 = vsel %vm1115_vm5, %v1386_v48, 0.0  ;;  %v1387_v57 = vmax.f32 %v1353_v49, 0.0 }
 0xbd7   : > { %v1400_v60 = vadd.f32 %v1399_v52, %v1398_v41 }
 0xbd8   : > { %v1412_v0 = vsel %vm1115_vm5, %v1387_v57, 0.0 }
 0xbd9   : > { %v1413_v3 = vadd.f32 %v1412_v0, %v1411_v43  ;;  %v1357_v5 = vpop.f32.mrb[40].mxu1 }
 0xbda   : > { %v1358_v6 = vadd.f32 %v2154_v63, %v1357_v5  ;;  %v1738_v7 = vpop.f32.mrb[41].mxu1 }
 0xbdb   : > { %v1360_v10 = vpop.f32.mrb[42].mxu1 }
 0xbdc   : > { %v1388_v9 = vmax.f32 %v1358_v6, 0.0  ;;  %v1361_v13 = vadd.f32 %v2154_v63, %v1360_v10  ;;  %v1739_v8 = vpop.f32.mrb[43].mxu1 }
 0xbde   : > { %v1401_v14 = vsel %vm1115_vm5, %v1388_v9, 0.0  ;;  %v1389_v15 = vmax.f32 %v1361_v13, 0.0 }
 0xbdf   : > { %v1402_v16 = vadd.f32 %v1401_v14, %v1400_v60 }
 0xbe0   : > { %v1414_v17 = vsel %vm1115_vm5, %v1389_v15, 0.0 }
 0xbe1   : > { %v1415_v56 = vadd.f32 %v1414_v17, %v1413_v3  ;;  %v1365_v12 = vpop.f32.mrb[44].mxu1 }
 0xbe2   : > { %v1366_v59 = vadd.f32 %v2154_v63, %v1365_v12  ;;  %v1742_v61 = vpop.f32.mrb[45].mxu1 }
 0xbe3   : > { %v1368_v26 = vpop.f32.mrb[46].mxu1 }
 0xbe4   : > { %v1390_v22 = vmax.f32 %v1366_v59, 0.0  ;;  %v1369_v25 = vadd.f32 %v2154_v63, %v1368_v26  ;;  %v1743_v11 = vpop.f32.mrb[47].mxu1 }
 0xbe6   : > { %v1403_v29 = vsel %vm1115_vm5, %v1390_v22, 0.0  ;;  %v1391_v50 = vmax.f32 %v1369_v25, 0.0 }
 0xbe7   : > { %v1404_v55 = vadd.f32 %v1403_v29, %v1402_v16 }
 0xbe8   : > { %v1416_v2 = vsel %vm1115_vm5, %v1391_v50, 0.0 }
 0xbe9   : > { %v1417_v58 = vadd.f32 %v1416_v2, %v1415_v56 }
 0xc3b   : > { %v1373_v20 = vpop.f32.mrb[48].mxu1 }
 0xc3c   : > { %v1374_v24 = vadd.f32 %v2154_v63, %v1373_v20  ;;  %v1746_v28 = vpop.f32.mrb[49].mxu1 }
 0xc3d   : > { %v1376_v31 = vpop.f32.mrb[50].mxu1 }
 0xc3e   : > { %v1392_v54 = vmax.f32 %v1374_v24, 0.0  ;;  %v1377_v62 = vadd.f32 %v2154_v63, %v1376_v31  ;;  %v1747_v1 = vpop.f32.mrb[51].mxu1 }
 0xc40   : > { %v1405_v18 = vsel %vm1115_vm5, %v1392_v54, 0.0  ;;  %v1393_v19 = vmax.f32 %v1377_v62, 0.0 }
 0xc41   : > { %v1406_v21 = vadd.f32 %v1405_v18, %v1404_v55 }
 0xc42   : > { %v1418_v30 = vsel %vm1115_vm5, %v1393_v19, 0.0 }
 0xc43   : > { %v1419_v32 = vadd.f32 %v1418_v30, %v1417_v58  ;;  %v1421_v33 = vmul.f32 0.14285715, %v1406_v21 }
 0xc45   : > { %v1475_v34 = vadd.f32 %v1469_v23, %v1421_v33  ;;  %v1422_v35 = vmul.f32 0.14285715, %v1419_v32 }
 0xc47   : > { %v1477_v63 = vmax.f32 %v1475_v34, 0.0  ;;  %v1476_v37 = vadd.f32 %v1472_v36, %v1422_v35 }
 0xc49   : > { %1479 = vst.msk [vmem:[%s359_s26] sm:$0xff] %vm1115_vm5, %v1477_v63  ;;  %v1478_v38 = vmax.f32 %v1476_v37, 0.0 }
 0xc4b   : > { %1480 = vst.msk [vmem:[%s359_s26 + $0x8] sm:$0xff] %vm1115_vm5, %v1478_v38 }
 0xc4c PF: > { %s20_s13 = sadd.s32 1, %s1785_s13  }
 0xc4d   : > { %p17_p4 = scmp.ge.s32.totalorder %s20_s13, 4  }
 0xc4f   :  { %19 = sbr.rel (!%p17_p4) target bundleno = 1 (0x1), region = 90 }

// kernel: particlenet_forward.3
= control target key start
LH: loop header
LB: loop body
LE: loop exit
PB: predicated region body
PF: predicated region fallthrough
CT: control target
= control target key end

     0   :  { %s2960_s0 = inlined_call_operand.vmem [shape: f32[2,16,32], index: 0, kind: input, shape index: {}]   ;;  %s2961_s1 = inlined_call_operand.vmem [shape: bf16[32,64], index: 1, kind: input, shape index: {}]   ;;  %s2962_s2 = inlined_call_operand.vmem [shape: bf16[32,64], index: 2, kind: input, shape index: {}]   ;;  %s2963_s3 = inlined_call_operand.vmem [shape: f32[1,64], index: 3, kind: input, shape index: {}]   ;;  %s2964_s4 = inlined_call_operand.vmem [shape: bf16[64,64], index: 4, kind: input, shape index: {}]   ;;  %s2965_s5 = inlined_call_operand.vmem [shape: f32[1,64], index: 5, kind: input, shape index: {}]   ;;  %s2966_s6 = inlined_call_operand.vmem [shape: bf16[64,64], index: 6, kind: input, shape index: {}]   ;;  %s2967_s7 = inlined_call_operand.vmem [shape: f32[1,64], index: 7, kind: input, shape index: {}]   ;;  %s2968_s8 = inlined_call_operand.vmem [shape: bf16[32,64], index: 8, kind: input, shape index: {}]   ;;  %s2969_s9 = inlined_call_operand.vmem [shape: f32[1,64], index: 9, kind: input, shape index: {}]   ;;  %s2970_s10 = inlined_call_operand.vmem [shape: bf16[64,128], index: 10, kind: input, shape index: {}]   ;;  %s2971_s11 = inlined_call_operand.vmem [shape: f32[1,128], index: 11, kind: input, shape index: {}]   ;;  %s2972_s12 = inlined_call_operand.vmem [shape: bf16[128,5], index: 12, kind: input, shape index: {}]   ;;  %s2973_s13 = inlined_call_operand.vmem [shape: f32[1,5], index: 13, kind: input, shape index: {}]   ;;  %s2974_s14 = inlined_call_operand.hbm [shape: f32[2,1,5], index: 14, kind: output, shape index: {}]  }
   0x1   :  { %2975 = sst [smem:[#allocation5_spill]] %s2960_s0 }
   0x2   :  { %2976 = sst [smem:[#allocation6_spill]] %s2961_s1 }
   0x3   :  { %2977 = sst [smem:[#allocation7_spill]] %s2962_s2 }
   0x4   :  { %19 = vsyncpa [#allocation3], 0 }
   0x5   :  { %21 = vsyncpa [#allocation3 + $0x1], 0  ;;  %s2442_s29 = smov 0   ;;  %s2444_s30 = smov 0  }
   0x6   :  { %s2446_s15 = smov 0   ;;  %s2448_s16 = smov 0  }
   0x7 LB: > { %s2463_s17 = sadd.s32 4294967295, %s2361_s16   ;;  %s1916_s18 = sadd.s32 4294967294, %s2361_s16   ;;  %s2361_s16 = sphi %s2448_s16, %s2986_s16   ;;  %s2357_s15 = sphi %s2446_s15, %s2985_s15   ;;  %s2353_s30 = sphi %s2444_s30, %s2984_s30   ;;  %s2349_s29 = sphi %s2442_s29, %s2983_s29  }
   0x8   : > { %s2467_s19 = sadd.s32 1, %s2361_s16   ;;  %s333_s20 = sadd.s32 1, %s2357_s15 }
   0x9   : > { %s330_s21 = ssub.s32 %s2361_s16, %s2467_s19  ;;  %p343_p0 = scmp.ne.s32.totalorder %s2357_s15, %s2353_s30 }
   0xa   : > { %p331_p1 = scmp.eq.s32.totalorder %s330_s21, 0  ;;  %p344_p2 = scmp.eq.s32.totalorder %s2463_s17, 1 }
   0xb   : > { %p349_p3 = scmp.ne.s32.totalorder %s2353_s30, %s2349_s29  ;;  %p350_p4 = scmp.eq.s32.totalorder %s1916_s18, 1 }
   0xc   : > { %s2478_s22 = scalar_select %p331_p1, %s2357_s15, %s333_s20  }
   0xd   : > { %p2480_p5 = por %p344_p2, %p343_p0  ;;  %p2484_p6 = por %p350_p4, %p349_p3 }
   0xe   : > { %p1919_p7 = scmp.ge.s32.totalorder %s2361_s16, 1  ;;  %p415_p8 = scmp.lt.s32.totalorder %s2361_s16, 3 }
  0x10   : > { %p416_p9 = pnand %p1919_p7, %p415_p8 }
  0x11   : > { %p460_p10 = scmp.lt.s32.totalorder (!%p416_p9), %s2463_s17, 1  ;;  %vm468_vm0 = vcmask (!%p416_p9), 261120   ;;  %s2980_s0 = sld [smem:[#allocation5_spill]] (!%p416_p9)  ;;  %v558_v7 = vlaneseq (!%p416_p9)  ;;  %vm574_vm2 = vcmask (!%p416_p9), 130112   ;;  %vm609_vm5 = vcmask (!%p416_p9), 130048  }
  0x12   : > { %419 = sbr.rel (%p416_p9) target bundleno = 3625 (0xe29), region = 76  ;;  %vm2222_vm1 = vmpackc.low (!%p416_p9), %vm468_vm0, %vm468_vm0  ;;  %s2981_s2 = sld [smem:[#allocation7_spill]] (!%p416_p9) }
  0x13   : > { %v2505_v8 = vand.u32 (!%p416_p9), 127, %v558_v7  ;;  %v559_v10 = vshrl.u32 (!%p416_p9), %v558_v7, 7  ;;  %s2982_s1 = sld [smem:[#allocation6_spill]] (!%p416_p9)  ;;  %s2366_s21 = smov (!%p416_p9), [#allocation2]  }
  0x15   : > { %v569_v11 = vadd.s32 (!%p416_p9), 4294967288, %v2505_v8  ;;  %v567_v12 = vsub.s32 (!%p416_p9), %v2505_v8, %v559_v10  ;;  %v560_v19 = vadd.s32 (!%p416_p9), 8, %v559_v10  ;;  %vm597_vm4 = vcmp.eq.s32.totalorder (!%p416_p9), %v559_v10, %v2505_v8 }
  0x17   : > { %v572_v13 = vsub.s32 (!%p416_p9), %v569_v11, %v559_v10  ;;  %vm598_vm3 = vcmp.eq.s32.totalorder (!%p416_p9), %v560_v19, %v2505_v8 }
  0x19   : > { %s461_s25 = scalar_select %p460_p10, %s2463_s17, 1 }
  0x1b   : > { %s1998_s26 = sshll.u32 %s461_s25, 4  ;;  %s1995_s25 = sshll.u32 %s2463_s17, 4 }
  0x1c   : > { %s464_s18 = scalar_lea.vmem %s2980_s0, %s1998_s26 }
  0x1d   : > { %v466_v0 = vld [vmem:[%s464_s18] sm:$0xff]  ;;  %v467_v1 = vld [vmem:[%s464_s18 + $0x8] sm:$0xff]  ;;  %s458_s18 = sand.u32 1, %s2353_s30  }
  0x1e   : > { %v2497_v2 = vpack.c.bf16 %v467_v1, %v466_v0  ;;  %2060 = vmatprep.mubr.msk.f32.mxu0 %vm468_vm0, %v466_v0  ;;  %v550_v3 = vmul.f32 %v466_v0, %v466_v0  ;;  %v551_v4 = vmul.f32 %v467_v1, %v467_v1  ;;  %s459_s26 = scalar_lea.vmem [#allocation2], %s458_s18  ;;  %s1849_s17 = scalar_lea.sflag [#allocation3], %s458_s18 }
  0x1f   : > { %s1861_s0 = sshll.u32 %s459_s26, 4  ;;  %s2920_s0 = int_to_ptr.vmem [resolvable:$true] %s1861_s0 }
  0x20   : > { %2223 = vmatprep.subr.msk.bf16.mxu0 %vm2222_vm1, %v2497_v2  ;;  %v552_v5 = vsel %vm468_vm0, %v550_v3, 0.0  ;;  %v555_v6 = vsel %vm468_vm0, %v551_v4, 0.0  ;;  %s2299_s20 = scalar_lea.vmem %s2920_s0, 16 }
  0x21   : > { %2226 = vmatpush3.bf16.xpose.msk.msra.mxu0 %vm2222_vm1, %v2497_v2  ;;  %553 = vadd.xlane.f32.xlu0 %v552_v5  ;;  %p2300_p11 = scmp.ne.s32.totalorder %s2920_s0, %s2299_s20 }
  0x23   : > { %p2301_p12 = pnand %p2300_p11, %p2480_p5 }
  0x25   : > { %556 = vadd.xlane.f32.xlu0 %v555_v6  ;;  %p2302_p13 = pneg %p2301_p12 }
  0x28   : > { %2061 = vmatmul.mubr.msk.f32.vlgmr.msra.gmra.mrb[0].mxu0 %vm468_vm0, %v467_v1 }
  0xae   : > { %v554_v9 = vpop.xlane.xlu0 %553 }
  0xaf   : > { %v568_v15 = vrot.slane %v554_v9, %v567_v12 }
  0xb2   : > { %v557_v14 = vpop.xlane.xlu0 %556 }
  0xb3   : > { %v573_v16 = vrot.slane %v557_v14, %v572_v13 }
  0xb5   : > { %v575_v17 = vsel %vm574_vm2, %v573_v16, %v568_v15 }
  0xb6   : > { %v590_v20 = vadd.f32 %v575_v17, %v557_v14  ;;  %v589_v23 = vadd.f32 %v575_v17, %v554_v9 }
  0xfb   : > { %v2062_v18 = vpop.f32.mrb[0].mxu0 }
  0xfc   : > { %v592_v21 = vmul.f32 2.0, %v2062_v18  ;;  %v541_v22 = vpop.f32.mrb[1].mxu0 }
  0xfd   : > { %v591_v24 = vmul.f32 2.0, %v541_v22 }
  0xfe   : > { %v594_v25 = vsub.f32 %v590_v20, %v592_v21 }
  0xff   : > { %v593_v26 = vsub.f32 %v589_v23, %v591_v24 }
 0x100   : > { %v596_v27 = vmax.f32 %v594_v25, 0.0 }
 0x101   : > { %v595_v28 = vmax.f32 %v593_v26, 0.0 }
 0x102   : > { %v600_v29 = vsel %vm598_vm3, 1e+30, %v596_v27 }
 0x103   : > { %v604_v30 = vshra.s32 %v600_v29, 4  ;;  %v599_v31 = vsel %vm597_vm4, 1e+30, %v595_v28 }
 0x104   : > { %v603_v32 = vshra.s32 %v599_v31, 4 }
 0x105   : > { %v606_v33 = vshll.u32 %v604_v30, 4 }
 0x106   : > { %v605_v34 = vshll.u32 %v603_v32, 4 }
 0x107   : > { %v608_v35 = vor.u32 %v606_v33, %v2505_v8 }
 0x108   : > { %v607_v36 = vor.u32 %v605_v34, %v2505_v8 }
 0x109   : > { %v625_v38 = vsel %vm609_vm5, %v608_v35, 2147483647 }
 0x10a   : > { %v610_v37 = vsel %vm609_vm5, %v607_v36, 2147483647  ;;  %v627_v41 = vshra.s32 %v625_v38, 16  ;;  %v626_v46 = vand.u32 65535, %v625_v38 }
 0x10b   : > { %v612_v39 = vshra.s32 %v610_v37, 16  ;;  %v611_v43 = vand.u32 65535, %v610_v37 }
 0x10c   : > { %v629_v42 = vcvt.s32.f32 %v627_v41  ;;  %v628_v49 = vcvt.s32.f32 %v626_v46 }
 0x10d   : > { %v614_v40 = vcvt.s32.f32 %v612_v39  ;;  %v613_v45 = vcvt.s32.f32 %v611_v43 }
 0x10f   : > { %615 = vmin.xlane.f32.xlu1 %v614_v40 }
 0x113   : > { %630 = vmin.xlane.f32.xlu1 %v629_v42 }
 0x19c   : > { %v616_v44 = vpop.xlane.xlu1 %615 }
 0x19d   : > { %vm617_vm6 = vcmp.eq.f32.partialorder %v614_v40, %v616_v44  ;;  %v622_v51 = vcvt.f32.s32 %v616_v44 }
 0x19e   : > { %v618_v47 = vsel %vm617_vm6, %v613_v45, inf }
 0x19f   : > { %619 = vmin.xlane.f32.xlu0 %v618_v47  ;;  %v623_v53 = vshll.u32 %v622_v51, 16 }
 0x1a0   : > { %v631_v48 = vpop.xlane.xlu1 %630 }
 0x1a1   : > { %vm632_vm7 = vcmp.eq.f32.partialorder %v629_v42, %v631_v48  ;;  %v637_v54 = vcvt.f32.s32 %v631_v48 }
 0x1a2   : > { %v633_v50 = vsel %vm632_vm7, %v628_v49, inf }
 0x1a3   : > { %634 = vmin.xlane.f32.xlu1 %v633_v50  ;;  %v638_v58 = vshll.u32 %v637_v54, 16 }
 0x22c   : > { %v620_v52 = vpop.xlane.xlu0 %619 }
 0x22d   : > { %v621_v55 = vcvt.f32.s32 %v620_v52 }
 0x22f   : > { %v2515_v56 = vadd.s32 %v623_v53, %v621_v55 }
 0x230   : > { %v635_v57 = vpop.xlane.xlu1 %634 }
 0x231   : > { %v640_v59 = vand.u32 15, %v2515_v56  ;;  %v636_v60 = vcvt.f32.s32 %v635_v57 }
 0x233   : > { %v2518_v61 = vadd.s32 %v638_v58, %v636_v60  ;;  %vm642_vm8 = vcmp.eq.s32.totalorder %v2505_v8, %v640_v59 }
 0x234   : > { %v644_v62 = vsel %vm642_vm8, 2147483647, %v607_v36 }
 0x235   : > { %v641_v63 = vand.u32 15, %v2518_v61  ;;  %v646_v0 = vsel %vm609_vm5, %v644_v62, 2147483647 }
 0x236   : > { %v648_v1 = vshra.s32 %v646_v0, 16  ;;  %v647_v9 = vand.u32 65535, %v646_v0 }
 0x237   : > { %vm643_vm9 = vcmp.eq.s32.totalorder %v2505_v8, %v641_v63 }
 0x238   : > { %v650_v3 = vcvt.s32.f32 %v648_v1  ;;  %v645_v4 = vsel %vm643_vm9, 2147483647, %v608_v35  ;;  %v649_v11 = vcvt.s32.f32 %v647_v9 }
 0x239   : > { %v661_v5 = vsel %vm609_vm5, %v645_v4, 2147483647 }
 0x23a   : > { %651 = vmin.xlane.f32.xlu0 %v650_v3  ;;  %v663_v6 = vshra.s32 %v661_v5, 16  ;;  %v662_v12 = vand.u32 65535, %v661_v5 }
 0x23c   : > { %v665_v7 = vcvt.s32.f32 %v663_v6  ;;  %v664_v15 = vcvt.s32.f32 %v662_v12 }
 0x23e   : > { %666 = vmin.xlane.f32.xlu1 %v665_v7 }
 0x2c7   : > { %v652_v10 = vpop.xlane.xlu0 %651 }
 0x2c8   : > { %vm653_vm10 = vcmp.eq.f32.partialorder %v650_v3, %v652_v10  ;;  %v658_v17 = vcvt.f32.s32 %v652_v10 }
 0x2c9   : > { %v654_v13 = vsel %vm653_vm10, %v649_v11, inf }
 0x2ca   : > { %655 = vmin.xlane.f32.xlu0 %v654_v13  ;;  %v659_v19 = vshll.u32 %v658_v17, 16 }
 0x2cb   : > { %v667_v14 = vpop.xlane.xlu1 %666 }
 0x2cc   : > { %vm668_vm11 = vcmp.eq.f32.partialorder %v665_v7, %v667_v14  ;;  %v673_v20 = vcvt.f32.s32 %v667_v14 }
 0x2cd   : > { %v669_v16 = vsel %vm668_vm11, %v664_v15, inf }
 0x2ce   : > { %670 = vmin.xlane.f32.xlu1 %v669_v16  ;;  %v674_v24 = vshll.u32 %v673_v20, 16 }
 0x357   : > { %v656_v18 = vpop.xlane.xlu0 %655 }
 0x358   : > { %v657_v21 = vcvt.f32.s32 %v656_v18 }
 0x35a   : > { %v2529_v22 = vadd.s32 %v659_v19, %v657_v21 }
 0x35b   : > { %v671_v23 = vpop.xlane.xlu1 %670 }
 0x35c   : > { %v676_v25 = vand.u32 15, %v2529_v22  ;;  %v672_v26 = vcvt.f32.s32 %v671_v23 }
 0x35e   : > { %v2532_v27 = vadd.s32 %v674_v24, %v672_v26  ;;  %vm678_vm12 = vcmp.eq.s32.totalorder %v2505_v8, %v676_v25 }
 0x35f   : > { %v680_v28 = vsel %vm678_vm12, 2147483647, %v644_v62 }
 0x360   : > { %v677_v29 = vand.u32 15, %v2532_v27  ;;  %v682_v30 = vsel %vm609_vm5, %v680_v28, 2147483647 }
 0x361   : > { %v684_v31 = vshra.s32 %v682_v30, 16  ;;  %v683_v37 = vand.u32 65535, %v682_v30 }
 0x362   : > { %vm679_vm13 = vcmp.eq.s32.totalorder %v2505_v8, %v677_v29 }
 0x363   : > { %v686_v32 = vcvt.s32.f32 %v684_v31  ;;  %v681_v33 = vsel %vm679_vm13, 2147483647, %v645_v4  ;;  %v685_v39 = vcvt.s32.f32 %v683_v37 }
 0x364   : > { %v697_v34 = vsel %vm609_vm5, %v681_v33, 2147483647 }
 0x365   : > { %687 = vmin.xlane.f32.xlu0 %v686_v32  ;;  %v699_v35 = vshra.s32 %v697_v34, 16  ;;  %v698_v40 = vand.u32 65535, %v697_v34 }
 0x367   : > { %v701_v36 = vcvt.s32.f32 %v699_v35  ;;  %v700_v43 = vcvt.s32.f32 %v698_v40 }
 0x369   : > { %702 = vmin.xlane.f32.xlu1 %v701_v36 }
 0x3f2   : > { %v688_v38 = vpop.xlane.xlu0 %687 }
 0x3f3   : > { %vm689_vm14 = vcmp.eq.f32.partialorder %v686_v32, %v688_v38  ;;  %v694_v45 = vcvt.f32.s32 %v688_v38 }
 0x3f4   : > { %v690_v41 = vsel %vm689_vm14, %v685_v39, inf  ;;  %vm2364_vm14 = vmmov 0  }
 0x3f5   : > { %691 = vmin.xlane.f32.xlu0 %v690_v41  ;;  %v695_v47 = vshll.u32 %v694_v45, 16 }
 0x3f6   : > { %v703_v42 = vpop.xlane.xlu1 %702 }
 0x3f7   : > { %vm704_vm15 = vcmp.eq.f32.partialorder %v701_v36, %v703_v42  ;;  %v709_v48 = vcvt.f32.s32 %v703_v42 }
 0x3f8   : > { %v705_v44 = vsel %vm704_vm15, %v700_v43, inf }
 0x3f9   : > { %706 = vmin.xlane.f32.xlu1 %v705_v44  ;;  %v710_v52 = vshll.u32 %v709_v48, 16 }
 0x482   : > { %v692_v46 = vpop.xlane.xlu0 %691 }
 0x483   : > { %v693_v49 = vcvt.f32.s32 %v692_v46 }
 0x485   : > { %v2543_v50 = vadd.s32 %v695_v47, %v693_v49 }
 0x486   : > { %v707_v51 = vpop.xlane.xlu1 %706 }
 0x487   : > { %v712_v53 = vand.u32 15, %v2543_v50  ;;  %v708_v54 = vcvt.f32.s32 %v707_v51 }
 0x489   : > { %v2546_v55 = vadd.s32 %v710_v52, %v708_v54  ;;  %vm714_vm1 = vcmp.eq.s32.totalorder %v2505_v8, %v712_v53 }
 0x48a   : > { %v716_v57 = vsel %vm714_vm1, 2147483647, %v680_v28 }
 0x48b   : > { %v713_v58 = vand.u32 15, %v2546_v55  ;;  %v718_v60 = vsel %vm609_vm5, %v716_v57, 2147483647 }
 0x48c   : > { %v720_v62 = vshra.s32 %v718_v60, 16  ;;  %v719_v6 = vand.u32 65535, %v718_v60 }
 0x48d   : > { %vm715_vm2 = vcmp.eq.s32.totalorder %v2505_v8, %v713_v58 }
 0x48e   : > { %v722_v0 = vcvt.s32.f32 %v720_v62  ;;  %v717_v1 = vsel %vm715_vm2, 2147483647, %v681_v33  ;;  %v721_v9 = vcvt.s32.f32 %v719_v6 }
 0x48f   : > { %v733_v3 = vsel %vm609_vm5, %v717_v1, 2147483647 }
 0x490   : > { %723 = vmin.xlane.f32.xlu0 %v722_v0  ;;  %v735_v4 = vshra.s32 %v733_v3, 16  ;;  %v734_v10 = vand.u32 65535, %v733_v3 }
 0x492   : > { %v737_v5 = vcvt.s32.f32 %v735_v4  ;;  %v736_v13 = vcvt.s32.f32 %v734_v10 }
 0x494   : > { %738 = vmin.xlane.f32.xlu1 %v737_v5 }
 0x51d   : > { %v724_v7 = vpop.xlane.xlu0 %723 }
 0x51e   : > { %vm725_vm3 = vcmp.eq.f32.partialorder %v722_v0, %v724_v7  ;;  %v730_v15 = vcvt.f32.s32 %v724_v7 }
 0x51f   : > { %v726_v11 = vsel %vm725_vm3, %v721_v9, inf }
 0x520   : > { %727 = vmin.xlane.f32.xlu0 %v726_v11  ;;  %v731_v17 = vshll.u32 %v730_v15, 16 }
 0x521   : > { %v739_v12 = vpop.xlane.xlu1 %738 }
 0x522   : > { %vm740_vm4 = vcmp.eq.f32.partialorder %v737_v5, %v739_v12  ;;  %v745_v18 = vcvt.f32.s32 %v739_v12 }
 0x523   : > { %v741_v14 = vsel %vm740_vm4, %v736_v13, inf }
 0x524   : > { %742 = vmin.xlane.f32.xlu1 %v741_v14  ;;  %v746_v23 = vshll.u32 %v745_v18, 16 }
 0x5ad   : > { %v728_v16 = vpop.xlane.xlu0 %727 }
 0x5ae   : > { %v729_v19 = vcvt.f32.s32 %v728_v16 }
 0x5b0   : > { %v2557_v20 = vadd.s32 %v731_v17, %v729_v19 }
 0x5b1   : > { %v743_v21 = vpop.xlane.xlu1 %742 }
 0x5b2   : > { %v748_v24 = vand.u32 15, %v2557_v20  ;;  %v744_v26 = vcvt.f32.s32 %v743_v21 }
 0x5b4   : > { %v2560_v28 = vadd.s32 %v746_v23, %v744_v26  ;;  %vm750_vm6 = vcmp.eq.s32.totalorder %v2505_v8, %v748_v24  ;;  %v2273_v23 = vld [vmem:[%s2981_s2] sm:$0xff]   ;;  %v2363_v26 = vmov 0.0  }
 0x5b5   : > { %v752_v30 = vsel %vm750_vm6, 2147483647, %v716_v57  ;;  %2071 = vmatprep.subr.bf16.mxu0 %v2363_v26  ;;  %2075 = vmatprep.mubr.msk.bf16.mxu0 %vm2364_vm14, %v2363_v26 }
 0x5b6   : > { %v749_v31 = vand.u32 15, %v2560_v28  ;;  %v754_v32 = vsel %vm609_vm5, %v752_v30, 2147483647  ;;  %2072 = vmatpush3.bf16.msra.mxu0 %v2273_v23  ;;  %2063 = vmatprep.subr.bf16.mxu1 %v2363_v26 }
 0x5b7   : > { %v756_v33 = vshra.s32 %v754_v32, 16  ;;  %v755_v39 = vand.u32 65535, %v754_v32  ;;  %2073 = vmatprep.subr.bf16.mxu0 %v2363_v26  ;;  %2067 = vmatprep.mubr.msk.bf16.mxu1 %vm2364_vm14, %v2363_v26 }
 0x5b8   : > { %vm751_vm7 = vcmp.eq.s32.totalorder %v2505_v8, %v749_v31 }
 0x5b9   : > { %v758_v34 = vcvt.s32.f32 %v756_v33  ;;  %v753_v35 = vsel %vm751_vm7, 2147483647, %v717_v1  ;;  %v757_v41 = vcvt.s32.f32 %v755_v39 }
 0x5ba   : > { %v769_v36 = vsel %vm609_vm5, %v753_v35, 2147483647 }
 0x5bb   : > { %759 = vmin.xlane.f32.xlu0 %v758_v34  ;;  %v771_v37 = vshra.s32 %v769_v36, 16  ;;  %v770_v42 = vand.u32 65535, %v769_v36 }
 0x5bd   : > { %v773_v38 = vcvt.s32.f32 %v771_v37  ;;  %v772_v45 = vcvt.s32.f32 %v770_v42 }
 0x5bf   : > { %774 = vmin.xlane.f32.xlu1 %v773_v38 }
 0x648   : > { %v760_v40 = vpop.xlane.xlu0 %759 }
 0x649   : > { %vm761_vm8 = vcmp.eq.f32.partialorder %v758_v34, %v760_v40  ;;  %v766_v47 = vcvt.f32.s32 %v760_v40 }
 0x64a   : > { %v762_v43 = vsel %vm761_vm8, %v757_v41, inf }
 0x64b   : > { %763 = vmin.xlane.f32.xlu0 %v762_v43  ;;  %v767_v49 = vshll.u32 %v766_v47, 16 }
 0x64c   : > { %v775_v44 = vpop.xlane.xlu1 %774 }
 0x64d   : > { %vm776_vm9 = vcmp.eq.f32.partialorder %v773_v38, %v775_v44  ;;  %v781_v51 = vcvt.f32.s32 %v775_v44 }
 0x64e   : > { %v777_v46 = vsel %vm776_vm9, %v772_v45, inf }
 0x64f   : > { %778 = vmin.xlane.f32.xlu1 %v777_v46  ;;  %v782_v60 = vshll.u32 %v781_v51, 16 }
 0x6d8   : > { %v764_v48 = vpop.xlane.xlu0 %763 }
 0x6d9   : > { %v765_v52 = vcvt.f32.s32 %v764_v48 }
 0x6db   : > { %v2571_v54 = vadd.s32 %v767_v49, %v765_v52 }
 0x6dc   : > { %v779_v57 = vpop.xlane.xlu1 %778 }
 0x6dd   : > { %v784_v62 = vand.u32 15, %v2571_v54  ;;  %v780_v0 = vcvt.f32.s32 %v779_v57  ;;  %v2365_v57 = vmov 0  }
 0x6de   : > { %2272 = vset.pattern.permute.xlu1 %v2365_v57  ;;  %2271 = vset.pattern.permute.xlu0 %v2365_v57 }
 0x6df   : > { %v2574_v1 = vadd.s32 %v782_v60, %v780_v0  ;;  %vm786_vm10 = vcmp.eq.s32.totalorder %v2505_v8, %v784_v62 }
 0x6e0   : > { %v788_v3 = vsel %vm786_vm10, 2147483647, %v752_v30  ;;  %v2274_v30 = vld [vmem:[%s2981_s2 + $0x8] sm:$0xff]   ;;  %s2303_s2 = sshll.u32 %s2366_s21, 4  ;;  %s2304_s2 = int_to_ptr.vmem [resolvable:$false] %s2303_s2 }
 0x6e1   : > { %v785_v4 = vand.u32 15, %v2574_v1  ;;  %v790_v5 = vsel %vm609_vm5, %v788_v3, 2147483647  ;;  %2074 = vmatpush3.bf16.msra.mxu0 %v2274_v30  ;;  %v2277_v1 = vld [vmem:[%s2964_s4] sm:$0xff]   ;;  %s2305_s27 = scalar_lea.vmem %s2304_s2, 32  ;;  %p2306_p0 = scmp.lt.s32.totalorder %s2920_s0, %s2304_s2 }
 0x6e2   : > { %v792_v6 = vshra.s32 %v790_v5, 16  ;;  %v791_v13 = vand.u32 65535, %v790_v5  ;;  %2079 = vmatprep.subr.bf16.mxu0 %v2363_v26  ;;  %p2307_p1 = scmp.lt.s32.totalorder %s2305_s27, %s2299_s20 }
 0x6e3   : > { %vm787_vm11 = vcmp.eq.s32.totalorder %v2505_v8, %v785_v4 }
 0x6e4   : > { %v794_v7 = vcvt.s32.f32 %v792_v6  ;;  %v789_v9 = vsel %vm787_vm11, 2147483647, %v753_v35  ;;  %v793_v15 = vcvt.s32.f32 %v791_v13  ;;  %2076 = vmatmul.mubr.msk.bf16.vlgmr.msra.gmra.mrb[4].mxu0 %vm468_vm0, %v2497_v2  ;;  %p2308_p2 = por %p2307_p1, %p2306_p0 }
 0x6e5   : > { %v805_v10 = vsel %vm609_vm5, %v789_v9, 2147483647  ;;  %2081 = vmatprep.mubr.msk.bf16.mxu0 %vm2364_vm14, %v2363_v26 }
 0x6e6   : > { %795 = vmin.xlane.f32.xlu0 %v794_v7  ;;  %v807_v11 = vshra.s32 %v805_v10, 16  ;;  %v806_v16 = vand.u32 65535, %v805_v10  ;;  %p2309_p3 = pnand %p2308_p2, %p2302_p13 }
 0x6e8   : > { %v809_v12 = vcvt.s32.f32 %v807_v11  ;;  %v808_v19 = vcvt.s32.f32 %v806_v16  ;;  %v2275_v11 = vld [vmem:[%s2982_s1] sm:$0xff]  }
 0x6e9   : > { %2064 = vmatpush3.bf16.msra.mxu1 %v2275_v11 }
 0x6ea   : > { %810 = vmin.xlane.f32.xlu1 %v809_v12  ;;  %2065 = vmatprep.subr.bf16.mxu1 %v2363_v26 }
 0x773   : > { %v796_v14 = vpop.xlane.xlu0 %795 }
 0x774   : > { %vm797_vm12 = vcmp.eq.f32.partialorder %v794_v7, %v796_v14  ;;  %v802_v32 = vcvt.f32.s32 %v796_v14  ;;  %v2276_v14 = vld [vmem:[%s2982_s1 + $0x8] sm:$0xff]   ;;  %s2918_s1 = scalar_lea.hbm %s2974_s14, %s1995_s25 }
 0x775   : > { %v798_v17 = vsel %vm797_vm12, %v793_v15, inf  ;;  %2066 = vmatpush3.bf16.msra.mxu1 %v2276_v14 }
 0x776   : > { %799 = vmin.xlane.f32.xlu0 %v798_v17  ;;  %v803_v34 = vshll.u32 %v802_v32, 16  ;;  %2227 = vmatprep.subr.bf16.mxu1 %v2363_v26 }
 0x777   : > { %v811_v18 = vpop.xlane.xlu1 %810 }
 0x778   : > { %vm812_vm13 = vcmp.eq.f32.partialorder %v809_v12, %v811_v18  ;;  %v817_v35 = vcvt.f32.s32 %v811_v18  ;;  %2068 = vmatmul.mubr.msk.bf16.vlgmr.msra.gmra.mrb[0].mxu1 %vm468_vm0, %v2497_v2 }
 0x779   : > { %v813_v21 = vsel %vm812_vm13, %v808_v19, inf  ;;  %2089 = vmatprep.mubr.msk.bf16.mxu1 %vm2364_vm14, %v2363_v26 }
 0x77a   : > { %814 = vmin.xlane.f32.xlu1 %v813_v21  ;;  %v818_v39 = vshll.u32 %v817_v35, 16  ;;  %v2278_v21 = vld [vmem:[%s2964_s4 + $0x8] sm:$0xff]  }
 0x7b7   : > { %v1067_v12 = vpop.f32.mrb[4].mxu0 }
 0x7b8   : > { %v2077_v13 = vpop.f32.mrb[5].mxu0 }
 0x7b9   : > { %v1070_v15 = vpop.f32.mrb[6].mxu0 }
 0x7ba   : > { %v1074_v16 = vpack.c.bf16 %v1070_v15, %v1067_v12  ;;  %v2078_v17 = vpop.f32.mrb[7].mxu0  ;;  %v1940_v12 = vld [vmem:[%s2963_s3] ss:$0 sm:$0xff] }
 0x7bc   : > { %2080 = vmatpush3.bf16.msra.mxu0 %v1074_v16  ;;  %2228 = vmatpush3.bf16.msra.mxu1 %v1074_v16 }
 0x7bd   : > { %2109 = vmatprep.subr.bf16.mxu0 %v2363_v26  ;;  %2145 = vmatprep.subr.bf16.mxu1 %v2363_v26 }
 0x803   : > { %v800_v33 = vpop.xlane.xlu0 %799 }
 0x804   : > { %v801_v36 = vcvt.f32.s32 %v800_v33 }
 0x806   : > { %v804_v37 = vadd.s32 %v803_v34, %v801_v36 }
 0x807   : > { %v815_v38 = vpop.xlane.xlu1 %814 }
 0x808   : > { %v820_v40 = vand.u32 15, %v804_v37  ;;  %v816_v41 = vcvt.f32.s32 %v815_v38 }
 0x80a   : > { %v819_v42 = vadd.s32 %v818_v39, %v816_v41  ;;  %vm822_vm15 = vcmp.eq.s32.totalorder %v2505_v8, %v820_v40 }
 0x80b   : > { %v824_v43 = vsel %vm822_vm15, 2147483647, %v788_v3 }
 0x80c   : > { %v821_v44 = vand.u32 15, %v819_v42  ;;  %v826_v45 = vsel %vm609_vm5, %v824_v43, 2147483647 }
 0x80d   : > { %v828_v46 = vshra.s32 %v826_v45, 16  ;;  %v827_v60 = vand.u32 65535, %v826_v45 }
 0x80e   : > { %vm823_vm1 = vcmp.eq.s32.totalorder %v2505_v8, %v821_v44 }
 0x80f   : > { %v830_v47 = vcvt.s32.f32 %v828_v46  ;;  %v825_v48 = vsel %vm823_vm1, 2147483647, %v789_v9  ;;  %v829_v3 = vcvt.s32.f32 %v827_v60 }
 0x810   : > { %v841_v49 = vsel %vm609_vm5, %v825_v48, 2147483647 }
 0x811   : > { %831 = vmin.xlane.f32.xlu0 %v830_v47  ;;  %v843_v51 = vshra.s32 %v841_v49, 16  ;;  %v842_v5 = vand.u32 65535, %v841_v49 }
 0x813   : > { %v845_v52 = vcvt.s32.f32 %v843_v51  ;;  %v844_v10 = vcvt.s32.f32 %v842_v5  ;;  %v2280_v5 = vld [vmem:[%s2964_s4 + $0x18] sm:$0xff]  }
 0x815   : > { %846 = vmin.xlane.f32.xlu1 %v845_v52 }
 0x89e   : > { %v832_v0 = vpop.xlane.xlu0 %831 }
 0x89f   : > { %vm833_vm2 = vcmp.eq.f32.partialorder %v830_v47, %v832_v0  ;;  %v838_v56 = vcvt.f32.s32 %v832_v0  ;;  %v2279_v0 = vld [vmem:[%s2964_s4 + $0x10] sm:$0xff]  }
 0x8a0   : > { %v834_v6 = vsel %vm833_vm2, %v829_v3, inf }
 0x8a1   : > { %835 = vmin.xlane.f32.xlu0 %v834_v6  ;;  %v839_v61 = vshll.u32 %v838_v56, 16 }
 0x8a2   : > { %v847_v7 = vpop.xlane.xlu1 %846 }
 0x8a3   : > { %vm848_vm3 = vcmp.eq.f32.partialorder %v845_v52, %v847_v7  ;;  %v1010_v52 = vpop.f32.mrb[0].mxu1 }
 0x8a4   : > { %v849_v9 = vsel %vm848_vm3, %v844_v10, inf  ;;  %v2069_v57 = vpop.f32.mrb[1].mxu1  ;;  %v2709_v13 = vadd.f32 %v1940_v12, %v1010_v52 }
 0x8a5   : > { %850 = vmin.xlane.f32.xlu1 %v849_v9  ;;  %v1013_v60 = vpop.f32.mrb[2].mxu1 }
 0x8a6   : > { %v2070_v3 = vpop.f32.mrb[3].mxu1  ;;  %v2711_v14 = vadd.f32 %v1940_v12, %v1013_v60 }
 0x8b6   : > { %862 = vperm.xlu1 %2272, %v641_v63   ;;  %v853_v63 = vcvt.f32.s32 %v847_v7 }
 0x8b7   : > { %859 = vperm.xlu0 %2271, %v640_v59  }
 0x8ba   : > { %865 = vperm.xlu1 %2272, %v676_v25  }
 0x8bb   : > { %886 = vperm.xlu0 %2271, %v785_v4  }
 0x8be   : > { %868 = vperm.xlu1 %2272, %v677_v29   ;;  %v854_v29 = vshll.u32 %v853_v63, 16 }
 0x8bf   : > { %892 = vperm.xlu0 %2271, %v821_v44  }
 0x8c2   : > { %871 = vperm.xlu1 %2272, %v712_v53  }
 0x8c6   : > { %874 = vperm.xlu1 %2272, %v713_v58  }
 0x8ca   : > { %877 = vperm.xlu1 %2272, %v748_v24  }
 0x8ce   : > { %880 = vperm.xlu1 %2272, %v749_v31  }
 0x8d2   : > { %883 = vperm.xlu1 %2272, %v784_v62  }
 0x8d6   : > { %889 = vperm.xlu1 %2272, %v820_v40  }
 0x92e   : > { %v836_v59 = vpop.xlane.xlu0 %835 }
 0x92f   : > { %v837_v22 = vcvt.f32.s32 %v836_v59 }
 0x931   : > { %v840_v25 = vadd.s32 %v839_v61, %v837_v22 }
 0x932   : > { %v851_v27 = vpop.xlane.xlu1 %850 }
 0x933   : > { %v856_v50 = vand.u32 15, %v840_v25  ;;  %v852_v53 = vcvt.f32.s32 %v851_v27 }
 0x935   : > { %v855_v55 = vadd.s32 %v854_v29, %v852_v53  ;;  %895 = vperm.xlu1 %2272, %v856_v50  }
 0x936   : > { %v863_v58 = vpop.permute.xlu1 %862  ;;  %v860_v20 = vpop.permute.xlu0 %859 }
 0x937   : > { %v857_v24 = vand.u32 15, %v855_v55  ;;  %vm901_vm4 = vcmp.eq.s32.totalorder %v2505_v8, %v863_v58  ;;  %vm900_vm6 = vcmp.eq.s32.totalorder %v2505_v8, %v860_v20  ;;  %v2281_v58 = vld [vmem:[%s2966_s6] sm:$0xff]  }
 0x938   : > { %v1927_v28 = vsel %vm901_vm4, 1.0, %v2363_v26  ;;  %v1926_v31 = vsel %vm900_vm6, 1.0, %v2363_v26 }
 0x939   : > { %v942_v54 = vpack.c.bf16 %v1927_v28, %v1926_v31  ;;  %898 = vperm.xlu0 %2271, %v857_v24   ;;  %v2282_v28 = vld [vmem:[%s2966_s6 + $0x8] sm:$0xff]  }
 0x93a   : > { %v866_v62 = vpop.permute.xlu1 %865  ;;  %v887_v41 = vpop.permute.xlu0 %886 }
 0x93b   : > { %2082 = vmatmul.mubr.msk.bf16.vlgmr.msra.gmra.mrb[8].mxu0 %vm609_vm5, %v942_v54  ;;  %vm902_vm7 = vcmp.eq.s32.totalorder %v2505_v8, %v866_v62  ;;  %vm909_vm15 = vcmp.eq.s32.totalorder %v2505_v8, %v887_v41 }
 0x93c   : > { %2085 = vmatprep.mubr.msk.bf16.mxu0 %vm2364_vm14, %v2363_v26  ;;  %2110 = vmatpush3.bf16.msra.mxu0 %v2277_v1  ;;  %v1928_v18 = vsel %vm902_vm7, 1.0, %v2363_v26  ;;  %v1935_v44 = vsel %vm909_vm15, 1.0, %v2363_v26 }
 0x93d   : > { %2111 = vmatprep.subr.bf16.mxu0 %v2363_v26 }
 0x93e   : > { %v869_v4 = vpop.permute.xlu1 %868  ;;  %v893_v47 = vpop.permute.xlu0 %892 }
 0x93f   : > { %vm903_vm8 = vcmp.eq.s32.totalorder %v2505_v8, %v869_v4  ;;  %vm911_vm2 = vcmp.eq.s32.totalorder %v2505_v8, %v893_v47 }
 0x940   : > { %v1929_v19 = vsel %vm903_vm8, 1.0, %v2363_v26  ;;  %2112 = vmatpush3.bf16.msra.mxu0 %v2278_v21  ;;  %v1937_v49 = vsel %vm911_vm2, 1.0, %v2363_v26 }
 0x941   : > { %v943_v23 = vpack.c.bf16 %v1929_v19, %v1928_v18  ;;  %2113 = vmatprep.subr.bf16.mxu0 %v2363_v26 }
 0x942   : > { %v872_v30 = vpop.permute.xlu1 %871 }
 0x943   : > { %2086 = vmatmul.mubr.msk.bf16.gmra.mrb[12].mxu0 %vm609_vm5, %v943_v23  ;;  %vm904_vm9 = vcmp.eq.s32.totalorder %v2505_v8, %v872_v30 }
 0x944   : > { %2117 = vmatprep.mubr.msk.bf16.mxu0 %vm2364_vm14, %v2363_v26  ;;  %v1930_v33 = vsel %vm904_vm9, 1.0, %v2363_v26  ;;  %2114 = vmatpush3.bf16.msra.mxu0 %v2279_v0 }
 0x945   : > { %2115 = vmatprep.subr.bf16.mxu0 %v2363_v26 }
 0x946   : > { %v875_v32 = vpop.permute.xlu1 %874 }
 0x947   : > { %vm905_vm10 = vcmp.eq.s32.totalorder %v2505_v8, %v875_v32 }
 0x948   : > { %v1931_v34 = vsel %vm905_vm10, 1.0, %v2363_v26  ;;  %2116 = vmatpush3.bf16.msra.mxu0 %v2280_v5 }
 0x949   : > { %v944_v35 = vpack.c.bf16 %v1931_v34, %v1930_v33  ;;  %2181 = vmatprep.subr.bf16.mxu0 %v2363_v26 }
 0x94a   : > { %v878_v36 = vpop.permute.xlu1 %877 }
 0x94b   : > { %2090 = vmatmul.mubr.msk.bf16.vlgmr.msra.gmra.mrb[4].mxu1 %vm609_vm5, %v944_v35  ;;  %vm906_vm11 = vcmp.eq.s32.totalorder %v2505_v8, %v878_v36 }
 0x94c   : > { %2093 = vmatprep.mubr.msk.bf16.mxu1 %vm2364_vm14, %v2363_v26  ;;  %v1932_v38 = vsel %vm906_vm11, 1.0, %v2363_v26  ;;  %2146 = vmatpush3.bf16.msra.mxu1 %v2281_v58 }
 0x94d   : > { %2147 = vmatprep.subr.bf16.mxu1 %v2363_v26 }
 0x94e   : > { %v881_v37 = vpop.permute.xlu1 %880 }
 0x94f   : > { %vm907_vm12 = vcmp.eq.s32.totalorder %v2505_v8, %v881_v37 }
 0x950   : > { %v1933_v39 = vsel %vm907_vm12, 1.0, %v2363_v26  ;;  %2148 = vmatpush3.bf16.msra.mxu1 %v2282_v28 }
 0x951   : > { %v945_v40 = vpack.c.bf16 %v1933_v39, %v1932_v38  ;;  %2149 = vmatprep.subr.bf16.mxu1 %v2363_v26 }
 0x952   : > { %v884_v42 = vpop.permute.xlu1 %883 }
 0x953   : > { %vm908_vm13 = vcmp.eq.s32.totalorder %v2505_v8, %v884_v42  ;;  %2094 = vmatmul.mubr.msk.bf16.gmra.mrb[8].mxu1 %vm609_vm5, %v945_v40 }
 0x954   : > { %2097 = vmatprep.mubr.msk.bf16.mxu1 %vm2364_vm14, %v2363_v26  ;;  %v1934_v43 = vsel %vm908_vm13, 1.0, %v2363_v26 }
 0x955   : > { %v946_v46 = vpack.c.bf16 %v1935_v44, %v1934_v43 }
 0x956   : > { %v890_v45 = vpop.permute.xlu1 %889 }
 0x957   : > { %vm910_vm1 = vcmp.eq.s32.totalorder %v2505_v8, %v890_v45 }
 0x958   : > { %v1936_v48 = vsel %vm910_vm1, 1.0, %v2363_v26 }
 0x959   : > { %v947_v51 = vpack.c.bf16 %v1937_v49, %v1936_v48 }
 0x95b   : > { %2098 = vmatmul.mubr.msk.bf16.gmra.mrb[12].mxu1 %vm609_vm5, %v946_v46 }
 0x95c   : > { %2101 = vmatprep.mubr.msk.bf16.mxu1 %vm2364_vm14, %v2363_v26 }
 0x963   : > { %2102 = vmatmul.mubr.msk.bf16.gmra.mrb[16].mxu1 %vm609_vm5, %v947_v51 }
 0x964   : > { %2105 = vmatprep.mubr.msk.bf16.mxu1 %vm2364_vm14, %v2363_v26 }
 0x9b4   : > { %v896_v6 = vpop.permute.xlu1 %895 }
 0x9b5   : > { %vm912_vm3 = vcmp.eq.s32.totalorder %v2505_v8, %v896_v6 }
 0x9b6   : > { %v1938_v10 = vsel %vm912_vm3, 1.0, %v2363_v26 }
 0x9b8   : > { %v899_v7 = vpop.permute.xlu0 %898 }
 0x9b9   : > { %vm913_vm4 = vcmp.eq.s32.totalorder %v2505_v8, %v899_v7 }
 0x9ba   : > { %v1939_v9 = vsel %vm913_vm4, 1.0, %v2363_v26 }
 0x9bb   : > { %v948_v11 = vpack.c.bf16 %v1939_v9, %v1938_v10  ;;  %v2283_v10 = vld [vmem:[%s2966_s6 + $0x10] sm:$0xff]   ;;  %v2284_v9 = vld [vmem:[%s2966_s6 + $0x18] sm:$0xff]  }
 0x9bc   : > { %2150 = vmatpush3.bf16.msra.mxu1 %v2283_v10 }
 0x9bd   : > { %2106 = vmatmul.mubr.msk.bf16.gmra.mrb[20].mxu1 %vm609_vm5, %v948_v11  ;;  %vm1259_vm5 = vcmask 523264   ;;  %2151 = vmatprep.subr.bf16.mxu1 %v2363_v26 }
 0x9be   : > { %2153 = vmatprep.mubr.msk.bf16.mxu1 %vm2364_vm14, %v2363_v26 }
 0x9c0   : > { %2152 = vmatpush3.bf16.msra.mxu1 %v2284_v9 }
 0x9c1   : > { %2201 = vmatprep.subr.bf16.mxu1 %v2363_v26 }
 0xa0e   : > { %v1130_v15 = vpop.f32.mrb[8].mxu0 }
 0xa0f   : > { %v1185_v8 = vadd.f32 %v1130_v15, %v2709_v13  ;;  %v2083_v16 = vpop.f32.mrb[9].mxu0 }
 0xa10   : > { %v1133_v17 = vpop.f32.mrb[10].mxu0 }
 0xa11   : > { %v1186_v56 = vadd.f32 %v1133_v17, %v2711_v14  ;;  %v2084_v59 = vpop.f32.mrb[11].mxu0  ;;  %v1199_v61 = vmax.f32 %v1185_v8, 0.0 }
 0xa13   : > { %v1200_v63 = vmax.f32 %v1186_v56, 0.0 }
 0xa15   : > { %v1213_v22 = vpack.c.bf16 %v1200_v63, %v1199_v61  ;;  %v2285_v63 = vld [vmem:[%s2968_s8] sm:$0xff]  }
 0xa16   : > { %v1138_v25 = vpop.f32.mrb[12].mxu0 }
 0xa17   : > { %v1187_v27 = vadd.f32 %v1138_v25, %v2709_v13  ;;  %v2087_v29 = vpop.f32.mrb[13].mxu0  ;;  %2118 = vmatmul.mubr.msk.bf16.vlgmr.msra.gmra.mrb[16].mxu0 %vm1259_vm5, %v1213_v22 }
 0xa18   : > { %v1141_v50 = vpop.f32.mrb[14].mxu0  ;;  %2121 = vmatprep.mubr.msk.bf16.mxu0 %vm2364_vm14, %v2363_v26  ;;  %2182 = vmatpush3.bf16.msra.mxu0 %v2285_v63 }
 0xa19   : > { %v1188_v53 = vadd.f32 %v1141_v50, %v2711_v14  ;;  %v2088_v55 = vpop.f32.mrb[15].mxu0  ;;  %v1201_v20 = vmax.f32 %v1187_v27, 0.0  ;;  %2183 = vmatprep.subr.bf16.mxu0 %v2363_v26 }
 0xa1b   : > { %v1202_v24 = vmax.f32 %v1188_v53, 0.0 }
 0xa1d   : > { %v1214_v31 = vpack.c.bf16 %v1202_v24, %v1201_v20 }
 0xa1e   : > { %v1146_v54 = vpop.f32.mrb[4].mxu1 }
 0xa1f   : > { %v1189_v62 = vadd.f32 %v1146_v54, %v2709_v13  ;;  %v2091_v1 = vpop.f32.mrb[5].mxu1  ;;  %2122 = vmatmul.mubr.msk.bf16.gmra.mrb[20].mxu0 %vm1259_vm5, %v1214_v31 }
 0xa20   : > { %v1149_v4 = vpop.f32.mrb[6].mxu1  ;;  %2125 = vmatprep.mubr.msk.bf16.mxu0 %vm2364_vm14, %v2363_v26 }
 0xa21   : > { %v1190_v18 = vadd.f32 %v1149_v4, %v2711_v14  ;;  %v2092_v19 = vpop.f32.mrb[7].mxu1  ;;  %v1203_v21 = vmax.f32 %v1189_v62, 0.0 }
 0xa23   : > { %v1204_v23 = vmax.f32 %v1190_v18, 0.0 }
 0xa25   : > { %v1215_v30 = vpack.c.bf16 %v1204_v23, %v1203_v21 }
 0xa26   : > { %v1154_v32 = vpop.f32.mrb[8].mxu1 }
 0xa27   : > { %v1191_v33 = vadd.f32 %v1154_v32, %v2709_v13  ;;  %v2095_v34 = vpop.f32.mrb[9].mxu1  ;;  %2126 = vmatmul.mubr.msk.bf16.gmra.mrb[24].mxu0 %vm1259_vm5, %v1215_v30 }
 0xa28   : > { %v1157_v35 = vpop.f32.mrb[10].mxu1  ;;  %2129 = vmatprep.mubr.msk.bf16.mxu0 %vm2364_vm14, %v2363_v26 }
 0xa29   : > { %v1192_v36 = vadd.f32 %v1157_v35, %v2711_v14  ;;  %v2096_v37 = vpop.f32.mrb[11].mxu1  ;;  %v1205_v38 = vmax.f32 %v1191_v33, 0.0 }
 0xa2b   : > { %v1206_v39 = vmax.f32 %v1192_v36, 0.0 }
 0xa2d   : > { %v1216_v40 = vpack.c.bf16 %v1206_v39, %v1205_v38 }
 0xa2e   : > { %v1162_v41 = vpop.f32.mrb[12].mxu1 }
 0xa2f   : > { %v1193_v42 = vadd.f32 %v1162_v41, %v2709_v13  ;;  %v2099_v43 = vpop.f32.mrb[13].mxu1  ;;  %2130 = vmatmul.mubr.msk.bf16.gmra.mrb[28].mxu0 %vm1259_vm5, %v1216_v40 }
 0xa30   : > { %v1165_v44 = vpop.f32.mrb[14].mxu1  ;;  %2133 = vmatprep.mubr.msk.bf16.mxu0 %vm2364_vm14, %v2363_v26 }
 0xa31   : > { %v1194_v45 = vadd.f32 %v1165_v44, %v2711_v14  ;;  %v2100_v46 = vpop.f32.mrb[15].mxu1  ;;  %v1207_v47 = vmax.f32 %v1193_v42, 0.0 }
 0xa33   : > { %v1208_v48 = vmax.f32 %v1194_v45, 0.0 }
 0xa35   : > { %v1217_v49 = vpack.c.bf16 %v1208_v48, %v1207_v47 }
 0xa36   : > { %v1170_v51 = vpop.f32.mrb[16].mxu1 }
 0xa37   : > { %v1195_v52 = vadd.f32 %v1170_v51, %v2709_v13  ;;  %v2103_v57 = vpop.f32.mrb[17].mxu1  ;;  %2134 = vmatmul.mubr.msk.bf16.gmra.mrb[32].mxu0 %vm1259_vm5, %v1217_v49 }
 0xa38   : > { %v1173_v60 = vpop.f32.mrb[18].mxu1  ;;  %2137 = vmatprep.mubr.msk.bf16.mxu0 %vm2364_vm14, %v2363_v26 }
 0xa39   : > { %v1196_v0 = vadd.f32 %v1173_v60, %v2711_v14  ;;  %v2104_v3 = vpop.f32.mrb[19].mxu1  ;;  %v1209_v5 = vmax.f32 %v1195_v52, 0.0 }
 0xa3b   : > { %v1210_v6 = vmax.f32 %v1196_v0, 0.0 }
 0xa3d   : > { %v1218_v7 = vpack.c.bf16 %v1210_v6, %v1209_v5 }
 0xa3f   : > { %2138 = vmatmul.mubr.msk.bf16.gmra.mrb[36].mxu0 %vm1259_vm5, %v1218_v7 }
 0xa40   : > { %2141 = vmatprep.mubr.msk.bf16.mxu0 %vm2364_vm14, %v2363_v26 }
 0xa90   : > { %v1178_v11 = vpop.f32.mrb[20].mxu1 }
 0xa91   : > { %v1197_v12 = vadd.f32 %v1178_v11, %v2709_v13  ;;  %v2107_v15 = vpop.f32.mrb[21].mxu1  ;;  %v2286_v13 = vld [vmem:[%s2968_s8 + $0x8] sm:$0xff]  }
 0xa92   : > { %v1181_v8 = vpop.f32.mrb[22].mxu1  ;;  %2184 = vmatpush3.bf16.msra.mxu0 %v2286_v13 }
 0xa93   : > { %v1198_v16 = vadd.f32 %v1181_v8, %v2711_v14  ;;  %v2108_v17 = vpop.f32.mrb[23].mxu1  ;;  %v1211_v56 = vmax.f32 %v1197_v12, 0.0  ;;  %2189 = vmatprep.subr.bf16.mxu0 %v2363_v26  ;;  %v2779_v14 = vld [vmem:[%s2965_s5] ss:$0 sm:$0xff] }
 0xa95   : > { %v1212_v59 = vmax.f32 %v1198_v16, 0.0 }
 0xa97   : > { %v1219_v61 = vpack.c.bf16 %v1212_v59, %v1211_v56 }
 0xa99   : > { %2142 = vmatmul.mubr.msk.bf16.gmra.mrb[40].mxu0 %vm1259_vm5, %v1219_v61 }
 0xa9a   : > { %2185 = vmatprep.mubr.msk.bf16.mxu0 %vm2364_vm14, %v2363_v26 }
 0xaa1   : > { %2186 = vmatmul.mubr.msk.bf16.vlgmr.msra.gmra.mrb[44].mxu0 %vm468_vm0, %v2497_v2  ;;  %vm1846_vm0 = vcmask 32768  }
 0xaa2   : > { %2197 = vmatprep.mubr.msk.bf16.mxu0 %vm2364_vm14, %v2363_v26 }
 0xaea   : > { %v1315_v22 = vpop.f32.mrb[16].mxu0 }
 0xaeb   : > { %v1316_v25 = vadd.f32 %v2779_v14, %v1315_v22  ;;  %v2119_v27 = vpop.f32.mrb[17].mxu0 }
 0xaec   : > { %v1318_v29 = vpop.f32.mrb[18].mxu0 }
 0xaed   : > { %v1319_v50 = vadd.f32 %v2779_v14, %v1318_v29  ;;  %v2120_v53 = vpop.f32.mrb[19].mxu0  ;;  %v1370_v55 = vmax.f32 %v1316_v25, 0.0  ;;  %v2819_v29 = vld [vmem:[%s2967_s7] ss:$0 sm:$0xff] }
 0xaef   : > { %v1371_v58 = vmax.f32 %v1319_v50, 0.0 }
 0xaf1   : > { %v1384_v20 = vpack.c.bf16 %v1371_v58, %v1370_v55 }
 0xaf2   : > { %v1323_v2 = vpop.f32.mrb[20].mxu0 }
 0xaf3   : > { %v1324_v24 = vadd.f32 %v2779_v14, %v1323_v2  ;;  %v2123_v28 = vpop.f32.mrb[21].mxu0  ;;  %2154 = vmatmul.mubr.msk.bf16.vlgmr.msra.gmra.mrb[24].mxu1 %vm1259_vm5, %v1384_v20 }
 0xaf4   : > { %v1326_v31 = vpop.f32.mrb[22].mxu0  ;;  %2157 = vmatprep.mubr.msk.bf16.mxu1 %vm2364_vm14, %v2363_v26 }
 0xaf5   : > { %v1327_v54 = vadd.f32 %v2779_v14, %v1326_v31  ;;  %v2124_v62 = vpop.f32.mrb[23].mxu0  ;;  %v1372_v1 = vmax.f32 %v1324_v24, 0.0 }
 0xaf7   : > { %v1373_v4 = vmax.f32 %v1327_v54, 0.0 }
 0xaf9   : > { %v1385_v18 = vpack.c.bf16 %v1373_v4, %v1372_v1 }
 0xafa   : > { %v1331_v19 = vpop.f32.mrb[24].mxu0 }
 0xafb   : > { %v1332_v21 = vadd.f32 %v2779_v14, %v1331_v19  ;;  %v2127_v23 = vpop.f32.mrb[25].mxu0  ;;  %2158 = vmatmul.mubr.msk.bf16.gmra.mrb[28].mxu1 %vm1259_vm5, %v1385_v18 }
 0xafc   : > { %v1334_v30 = vpop.f32.mrb[26].mxu0  ;;  %2161 = vmatprep.mubr.msk.bf16.mxu1 %vm2364_vm14, %v2363_v26 }
 0xafd   : > { %v1335_v32 = vadd.f32 %v2779_v14, %v1334_v30  ;;  %v2128_v33 = vpop.f32.mrb[27].mxu0  ;;  %v1374_v34 = vmax.f32 %v1332_v21, 0.0 }
 0xaff   : > { %v1375_v35 = vmax.f32 %v1335_v32, 0.0 }
 0xb01   : > { %v1386_v36 = vpack.c.bf16 %v1375_v35, %v1374_v34 }
 0xb02   : > { %v1339_v37 = vpop.f32.mrb[28].mxu0 }
 0xb03   : > { %v1340_v38 = vadd.f32 %v2779_v14, %v1339_v37  ;;  %v2131_v39 = vpop.f32.mrb[29].mxu0  ;;  %2162 = vmatmul.mubr.msk.bf16.gmra.mrb[32].mxu1 %vm1259_vm5, %v1386_v36 }
 0xb04   : > { %v1342_v40 = vpop.f32.mrb[30].mxu0  ;;  %2165 = vmatprep.mubr.msk.bf16.mxu1 %vm2364_vm14, %v2363_v26 }
 0xb05   : > { %v1343_v41 = vadd.f32 %v2779_v14, %v1342_v40  ;;  %v2132_v42 = vpop.f32.mrb[31].mxu0  ;;  %v1376_v43 = vmax.f32 %v1340_v38, 0.0 }
 0xb07   : > { %v1377_v44 = vmax.f32 %v1343_v41, 0.0 }
 0xb09   : > { %v1387_v45 = vpack.c.bf16 %v1377_v44, %v1376_v43  ;;  %v2287_v44 = vld [vmem:[%s2970_s10] sm:$0xff]  }
 0xb0a   : > { %v1347_v46 = vpop.f32.mrb[32].mxu0  ;;  %2190 = vmatpush3.bf16.msra.mxu0 %v2287_v44 }
 0xb0b   : > { %v1348_v47 = vadd.f32 %v2779_v14, %v1347_v46  ;;  %v2135_v48 = vpop.f32.mrb[33].mxu0  ;;  %2166 = vmatmul.mubr.msk.bf16.gmra.mrb[36].mxu1 %vm1259_vm5, %v1387_v45  ;;  %2191 = vmatprep.subr.bf16.mxu0 %v2363_v26 }
 0xb0c   : > { %v1350_v49 = vpop.f32.mrb[34].mxu0  ;;  %2169 = vmatprep.mubr.msk.bf16.mxu1 %vm2364_vm14, %v2363_v26 }
 0xb0d   : > { %v1351_v51 = vadd.f32 %v2779_v14, %v1350_v49  ;;  %v2136_v52 = vpop.f32.mrb[35].mxu0  ;;  %v1378_v57 = vmax.f32 %v1348_v47, 0.0 }
 0xb0e   : > { %v2288_v52 = vld [vmem:[%s2970_s10 + $0x8] sm:$0xff]  }
 0xb0f   : > { %v1379_v60 = vmax.f32 %v1351_v51, 0.0  ;;  %2192 = vmatpush3.bf16.msra.mxu0 %v2288_v52 }
 0xb10   : > { %2193 = vmatprep.subr.bf16.mxu0 %v2363_v26 }
 0xb11   : > { %v1388_v0 = vpack.c.bf16 %v1379_v60, %v1378_v57 }
 0xb12   : > { %v1355_v3 = vpop.f32.mrb[36].mxu0 }
 0xb13   : > { %v1356_v5 = vadd.f32 %v2779_v14, %v1355_v3  ;;  %v2139_v6 = vpop.f32.mrb[37].mxu0  ;;  %2170 = vmatmul.mubr.msk.bf16.gmra.mrb[40].mxu1 %vm1259_vm5, %v1388_v0 }
 0xb14   : > { %v1358_v7 = vpop.f32.mrb[38].mxu0  ;;  %2173 = vmatprep.mubr.msk.bf16.mxu1 %vm2364_vm14, %v2363_v26 }
 0xb15   : > { %v1359_v10 = vadd.f32 %v2779_v14, %v1358_v7  ;;  %v2140_v9 = vpop.f32.mrb[39].mxu0  ;;  %v1380_v11 = vmax.f32 %v1356_v5, 0.0  ;;  %v2289_v7 = vld [vmem:[%s2970_s10 + $0x10] sm:$0xff]  }
 0xb16   : > { %2194 = vmatpush3.bf16.msra.mxu0 %v2289_v7 }
 0xb17   : > { %v1381_v12 = vmax.f32 %v1359_v10, 0.0  ;;  %2195 = vmatprep.subr.bf16.mxu0 %v2363_v26 }
 0xb19   : > { %v1389_v15 = vpack.c.bf16 %v1381_v12, %v1380_v11 }
 0xb1b   : > { %2174 = vmatmul.mubr.msk.bf16.gmra.mrb[44].mxu1 %vm1259_vm5, %v1389_v15  ;;  %v2290_v15 = vld [vmem:[%s2970_s10 + $0x18] sm:$0xff]  }
 0xb1c   : > { %2177 = vmatprep.mubr.msk.bf16.mxu1 %vm2364_vm14, %v2363_v26  ;;  %2196 = vmatpush3.bf16.msra.mxu0 %v2290_v15 }
 0xb6c   : > { %v1363_v8 = vpop.f32.mrb[40].mxu0 }
 0xb6d   : > { %v1364_v16 = vadd.f32 %v2779_v14, %v1363_v8  ;;  %v2143_v17 = vpop.f32.mrb[41].mxu0 }
 0xb6e   : > { %v1366_v56 = vpop.f32.mrb[42].mxu0 }
 0xb6f   : > { %v1367_v59 = vadd.f32 %v2779_v14, %v1366_v56  ;;  %v2144_v61 = vpop.f32.mrb[43].mxu0  ;;  %v1382_v63 = vmax.f32 %v1364_v16, 0.0 }
 0xb71   : > { %v1383_v13 = vmax.f32 %v1367_v59, 0.0 }
 0xb73   : > { %v1390_v22 = vpack.c.bf16 %v1383_v13, %v1382_v63 }
 0xb74   : > { %v2822_v55 = vpop.f32.mrb[44].mxu0 }
 0xb75   : > { %2178 = vmatmul.mubr.msk.bf16.gmra.mrb[48].mxu1 %vm1259_vm5, %v1390_v22  ;;  %v2187_v20 = vpop.f32.mrb[45].mxu0 }
 0xb76   : > { %2217 = vmatprep.mubr.msk.bf16.mxu1 %vm2364_vm14, %v2363_v26  ;;  %v2825_v24 = vpop.f32.mrb[46].mxu0 }
 0xb77   : > { %v2188_v62 = vpop.f32.mrb[47].mxu0 }
 0xbc6   : > { %v1485_v25 = vpop.f32.mrb[24].mxu1 }
 0xbc7   : > { %v2155_v27 = vpop.f32.mrb[25].mxu1  ;;  %v1486_v14 = vadd.f32 %v2819_v29, %v1485_v25 }
 0xbc8   : > { %v1488_v50 = vpop.f32.mrb[26].mxu1  ;;  %v2291_v27 = vld [vmem:[%s2972_s12] sm:$0xff]  }
 0xbc9   : > { %v2156_v53 = vpop.f32.mrb[27].mxu1  ;;  %v1489_v58 = vadd.f32 %v2819_v29, %v1488_v50  ;;  %v1540_v28 = vmax.f32 %v1486_v14, 0.0  ;;  %2202 = vmatpush3.bf16.msra.mxu1 %v2291_v27  ;;  %v2292_v14 = vld [vmem:[%s2972_s12 + $0x8] sm:$0xff]  }
 0xbca   : > { %2203 = vmatprep.subr.bf16.mxu1 %v2363_v26 }
 0xbcb   : > { %v1541_v4 = vmax.f32 %v1489_v58, 0.0  ;;  %v1554_v23 = vsel %vm1259_vm5, %v1540_v28, 0.0 }
 0xbcd   : > { %v1567_v34 = vsel %vm1259_vm5, %v1541_v4, 0.0  ;;  %2204 = vmatpush3.bf16.msra.mxu1 %v2292_v14  ;;  %v2293_v4 = vld [vmem:[%s2972_s12 + $0x10] sm:$0xff]  }
 0xbce   : > { %v1493_v2 = vpop.f32.mrb[28].mxu1  ;;  %2205 = vmatprep.subr.bf16.mxu1 %v2363_v26 }
 0xbcf   : > { %v1494_v31 = vadd.f32 %v2819_v29, %v1493_v2  ;;  %v2159_v54 = vpop.f32.mrb[29].mxu1 }
 0xbd0   : > { %v1496_v1 = vpop.f32.mrb[30].mxu1 }
 0xbd1   : > { %v1542_v18 = vmax.f32 %v1494_v31, 0.0  ;;  %v1497_v19 = vadd.f32 %v2819_v29, %v1496_v1  ;;  %v2160_v21 = vpop.f32.mrb[31].mxu1  ;;  %2206 = vmatpush3.bf16.msra.mxu1 %v2293_v4 }
 0xbd2   : > { %2207 = vmatprep.subr.bf16.mxu1 %v2363_v26 }
 0xbd3   : > { %v1555_v30 = vsel %vm1259_vm5, %v1542_v18, 0.0  ;;  %v1543_v32 = vmax.f32 %v1497_v19, 0.0 }
 0xbd4   : > { %v1556_v33 = vadd.f32 %v1555_v30, %v1554_v23  ;;  %v2294_v30 = vld [vmem:[%s2972_s12 + $0x18] sm:$0xff]  }
 0xbd5   : > { %v1568_v35 = vsel %vm1259_vm5, %v1543_v32, 0.0  ;;  %2208 = vmatpush3.bf16.msra.mxu1 %v2294_v30 }
 0xbd6   : > { %v1569_v36 = vadd.f32 %v1568_v35, %v1567_v34  ;;  %v1501_v37 = vpop.f32.mrb[32].mxu1  ;;  %2209 = vmatprep.subr.bf16.mxu1 %v2363_v26  ;;  %v2296_v34 = vld [vmem:[%s2972_s12 + $0x28] sm:$0xff]   ;;  %v2297_v35 = vld [vmem:[%s2972_s12 + $0x30] sm:$0xff]  }
 0xbd7   : > { %v1502_v38 = vadd.f32 %v2819_v29, %v1501_v37  ;;  %v2163_v39 = vpop.f32.mrb[33].mxu1 }
 0xbd8   : > { %v1504_v40 = vpop.f32.mrb[34].mxu1 }
 0xbd9   : > { %v1544_v41 = vmax.f32 %v1502_v38, 0.0  ;;  %v1505_v42 = vadd.f32 %v2819_v29, %v1504_v40  ;;  %v2164_v43 = vpop.f32.mrb[35].mxu1 }
 0xbda   : > { %v1978_v43 = vld [vmem:[%s2969_s9] ss:$0 sm:$0xff] }
 0xbdb   : > { %v1557_v45 = vsel %vm1259_vm5, %v1544_v41, 0.0  ;;  %v1545_v46 = vmax.f32 %v1505_v42, 0.0 }
 0xbdc   : > { %v1558_v47 = vadd.f32 %v1557_v45, %v1556_v33  ;;  %v2295_v33 = vld [vmem:[%s2972_s12 + $0x20] sm:$0xff]  }
 0xbdd   : > { %v1570_v48 = vsel %vm1259_vm5, %v1545_v46, 0.0  ;;  %2210 = vmatpush3.bf16.msra.mxu1 %v2295_v33 }
 0xbde   : > { %v1571_v49 = vadd.f32 %v1570_v48, %v1569_v36  ;;  %v1509_v51 = vpop.f32.mrb[36].mxu1  ;;  %2211 = vmatprep.subr.bf16.mxu1 %v2363_v26 }
 0xbdf   : > { %v1510_v57 = vadd.f32 %v2819_v29, %v1509_v51  ;;  %v2167_v60 = vpop.f32.mrb[37].mxu1 }
 0xbe0   : > { %v1512_v0 = vpop.f32.mrb[38].mxu1 }
 0xbe1   : > { %v1546_v3 = vmax.f32 %v1510_v57, 0.0  ;;  %v1513_v5 = vadd.f32 %v2819_v29, %v1512_v0  ;;  %v2168_v6 = vpop.f32.mrb[39].mxu1  ;;  %2212 = vmatpush3.bf16.msra.mxu1 %v2296_v34  ;;  %v1644_v57 = vadd.f32 %v1978_v43, %v2825_v24  ;;  %v2298_v24 = vld [vmem:[%s2972_s12 + $0x38] sm:$0xff]  }
 0xbe2   : > { %2213 = vmatprep.subr.bf16.mxu1 %v2363_v26 }
 0xbe3   : > { %v1559_v10 = vsel %vm1259_vm5, %v1546_v3, 0.0  ;;  %v1547_v9 = vmax.f32 %v1513_v5, 0.0 }
 0xbe4   : > { %v1560_v11 = vadd.f32 %v1559_v10, %v1558_v47  ;;  %v1641_v47 = vadd.f32 %v1978_v43, %v2822_v55 }
 0xbe5   : > { %v1572_v12 = vsel %vm1259_vm5, %v1547_v9, 0.0  ;;  %2214 = vmatpush3.bf16.msra.mxu1 %v2297_v35 }
 0xbe6   : > { %v1573_v8 = vadd.f32 %v1572_v12, %v1571_v49  ;;  %v1517_v16 = vpop.f32.mrb[40].mxu1  ;;  %2215 = vmatprep.subr.bf16.mxu1 %v2363_v26 }
 0xbe7   : > { %v1518_v17 = vadd.f32 %v2819_v29, %v1517_v16  ;;  %v2171_v56 = vpop.f32.mrb[41].mxu1  ;;  %v1671_v16 = vld [vmem:[%s2971_s11] sm:$0x1] }
 0xbe8   : > { %v1520_v59 = vpop.f32.mrb[42].mxu1 }
 0xbe9   : > { %v1548_v61 = vmax.f32 %v1518_v17, 0.0  ;;  %v1521_v63 = vadd.f32 %v2819_v29, %v1520_v59  ;;  %v2172_v13 = vpop.f32.mrb[43].mxu1  ;;  %2216 = vmatpush3.bf16.msra.mxu1 %v2298_v24 }
 0xbeb   : > { %v1561_v22 = vsel %vm1259_vm5, %v1548_v61, 0.0  ;;  %v1549_v25 = vmax.f32 %v1521_v63, 0.0 }
 0xbec   : > { %v1562_v50 = vadd.f32 %v1561_v22, %v1560_v11 }
 0xbed   : > { %v1574_v53 = vsel %vm1259_vm5, %v1549_v25, 0.0  ;;  %v1757_v25 = vld [vmem:[%s2973_s13] sm:$0x1] }
 0xbee   : > { %v1575_v58 = vadd.f32 %v1574_v53, %v1573_v8  ;;  %v1525_v20 = vpop.f32.mrb[44].mxu1 }
 0xbef   : > { %v1526_v2 = vadd.f32 %v2819_v29, %v1525_v20  ;;  %v2175_v28 = vpop.f32.mrb[45].mxu1 }
 0xbf0   : > { %v1528_v31 = vpop.f32.mrb[46].mxu1 }
 0xbf1   : > { %v1550_v54 = vmax.f32 %v1526_v2, 0.0  ;;  %v1529_v62 = vadd.f32 %v2819_v29, %v1528_v31  ;;  %v2176_v1 = vpop.f32.mrb[47].mxu1 }
 0xbf3   : > { %v1563_v18 = vsel %vm1259_vm5, %v1550_v54, 0.0  ;;  %v1551_v19 = vmax.f32 %v1529_v62, 0.0 }
 0xbf4   : > { %v1564_v21 = vadd.f32 %v1563_v18, %v1562_v50 }
 0xbf5   : > { %v1576_v23 = vsel %vm1259_vm5, %v1551_v19, 0.0 }
 0xbf6   : > { %v1577_v32 = vadd.f32 %v1576_v23, %v1575_v58 }
 0xc48   : > { %v1533_v36 = vpop.f32.mrb[48].mxu1 }
 0xc49   : > { %v1534_v37 = vadd.f32 %v2819_v29, %v1533_v36  ;;  %v2179_v38 = vpop.f32.mrb[49].mxu1 }
 0xc4a   : > { %v1536_v39 = vpop.f32.mrb[50].mxu1 }
 0xc4b   : > { %v1552_v40 = vmax.f32 %v1534_v37, 0.0  ;;  %v1537_v41 = vadd.f32 %v2819_v29, %v1536_v39  ;;  %v2180_v42 = vpop.f32.mrb[51].mxu1 }
 0xc4d   : > { %v1565_v44 = vsel %vm1259_vm5, %v1552_v40, 0.0  ;;  %v1553_v45 = vmax.f32 %v1537_v41, 0.0 }
 0xc4e   : > { %v1566_v46 = vadd.f32 %v1565_v44, %v1564_v21 }
 0xc4f   : > { %v1578_v26 = vsel %vm1259_vm5, %v1553_v45, 0.0 }
 0xc50   : > { %v1579_v48 = vadd.f32 %v1578_v26, %v1577_v32  ;;  %v1581_v49 = vmul.f32 0.14285715, %v1566_v46 }
 0xc52   : > { %v1647_v51 = vadd.f32 %v1641_v47, %v1581_v49  ;;  %v1582_v52 = vmul.f32 0.14285715, %v1579_v48 }
 0xc54   : > { %v1649_v29 = vmax.f32 %v1647_v51, 0.0  ;;  %v1648_v60 = vadd.f32 %v1644_v57, %v1582_v52 }
 0xc56   : > { %v1650_v0 = vmax.f32 %v1648_v60, 0.0  ;;  %v1651_v3 = vsel %vm1259_vm5, %v1649_v29, 0.0 }
 0xc58   : > { %v1652_v5 = vsel %vm1259_vm5, %v1650_v0, 0.0 }
 0xc59   : > { %v1653_v6 = vadd.f32 %v1652_v5, %v1651_v3 }
 0xc5b   : > { %v1654_v7 = vrot.slane %v1653_v6, 4 }
 0xc5d   : > { %v1655_v10 = vadd.f32 %v1654_v7, %v1653_v6 }
 0xc5f   : > { %v1656_v9 = vrot.slane %v1655_v10, 2 }
 0xc61   : > { %v1657_v55 = vadd.f32 %v1656_v9, %v1655_v10 }
 0xc63   : > { %v1658_v11 = vrot.slane %v1657_v55, 1 }
 0xc65   : > { %v1659_v12 = vadd.f32 %v1658_v11, %v1657_v55 }
 0xc67   : > { %v1661_v15 = vmul.f32 0.0625, %v1659_v12 }
 0xc69   : > { %v1662_v8 = vpack.c.bf16 %v1661_v15, %v1661_v15 }
 0xc6b   : > { %2198 = vmatmul.mubr.msk.bf16.vlgmr.msra.gmra.mrb[48].mxu0 %vm1259_vm5, %v1662_v8 }
 0xd3e   : > { %v1733_v17 = vpop.f32.mrb[48].mxu0 }
 0xd3f   : > { %v1734_v56 = vadd.f32 %v1733_v17, %v1671_v16  ;;  %v2199_v59 = vpop.f32.mrb[49].mxu0 }
 0xd40   : > { %v1736_v61 = vpop.f32.mrb[50].mxu0 }
 0xd41   : > { %v1739_v63 = vmax.f32 %v1734_v56, 0.0  ;;  %v2200_v13 = vpop.f32.mrb[51].mxu0 }
 0xd43   : > { %v1740_v22 = vpack.c.bf16 %v1739_v63, %v1739_v63 }
 0xd45   : > { %2218 = vmatmul.mubr.bf16.vlgmr.msra.gmra.mrb[52].mxu1 %v1740_v22 }
 0xe18   : > { %v1840_v27 = vpop.f32.mrb[52].mxu1 }
 0xe19   : > { %v1841_v50 = vadd.f32 %v1840_v27, %v1757_v25  ;;  %v2219_v53 = vpop.f32.mrb[53].mxu1 }
 0xe1a   : > { %v1843_v14 = vpop.f32.mrb[54].mxu1 }
 0xe1b   : > { %v2220_v58 = vpop.f32.mrb[55].mxu1  ;;  %1847 = vst.msk [vmem:[%s459_s26] sm:$0x1] %vm1846_vm0, %v1841_v50 }
 0xe1c   : > { %2312 = shalt.err (!%p2309_p3)
}
 0xe1d   : > { %s2313_s18 = scalar_lea.hbm %s2918_s1, 16  ;;  %s2317_s28 = scalar_lea.hbm %s2974_s14, 32 }
 0xe1e   : > { %p2314_p4 = scmp.ne.s32.totalorder %s2918_s1, %s2313_s18  ;;  %p2318_p9 = scmp.lt.u32.totalorder %s2918_s1, %s2974_s14 }
 0xe1f   : > { %p2319_p10 = scmp.lt.u32.totalorder %s2317_s28, %s2313_s18  ;;  %p2321_p12 = scmp.lt.u32.totalorder %s2313_s18, %s2918_s1 }
 0xe20   : > { %p2315_p7 = pnand %p2314_p4, %p2480_p5 }
 0xe21   : > { %p2320_p11 = por %p2319_p10, %p2318_p9 }
 0xe22   : > { %p2316_p8 = pneg %p2315_p7 }
 0xe23   : > { %p2322_p13 = por %p2321_p12, %p2320_p11 }
 0xe25   : > { %p2323_p0 = pnand %p2322_p13, %p2316_p8 }
 0xe27   : > { %2326 = shalt.err (!%p2323_p0)
}
 0xe28   : > { %2229 = dma.vmem_to_hbm [thread:$0]  (%p2480_p5), %s2920_s0, 16, %s2918_s1, %s1849_s17  }
 0xe29 PF: > { %p2235_p1 = scmp.ge.s32.totalorder %s2361_s16, 2  ;;  %s1873_s20 = sand.u32 1, %s2349_s29  }
 0xe2a   : > { %s1874_s27 = scalar_lea.sflag [#allocation3], %s1873_s20 }
 0xe2b   : > { %p2232_p2 = pnand %p2235_p1, %p2484_p6 }
 0xe2d   : > { %2344 = dma.done.wait (!%p2232_p2), %s1874_s27, 16  }
 0xe2e   : > { %2346 = vsyncadd (!%p2232_p2), %s1874_s27, 4294967280  ;;  %p24_p3 = scmp.ge.s32.totalorder %s2467_s19, 4   ;;  %s2983_s29 = smov %s2353_s30 }
 0xe2f   : > { %s2984_s30 = smov %s2357_s15  ;;  %s2985_s15 = smov %s2478_s22 }
 0xe30   : > { %s2986_s16 = smov %s2467_s19  ;;  %26 = sbr.rel (!%p24_p3) target bundleno = 7 (0x7), region = 111 }
 0xe37   :  { %1878 = vsyncpa [#allocation3], 1 }
 0xe38   :  { %1880 = vsyncpa [#allocation3 + $0x1], 1 }

</bundles_post_ra>
